<compile_context>
chip_gen: v5e
topology: v5e:2x2
jax: 0.10.0
libtpu: 0.0.40
codegen_flags: <defaults>
</compile_context>

<pallas_src>
import functools

import jax
import jax.numpy as jnp
from jax.experimental import pallas as pl
from jax.experimental.pallas import tpu as pltpu

_MIN_TILE = 256  # row-tile floor for large problems (MXU / per-step overhead)


def _round_up(x, m):
    return ((x + m - 1) // m) * m


@functools.lru_cache(maxsize=None)
def _vmem_limit_bytes():
    """Generation-aware scoped-VMEM limit passed to every pallas_call."""
    try:
        kind = jax.devices()[0].device_kind.lower()
    except Exception:
        kind = ""
    if "v2" in kind or "v3" in kind:
        return 14 * 1024 * 1024
    if "7" in kind:                     # v7x: only 64 MiB VMEM per TensorCore
        return 40 * 1024 * 1024
    return 48 * 1024 * 1024             # v4 / v5e / v5p / v6e (128 MiB physical)


def _vmem_budget():
    # The tiling estimate only consumes ~60% of the explicit limit, leaving
    # headroom for compiler scratch and pipelining slack.
    return int(_vmem_limit_bytes() * 0.6)


def _compiler_params():
    return pltpu.CompilerParams(
        dimension_semantics=("parallel",),
        vmem_limit_bytes=_vmem_limit_bytes())


def _pick_rows(M, bytes_per_row, fixed_bytes, budget):
    """Pick a row tile.

    - at least 2 grid steps whenever the row count allows it (feeds both v7x
      TensorCores and keeps the auto-pipeline overlapping DMA with compute),
    - 256-row floor for large problems (MXU utilisation / per-step overhead),
    - VMEM estimate already includes double-buffering of the tiled operands.
    """
    M8 = _round_up(M, 8)
    if M8 <= _MIN_TILE:
        if M8 >= 32 and M8 % 32 == 0:
            return M8 // 2, M8          # two grid steps even for small layers
        return M8, M8
    half = _round_up((M8 + 1) // 2, 8)
    tm = _MIN_TILE
    while tm * 2 <= half and fixed_bytes + bytes_per_row * (tm * 2) <= budget:
        tm *= 2
    while tm > 64 and fixed_bytes + bytes_per_row * tm > budget:
        tm //= 2
    return tm, _round_up(M8, tm)


# ---------------------------------------------------------------------------
# Pallas kernels
# ---------------------------------------------------------------------------
def _fused_matmul_kernel(a_ref, w_ref, c_ref, o_ref, *, act):
    # act(A @ W + c) with BatchNorm/bias already folded into W / c.
    y = jnp.dot(a_ref[...], w_ref[...], preferred_element_type=jnp.float32)
    y = y + c_ref[...]
    if act == "relu":
        y = jnp.maximum(y, 0.0)
    o_ref[...] = y.astype(o_ref.dtype)


def _gate_core(g_ref, s_ref, wg_ref, wx_ref, c1_ref, wp_ref, c2_ref):
    g = g_ref[...]                                     # (tm, C) bf16
    s = s_ref[...]
    h = jnp.dot(g, wg_ref[...], preferred_element_type=jnp.float32)
    h = h + jnp.dot(s, wx_ref[...], preferred_element_type=jnp.float32)
    h = jnp.maximum(h + c1_ref[...], 0.0)              # (tm, F) f32
    # psi 1x1 conv (Cout=1): VPU multiply + cross-lane reduce instead of a
    # rank-1, lane-replicated MXU matmul.
    logit = jnp.sum(h * wp_ref[...], axis=-1, keepdims=True) + c2_ref[...]
    psi = jax.nn.sigmoid(logit)                        # (tm, 1) f32
    return g.astype(jnp.float32) + s.astype(jnp.float32) * psi


def _gate_kernel(g_ref, s_ref, wg_ref, wx_ref, c1_ref, wp_ref, c2_ref, o_ref):
    comb = _gate_core(g_ref, s_ref, wg_ref, wx_ref, c1_ref, wp_ref, c2_ref)
    o_ref[...] = comb.astype(o_ref.dtype)


def _gate_final_kernel(g_ref, s_ref, wg_ref, wx_ref, c1_ref, wp_ref, c2_ref,
                       wf_ref, bf_ref, o_ref):
    # Gate + combine + the network's final 1x1 conv (Cout=1) in one kernel.
    comb = _gate_core(g_ref, s_ref, wg_ref, wx_ref, c1_ref, wp_ref, c2_ref)
    y = jnp.sum(comb * wf_ref[...], axis=-1, keepdims=True) + bf_ref[...]
    o_ref[...] = y.astype(o_ref.dtype)


# ---------------------------------------------------------------------------
# Fused matmul wrapper (used by every conv)
# ---------------------------------------------------------------------------
def fused_matmul(a, w, shift, act=None, out_dtype=jnp.bfloat16):
    """a: (M, K), w: (K, Nc), shift: (Nc,) -> act(a @ w + shift) as (M, Nc)."""
    M, K = a.shape
    K2, Nc = w.shape
    assert K == K2
    a = a.astype(jnp.bfloat16)
    w = w.astype(jnp.bfloat16)
    c = shift.reshape(1, Nc).astype(jnp.float32)

    ob = jnp.dtype(out_dtype).itemsize
    # double-buffered A row + output row, plus the f32 accumulator row
    bytes_per_row = 2 * (2 * K + ob * Nc) + 4 * Nc
    fixed = 2 * (2 * K * Nc + 4 * Nc)                  # weights + shift blocks
    tm, m_pad = _pick_rows(M, bytes_per_row, fixed, _vmem_budget())
    if m_pad != M:
        a = jnp.pad(a, ((0, m_pad - M), (0, 0)))

    out = pl.pallas_call(
        functools.partial(_fused_matmul_kernel, act=act),
        out_shape=jax.ShapeDtypeStruct((m_pad, Nc), out_dtype),
        grid=(m_pad // tm,),
        in_specs=[
            pl.BlockSpec((tm, K), lambda i: (i, 0)),
            pl.BlockSpec((K, Nc), lambda i: (0, 0)),
            pl.BlockSpec((1, Nc), lambda i: (0, 0)),
        ],
        out_specs=pl.BlockSpec((tm, Nc), lambda i: (i, 0)),
        compiler_params=_compiler_params(),
    )(a, w, c)
    if m_pad != M:
        out = out[:M]
    return out


# ---------------------------------------------------------------------------
# Conv helpers (glue = im2col / reshape at REAL channel width; compute = Pallas)
# ---------------------------------------------------------------------------
def im2col(x_nhwc, kh, kw, stride, pad, k_multiple=16):
    N, H, W, C = x_nhwc.shape
    xp = jnp.pad(x_nhwc, ((0, 0), (pad, pad), (pad, pad), (0, 0)))
    Ho = (H + 2 * pad - kh) // stride + 1
    Wo = (W + 2 * pad - kw) // stride + 1
    cols = [xp[:, di:di + stride * Ho:stride, dj:dj + stride * Wo:stride, :]
            for di in range(kh) for dj in range(kw)]
    K = kh * kw * C
    Kp = _round_up(K, k_multiple)
    if Kp != K:  # pad K once inside the same concatenate (no extra pass)
        cols.append(jnp.zeros((N, Ho, Wo, Kp - K), x_nhwc.dtype))
    patches = jnp.concatenate(cols, axis=-1)           # (N, Ho, Wo, Kp)
    return patches.reshape(N * Ho * Wo, Kp), Ho, Wo


def _bn_affine(bn):
    gamma, beta, mean, var, eps = bn
    scale = gamma / jnp.sqrt(var + eps)
    shift = beta - mean * scale
    return scale, shift


def conv2d(x_nhwc, w_oihw, b, stride=1, pad=1, bn=None, act=None,
           out_dtype=jnp.bfloat16):
    """PyTorch-semantics Conv2d (+ eval-mode BN + activation), BN folded."""
    Cout, Cin, kh, kw = w_oihw.shape
    N, H, W, Cx = x_nhwc.shape
    assert Cx == Cin, (Cx, Cin)
    assert act in (None, "relu")
    patches, Ho, Wo = im2col(x_nhwc.astype(jnp.bfloat16), kh, kw, stride, pad)
    K = kh * kw * Cin
    Kp = patches.shape[1]
    # weight rows ordered (di, dj, cin) to match the im2col column order
    w_flat = jnp.transpose(w_oihw, (2, 3, 1, 0)).reshape(K, Cout)
    if bn is None:
        scale = jnp.ones((Cout,), jnp.float32)
        shift = jnp.zeros((Cout,), jnp.float32)
    else:
        scale, shift = _bn_affine(bn)
    w_fold = w_flat * scale[None, :]
    w_fold = jnp.pad(w_fold, ((0, Kp - K), (0, 0))).astype(jnp.bfloat16)
    c_fold = (b * scale + shift).astype(jnp.float32)
    y = fused_matmul(patches, w_fold, c_fold, act=act, out_dtype=out_dtype)
    return y.reshape(N, Ho, Wo, Cout)


def conv_transpose2x2(x_nhwc, w_iohw, b):
    """PyTorch ConvTranspose2d(kernel=2, stride=2). weight: (Cin, Cout, 2, 2)."""
    N, H, W, Cx = x_nhwc.shape
    Cin, Cout, kh, kw = w_iohw.shape
    assert Cx == Cin
    # columns ordered (di, dj, cout)
    w_t = jnp.transpose(w_iohw, (0, 2, 3, 1)).reshape(Cin, kh * kw * Cout)
    shift = jnp.tile(b, kh * kw)
    y = fused_matmul(x_nhwc.reshape(N * H * W, Cin), w_t, shift)
    # TODO(synk): scatter the 4 taps straight into an (N, H, 2, W, 2, C) output
    # via per-tap out blocks inside the kernel to remove this XLA pixel-shuffle
    # transpose (one extra pass over a small real-channel bf16 slab today).
    y = y.reshape(N, H, W, kh, kw, Cout)
    y = jnp.transpose(y, (0, 1, 3, 2, 4, 5)).reshape(N, H * kh, W * kw, Cout)
    return y


def attention_gate_combine(g_nhwc, skip_nhwc, gate_p, final_conv=None):
    """Fused AttentionGate + residual add (= g + skip * psi).

    When `final_conv` is given, the network's final 1x1 conv (Cout=1) is fused
    into the same kernel and the result has a single channel (f32).
    """
    N, H, W, C = g_nhwc.shape
    assert skip_nhwc.shape == g_nhwc.shape
    M = N * H * W
    g2 = g_nhwc.reshape(M, C).astype(jnp.bfloat16)
    s2 = skip_nhwc.reshape(M, C).astype(jnp.bfloat16)

    wg, bg, bng = gate_p["W_g"]
    wx, bx, bnx = gate_p["W_x"]
    wp, bp, bn_psi = gate_p["psi"]
    F = wg.shape[0]

    def fold_1x1(w, b, bn):
        # 1x1 conv + eval BN is affine: fold BN into weight/bias.
        scale, shift = _bn_affine(bn)
        w2 = w[:, :, 0, 0].T * scale[None, :]          # (Cin, F)
        b2 = b * scale + shift
        return w2, b2

    wg2, cg = fold_1x1(wg, bg, bng)
    wx2, cx = fold_1x1(wx, bx, bnx)
    c1 = (cg + cx).reshape(1, F).astype(jnp.float32)
    wg2 = wg2.astype(jnp.bfloat16)
    wx2 = wx2.astype(jnp.bfloat16)

    scale_p, shift_p = _bn_affine(bn_psi)
    wp_row = (wp[0, :, 0, 0] * scale_p).reshape(1, F).astype(jnp.float32)
    c2 = (bp * scale_p + shift_p).reshape(1, 1).astype(jnp.float32)

    if final_conv is None:
        kernel, out_cols, out_dtype = _gate_kernel, C, jnp.bfloat16
        extra, extra_specs = (), []
    else:
        wf, bf = final_conv                             # (1, C, 1, 1), (1,)
        wf_row = wf[:, :, 0, 0].reshape(1, C).astype(jnp.float32)
        bf_s = bf.reshape(1, 1).astype(jnp.float32)
        kernel, out_cols, out_dtype = _gate_final_kernel, 1, jnp.float32
        extra = (wf_row, bf_s)
        extra_specs = [pl.BlockSpec((1, C), lambda i: (0, 0)),
                       pl.BlockSpec((1, 1), lambda i: (0, 0))]

    ob = jnp.dtype(out_dtype).itemsize
    # double-buffered g/skip/out rows + in-kernel f32 temporaries (h, combine)
    bytes_per_row = 2 * (2 * C + 2 * C + ob * out_cols) + 4 * F + 8 * C
    fixed = 2 * (2 * 2 * C * F + 3 * 4 * F + 4 * C + 8)
    tm, m_pad = _pick_rows(M, bytes_per_row, fixed, _vmem_budget())
    if m_pad != M:
        g2 = jnp.pad(g2, ((0, m_pad - M), (0, 0)))
        s2 = jnp.pad(s2, ((0, m_pad - M), (0, 0)))

    out = pl.pallas_call(
        kernel,
        out_shape=jax.ShapeDtypeStruct((m_pad, out_cols), out_dtype),
        grid=(m_pad // tm,),
        in_specs=[
            pl.BlockSpec((tm, C), lambda i: (i, 0)),
            pl.BlockSpec((tm, C), lambda i: (i, 0)),
            pl.BlockSpec((C, F), lambda i: (0, 0)),
            pl.BlockSpec((C, F), lambda i: (0, 0)),
            pl.BlockSpec((1, F), lambda i: (0, 0)),
            pl.BlockSpec((1, F), lambda i: (0, 0)),
            pl.BlockSpec((1, 1), lambda i: (0, 0)),
        ] + extra_specs,
        out_specs=pl.BlockSpec((tm, out_cols), lambda i: (i, 0)),
        compiler_params=_compiler_params(),
    )(g2, s2, wg2, wx2, c1, wp_row, c2, *extra)
    if m_pad != M:
        out = out[:M]
    return out.reshape(N, H, W, out_cols)


# ---------------------------------------------------------------------------
# Parameter init (deterministic, synthetic)
# ---------------------------------------------------------------------------
def _conv_params(key, cout, cin, kh, kw):
    k1, k2 = jax.random.split(key)
    w = jax.random.normal(k1, (cout, cin, kh, kw), jnp.float32) * 0.1
    b = jax.random.normal(k2, (cout,), jnp.float32) * 0.1
    return w, b


def _bn_params(key, c, eps=1e-5):
    k1, k2, k3, k4 = jax.random.split(key, 4)
    gamma = 1.0 + 0.1 * jax.random.normal(k1, (c,), jnp.float32)
    beta = 0.1 * jax.random.normal(k2, (c,), jnp.float32)
    mean = 0.1 * jax.random.normal(k3, (c,), jnp.float32)
    var = 1.0 + 0.1 * jnp.abs(jax.random.normal(k4, (c,), jnp.float32))
    return (gamma, beta, mean, var, eps)


def init_params(key, c_dim, channels_first, num_narrowings, use_camera_in=True):
    keys = iter(jax.random.split(key, 64))
    params = {}
    in_ch = 1 + (2 * c_dim if use_camera_in else c_dim)
    params["init_conv"] = _conv_params(next(keys), channels_first, in_ch, 3, 3)

    enc = []
    cur = channels_first
    for _ in range(num_narrowings):
        out_ch = cur * 2
        w1, b1 = _conv_params(next(keys), out_ch, cur, 3, 3)
        bn1 = _bn_params(next(keys), out_ch)
        w2, b2 = _conv_params(next(keys), out_ch, out_ch, 3, 3)
        bn2 = _bn_params(next(keys), out_ch)
        enc.append(dict(w1=w1, b1=b1, bn1=bn1, w2=w2, b2=b2, bn2=bn2))
        cur = out_ch
    params["encoder"] = enc

    dec, gates = [], []
    for _ in range(num_narrowings):
        in_c = cur
        out_c = cur // 2
        k1, k2 = jax.random.split(next(keys))
        wt = jax.random.normal(k1, (in_c, out_c, 2, 2), jnp.float32) * 0.1
        bt = jax.random.normal(k2, (out_c,), jnp.float32) * 0.1
        w1, b1 = _conv_params(next(keys), out_c, out_c, 3, 3)
        bn1 = _bn_params(next(keys), out_c)
        w2, b2 = _conv_params(next(keys), out_c, out_c, 3, 3)
        bn2 = _bn_params(next(keys), out_c)
        dec.append(dict(wt=wt, bt=bt, w1=w1, b1=b1, bn1=bn1, w2=w2, b2=b2, bn2=bn2))
        f_int = out_c // 2
        wg, bg = _conv_params(next(keys), f_int, out_c, 1, 1)
        bng = _bn_params(next(keys), f_int)
        wx, bx = _conv_params(next(keys), f_int, out_c, 1, 1)
        bnx = _bn_params(next(keys), f_int)
        wp, bp = _conv_params(next(keys), 1, f_int, 1, 1)
        bn_psi = _bn_params(next(keys), 1)
        gates.append(dict(W_g=(wg, bg, bng), W_x=(wx, bx, bnx), psi=(wp, bp, bn_psi)))
        cur = out_c
    params["decoder"] = dec
    params["gates"] = gates
    params["final_conv"] = _conv_params(next(keys), 1, channels_first, 1, 1)
    return params


# ---------------------------------------------------------------------------
# Forward pass (mirrors UNetWithAttention.forward, inference mode)
# ---------------------------------------------------------------------------
def unet_forward(params, x_nchw, c_in, c_out, use_camera_in=True):
    N, _, H, W = x_nchw.shape
    x = jnp.transpose(x_nchw, (0, 2, 3, 1))            # -> NHWC
    co = jnp.broadcast_to(c_out[:, None, None, :], (N, H, W, c_out.shape[1]))
    if use_camera_in:
        ci = jnp.broadcast_to(c_in[:, None, None, :], (N, H, W, c_in.shape[1]))
        x = jnp.concatenate([x, ci, co], axis=-1)
    else:
        x = jnp.concatenate([x, co], axis=-1)

    # input_dropout / per-block Dropout: identity in inference mode.
    # TODO(synk): training-mode dropout (random masking) not implemented.
    w, b = params["init_conv"]
    x = conv2d(x, w, b, stride=1, pad=1)                # no BN / activation

    enc_outs = []
    for blk in params["encoder"]:
        enc_outs.append(x)
        x = conv2d(x, blk["w1"], blk["b1"], stride=2, pad=1,
                   bn=blk["bn1"], act="relu")
        x = conv2d(x, blk["w2"], blk["b2"], stride=1, pad=1,
                   bn=blk["bn2"], act="relu")

    n_dec = len(params["decoder"])
    for idx, blk in enumerate(params["decoder"]):
        x = conv_transpose2x2(x, blk["wt"], blk["bt"])
        x = conv2d(x, blk["w1"], blk["b1"], stride=1, pad=1,
                   bn=blk["bn1"], act="relu")
        x = conv2d(x, blk["w2"], blk["b2"], stride=1, pad=1,
                   bn=blk["bn2"], act="relu")
        skip = enc_outs[-(idx + 1)]
        # x = x + AttentionGate(g=x, x=skip); final 1x1 conv fused on last stage
        final = params["final_conv"] if idx == n_dec - 1 else None
        x = attention_gate_combine(x, skip, params["gates"][idx],
                                   final_conv=final)

    if n_dec == 0:  # degenerate config: standalone final 1x1 conv
        wf, bf = params["final_conv"]
        x = conv2d(x, wf, bf, stride=1, pad=0, out_dtype=jnp.float32)

    Nn, Ho, Wo, _ = x.shape
    # (N, H, W, 1) -> (N, 1, H, W): pure reshape (memory order identical).
    return x.reshape(Nn, 1, Ho, Wo)


if __name__ == "__main__":
    # Small config: num_narrowings=2, c_dim=4, channels_first=8, use_camera_in=True
    c_dim, channels_first, num_narrowings = 4, 8, 2
    key = jax.random.PRNGKey(0)
    k_par, k_x, k_ci, k_co = jax.random.split(key, 4)

    params = init_params(k_par, c_dim, channels_first, num_narrowings)
    x = jax.random.normal(k_x, (2, 1, 16, 16), jnp.float32)
    c_in = jax.random.normal(k_ci, (2, c_dim), jnp.float32)
    c_out = jax.random.normal(k_co, (2, c_dim), jnp.float32)

    fwd = jax.jit(lambda p, xx, ci, co: unet_forward(p, xx, ci, co,
                                                     use_camera_in=True))
    out = fwd(params, x, c_in, c_out)
    out = jax.block_until_ready(out)
    assert out.shape == (2, 1, 16, 16), out.shape
    assert bool(jnp.all(jnp.isfinite(out)))
    print("KERNEL_OK")
</pallas_src>

<mosaic_0001>
module attributes {stable_mosaic.version = 11 : i64} {
  func.func @_fused_matmul_kernel(%arg0: i32, %arg1: memref<256x96xbf16, #tpu.memory_space<vmem>>, %arg2: memref<96x8xbf16, #tpu.memory_space<vmem>>, %arg3: memref<1x8xf32, #tpu.memory_space<vmem>>, %arg4: memref<256x8xbf16, #tpu.memory_space<vmem>>) attributes {dimension_semantics = [#tpu.dimension_semantics<parallel>], iteration_bounds = array<i64: 2>, scalar_prefetch = 0 : i64, scratch_operands = 0 : i64, tpu.core_type = #tpu.core_type<tc>, window_params = [{transform_indices = @transform_0, window_bounds = array<i64: 256, 96>}, {pipeline_mode = #tpu.pipeline_mode<synchronous>, transform_indices = @transform_1, window_bounds = array<i64: 96, 8>}, {pipeline_mode = #tpu.pipeline_mode<synchronous>, transform_indices = @transform_2, window_bounds = array<i64: 1, 8>}, {transform_indices = @transform_3, window_bounds = array<i64: 256, 8>}]} {
    %c0 = arith.constant 0 : index
    %c0_0 = arith.constant 0 : index
    %0 = vector.load %arg1[%c0, %c0_0] : memref<256x96xbf16, #tpu.memory_space<vmem>>, vector<256x96xbf16>
    %c0_1 = arith.constant 0 : index
    %c0_2 = arith.constant 0 : index
    %1 = vector.load %arg2[%c0_1, %c0_2] : memref<96x8xbf16, #tpu.memory_space<vmem>>, vector<96x8xbf16>
    %cst = arith.constant dense<0.000000e+00> : vector<256x8xf32>
    %2 = tpu.matmul %0, %1, %cst {dimension_numbers = #tpu.dot_dimension_numbers<[1], [0], [0], [1], [0, 0, 1, 1], [], []>} : vector<256x96xbf16>, vector<96x8xbf16>, vector<256x8xf32> -> vector<256x8xf32>
    %c0_3 = arith.constant 0 : index
    %c0_4 = arith.constant 0 : index
    %3 = vector.load %arg3[%c0_3, %c0_4] : memref<1x8xf32, #tpu.memory_space<vmem>>, vector<1x8xf32>
    %4 = vector.broadcast %3 : vector<1x8xf32> to vector<256x8xf32>
    %5 = arith.addf %2, %4 : vector<256x8xf32>
    %6 = arith.truncf %5 : vector<256x8xf32> to vector<256x8xbf16>
    %c0_5 = arith.constant 0 : index
    %c0_6 = arith.constant 0 : index
    %7 = vector.load %arg4[%c0_5, %c0_6] : memref<256x8xbf16, #tpu.memory_space<vmem>>, vector<256x8xbf16>
    tpu.vector_store %arg4[%c0_5, %c0_6], %6 {strides = array<i32>} : memref<256x8xbf16, #tpu.memory_space<vmem>>, vector<256x8xbf16>,
    return
  }
  func.func @transform_0(%arg0: i32) -> (i32, i32) {
    %c0_i32 = arith.constant 0 : i32
    %c0_i32_0 = arith.constant 0 : i32
    return %arg0, %c0_i32 : i32, i32
  }
  func.func @transform_1(%arg0: i32) -> (i32, i32) {
    %c0_i32 = arith.constant 0 : i32
    %c0_i32_0 = arith.constant 0 : i32
    %c0_i32_1 = arith.constant 0 : i32
    return %c0_i32, %c0_i32_0 : i32, i32
  }
  func.func @transform_2(%arg0: i32) -> (i32, i32) {
    %c0_i32 = arith.constant 0 : i32
    %c0_i32_0 = arith.constant 0 : i32
    %c0_i32_1 = arith.constant 0 : i32
    return %c0_i32, %c0_i32_0 : i32, i32
  }
  func.func @transform_3(%arg0: i32) -> (i32, i32) {
    %c0_i32 = arith.constant 0 : i32
    %c0_i32_0 = arith.constant 0 : i32
    return %arg0, %c0_i32 : i32, i32
  }
}

module attributes {stable_mosaic.version = 11 : i64} {
  func.func @_fused_matmul_kernel(%arg0: i32, %arg1: memref<64x80xbf16, #tpu.memory_space<vmem>>, %arg2: memref<80x16xbf16, #tpu.memory_space<vmem>>, %arg3: memref<1x16xf32, #tpu.memory_space<vmem>>, %arg4: memref<64x16xbf16, #tpu.memory_space<vmem>>) attributes {dimension_semantics = [#tpu.dimension_semantics<parallel>], iteration_bounds = array<i64: 2>, scalar_prefetch = 0 : i64, scratch_operands = 0 : i64, tpu.core_type = #tpu.core_type<tc>, window_params = [{transform_indices = @transform_0, window_bounds = array<i64: 64, 80>}, {pipeline_mode = #tpu.pipeline_mode<synchronous>, transform_indices = @transform_1, window_bounds = array<i64: 80, 16>}, {pipeline_mode = #tpu.pipeline_mode<synchronous>, transform_indices = @transform_2, window_bounds = array<i64: 1, 16>}, {transform_indices = @transform_3, window_bounds = array<i64: 64, 16>}]} {
    %c0 = arith.constant 0 : index
    %c0_0 = arith.constant 0 : index
    %0 = vector.load %arg1[%c0, %c0_0] : memref<64x80xbf16, #tpu.memory_space<vmem>>, vector<64x80xbf16>
    %c0_1 = arith.constant 0 : index
    %c0_2 = arith.constant 0 : index
    %1 = vector.load %arg2[%c0_1, %c0_2] : memref<80x16xbf16, #tpu.memory_space<vmem>>, vector<80x16xbf16>
    %cst = arith.constant dense<0.000000e+00> : vector<64x16xf32>
    %2 = tpu.matmul %0, %1, %cst {dimension_numbers = #tpu.dot_dimension_numbers<[1], [0], [0], [1], [0, 0, 1, 1], [], []>} : vector<64x80xbf16>, vector<80x16xbf16>, vector<64x16xf32> -> vector<64x16xf32>
    %c0_3 = arith.constant 0 : index
    %c0_4 = arith.constant 0 : index
    %3 = vector.load %arg3[%c0_3, %c0_4] : memref<1x16xf32, #tpu.memory_space<vmem>>, vector<1x16xf32>
    %4 = vector.broadcast %3 : vector<1x16xf32> to vector<64x16xf32>
    %5 = arith.addf %2, %4 : vector<64x16xf32>
    %cst_5 = arith.constant 0.000000e+00 : f32
    %6 = vector.broadcast %cst_5 : f32 to vector<64x16xf32>
    %7 = arith.maximumf %5, %6 : vector<64x16xf32>
    %8 = arith.truncf %7 : vector<64x16xf32> to vector<64x16xbf16>
    %c0_6 = arith.constant 0 : index
    %c0_7 = arith.constant 0 : index
    %9 = vector.load %arg4[%c0_6, %c0_7] : memref<64x16xbf16, #tpu.memory_space<vmem>>, vector<64x16xbf16>
    tpu.vector_store %arg4[%c0_6, %c0_7], %8 {strides = array<i32>} : memref<64x16xbf16, #tpu.memory_space<vmem>>, vector<64x16xbf16>,
    return
  }
  func.func @transform_0(%arg0: i32) -> (i32, i32) {
    %c0_i32 = arith.constant 0 : i32
    %c0_i32_0 = arith.constant 0 : i32
    return %arg0, %c0_i32 : i32, i32
  }
  func.func @transform_1(%arg0: i32) -> (i32, i32) {
    %c0_i32 = arith.constant 0 : i32
    %c0_i32_0 = arith.constant 0 : i32
    %c0_i32_1 = arith.constant 0 : i32
    return %c0_i32, %c0_i32_0 : i32, i32
  }
  func.func @transform_2(%arg0: i32) -> (i32, i32) {
    %c0_i32 = arith.constant 0 : i32
    %c0_i32_0 = arith.constant 0 : i32
    %c0_i32_1 = arith.constant 0 : i32
    return %c0_i32, %c0_i32_0 : i32, i32
  }
  func.func @transform_3(%arg0: i32) -> (i32, i32) {
    %c0_i32 = arith.constant 0 : i32
    %c0_i32_0 = arith.constant 0 : i32
    return %arg0, %c0_i32 : i32, i32
  }
}

module attributes {stable_mosaic.version = 11 : i64} {
  func.func @_fused_matmul_kernel(%arg0: i32, %arg1: memref<64x144xbf16, #tpu.memory_space<vmem>>, %arg2: memref<144x16xbf16, #tpu.memory_space<vmem>>, %arg3: memref<1x16xf32, #tpu.memory_space<vmem>>, %arg4: memref<64x16xbf16, #tpu.memory_space<vmem>>) attributes {dimension_semantics = [#tpu.dimension_semantics<parallel>], iteration_bounds = array<i64: 2>, scalar_prefetch = 0 : i64, scratch_operands = 0 : i64, tpu.core_type = #tpu.core_type<tc>, window_params = [{transform_indices = @transform_0, window_bounds = array<i64: 64, 144>}, {pipeline_mode = #tpu.pipeline_mode<synchronous>, transform_indices = @transform_1, window_bounds = array<i64: 144, 16>}, {pipeline_mode = #tpu.pipeline_mode<synchronous>, transform_indices = @transform_2, window_bounds = array<i64: 1, 16>}, {transform_indices = @transform_3, window_bounds = array<i64: 64, 16>}]} {
    %c0 = arith.constant 0 : index
    %c0_0 = arith.constant 0 : index
    %0 = vector.load %arg1[%c0, %c0_0] : memref<64x144xbf16, #tpu.memory_space<vmem>>, vector<64x144xbf16>
    %c0_1 = arith.constant 0 : index
    %c0_2 = arith.constant 0 : index
    %1 = vector.load %arg2[%c0_1, %c0_2] : memref<144x16xbf16, #tpu.memory_space<vmem>>, vector<144x16xbf16>
    %cst = arith.constant dense<0.000000e+00> : vector<64x16xf32>
    %2 = tpu.matmul %0, %1, %cst {dimension_numbers = #tpu.dot_dimension_numbers<[1], [0], [0], [1], [0, 0, 1, 1], [], []>} : vector<64x144xbf16>, vector<144x16xbf16>, vector<64x16xf32> -> vector<64x16xf32>
    %c0_3 = arith.constant 0 : index
    %c0_4 = arith.constant 0 : index
    %3 = vector.load %arg3[%c0_3, %c0_4] : memref<1x16xf32, #tpu.memory_space<vmem>>, vector<1x16xf32>
    %4 = vector.broadcast %3 : vector<1x16xf32> to vector<64x16xf32>
    %5 = arith.addf %2, %4 : vector<64x16xf32>
    %cst_5 = arith.constant 0.000000e+00 : f32
    %6 = vector.broadcast %cst_5 : f32 to vector<64x16xf32>
    %7 = arith.maximumf %5, %6 : vector<64x16xf32>
    %8 = arith.truncf %7 : vector<64x16xf32> to vector<64x16xbf16>
    %c0_6 = arith.constant 0 : index
    %c0_7 = arith.constant 0 : index
    %9 = vector.load %arg4[%c0_6, %c0_7] : memref<64x16xbf16, #tpu.memory_space<vmem>>, vector<64x16xbf16>
    tpu.vector_store %arg4[%c0_6, %c0_7], %8 {strides = array<i32>} : memref<64x16xbf16, #tpu.memory_space<vmem>>, vector<64x16xbf16>,
    return
  }
  func.func @transform_0(%arg0: i32) -> (i32, i32) {
    %c0_i32 = arith.constant 0 : i32
    %c0_i32_0 = arith.constant 0 : i32
    return %arg0, %c0_i32 : i32, i32
  }
  func.func @transform_1(%arg0: i32) -> (i32, i32) {
    %c0_i32 = arith.constant 0 : i32
    %c0_i32_0 = arith.constant 0 : i32
    %c0_i32_1 = arith.constant 0 : i32
    return %c0_i32, %c0_i32_0 : i32, i32
  }
  func.func @transform_2(%arg0: i32) -> (i32, i32) {
    %c0_i32 = arith.constant 0 : i32
    %c0_i32_0 = arith.constant 0 : i32
    %c0_i32_1 = arith.constant 0 : i32
    return %c0_i32, %c0_i32_0 : i32, i32
  }
  func.func @transform_3(%arg0: i32) -> (i32, i32) {
    %c0_i32 = arith.constant 0 : i32
    %c0_i32_0 = arith.constant 0 : i32
    return %arg0, %c0_i32 : i32, i32
  }
}

module attributes {stable_mosaic.version = 11 : i64} {
  func.func @_fused_matmul_kernel(%arg0: i32, %arg1: memref<16x144xbf16, #tpu.memory_space<vmem>>, %arg2: memref<144x32xbf16, #tpu.memory_space<vmem>>, %arg3: memref<1x32xf32, #tpu.memory_space<vmem>>, %arg4: memref<16x32xbf16, #tpu.memory_space<vmem>>) attributes {dimension_semantics = [#tpu.dimension_semantics<parallel>], iteration_bounds = array<i64: 2>, scalar_prefetch = 0 : i64, scratch_operands = 0 : i64, tpu.core_type = #tpu.core_type<tc>, window_params = [{transform_indices = @transform_0, window_bounds = array<i64: 16, 144>}, {pipeline_mode = #tpu.pipeline_mode<synchronous>, transform_indices = @transform_1, window_bounds = array<i64: 144, 32>}, {pipeline_mode = #tpu.pipeline_mode<synchronous>, transform_indices = @transform_2, window_bounds = array<i64: 1, 32>}, {transform_indices = @transform_3, window_bounds = array<i64: 16, 32>}]} {
    %c0 = arith.constant 0 : index
    %c0_0 = arith.constant 0 : index
    %0 = vector.load %arg1[%c0, %c0_0] : memref<16x144xbf16, #tpu.memory_space<vmem>>, vector<16x144xbf16>
    %c0_1 = arith.constant 0 : index
    %c0_2 = arith.constant 0 : index
    %1 = vector.load %arg2[%c0_1, %c0_2] : memref<144x32xbf16, #tpu.memory_space<vmem>>, vector<144x32xbf16>
    %cst = arith.constant dense<0.000000e+00> : vector<16x32xf32>
    %2 = tpu.matmul %0, %1, %cst {dimension_numbers = #tpu.dot_dimension_numbers<[1], [0], [0], [1], [0, 0, 1, 1], [], []>} : vector<16x144xbf16>, vector<144x32xbf16>, vector<16x32xf32> -> vector<16x32xf32>
    %c0_3 = arith.constant 0 : index
    %c0_4 = arith.constant 0 : index
    %3 = vector.load %arg3[%c0_3, %c0_4] : memref<1x32xf32, #tpu.memory_space<vmem>>, vector<1x32xf32>
    %4 = vector.broadcast %3 : vector<1x32xf32> to vector<16x32xf32>
    %5 = arith.addf %2, %4 : vector<16x32xf32>
    %cst_5 = arith.constant 0.000000e+00 : f32
    %6 = vector.broadcast %cst_5 : f32 to vector<16x32xf32>
    %7 = arith.maximumf %5, %6 : vector<16x32xf32>
    %8 = arith.truncf %7 : vector<16x32xf32> to vector<16x32xbf16>
    %c0_6 = arith.constant 0 : index
    %c0_7 = arith.constant 0 : index
    %9 = vector.load %arg4[%c0_6, %c0_7] : memref<16x32xbf16, #tpu.memory_space<vmem>>, vector<16x32xbf16>
    tpu.vector_store %arg4[%c0_6, %c0_7], %8 {strides = array<i32>} : memref<16x32xbf16, #tpu.memory_space<vmem>>, vector<16x32xbf16>,
    return
  }
  func.func @transform_0(%arg0: i32) -> (i32, i32) {
    %c0_i32 = arith.constant 0 : i32
    %c0_i32_0 = arith.constant 0 : i32
    return %arg0, %c0_i32 : i32, i32
  }
  func.func @transform_1(%arg0: i32) -> (i32, i32) {
    %c0_i32 = arith.constant 0 : i32
    %c0_i32_0 = arith.constant 0 : i32
    %c0_i32_1 = arith.constant 0 : i32
    return %c0_i32, %c0_i32_0 : i32, i32
  }
  func.func @transform_2(%arg0: i32) -> (i32, i32) {
    %c0_i32 = arith.constant 0 : i32
    %c0_i32_0 = arith.constant 0 : i32
    %c0_i32_1 = arith.constant 0 : i32
    return %c0_i32, %c0_i32_0 : i32, i32
  }
  func.func @transform_3(%arg0: i32) -> (i32, i32) {
    %c0_i32 = arith.constant 0 : i32
    %c0_i32_0 = arith.constant 0 : i32
    return %arg0, %c0_i32 : i32, i32
  }
}

module attributes {stable_mosaic.version = 11 : i64} {
  func.func @_fused_matmul_kernel(%arg0: i32, %arg1: memref<16x288xbf16, #tpu.memory_space<vmem>>, %arg2: memref<288x32xbf16, #tpu.memory_space<vmem>>, %arg3: memref<1x32xf32, #tpu.memory_space<vmem>>, %arg4: memref<16x32xbf16, #tpu.memory_space<vmem>>) attributes {dimension_semantics = [#tpu.dimension_semantics<parallel>], iteration_bounds = array<i64: 2>, scalar_prefetch = 0 : i64, scratch_operands = 0 : i64, tpu.core_type = #tpu.core_type<tc>, window_params = [{transform_indices = @transform_0, window_bounds = array<i64: 16, 288>}, {pipeline_mode = #tpu.pipeline_mode<synchronous>, transform_indices = @transform_1, window_bounds = array<i64: 288, 32>}, {pipeline_mode = #tpu.pipeline_mode<synchronous>, transform_indices = @transform_2, window_bounds = array<i64: 1, 32>}, {transform_indices = @transform_3, window_bounds = array<i64: 16, 32>}]} {
    %c0 = arith.constant 0 : index
    %c0_0 = arith.constant 0 : index
    %0 = vector.load %arg1[%c0, %c0_0] : memref<16x288xbf16, #tpu.memory_space<vmem>>, vector<16x288xbf16>
    %c0_1 = arith.constant 0 : index
    %c0_2 = arith.constant 0 : index
    %1 = vector.load %arg2[%c0_1, %c0_2] : memref<288x32xbf16, #tpu.memory_space<vmem>>, vector<288x32xbf16>
    %cst = arith.constant dense<0.000000e+00> : vector<16x32xf32>
    %2 = tpu.matmul %0, %1, %cst {dimension_numbers = #tpu.dot_dimension_numbers<[1], [0], [0], [1], [0, 0, 1, 1], [], []>} : vector<16x288xbf16>, vector<288x32xbf16>, vector<16x32xf32> -> vector<16x32xf32>
    %c0_3 = arith.constant 0 : index
    %c0_4 = arith.constant 0 : index
    %3 = vector.load %arg3[%c0_3, %c0_4] : memref<1x32xf32, #tpu.memory_space<vmem>>, vector<1x32xf32>
    %4 = vector.broadcast %3 : vector<1x32xf32> to vector<16x32xf32>
    %5 = arith.addf %2, %4 : vector<16x32xf32>
    %cst_5 = arith.constant 0.000000e+00 : f32
    %6 = vector.broadcast %cst_5 : f32 to vector<16x32xf32>
    %7 = arith.maximumf %5, %6 : vector<16x32xf32>
    %8 = arith.truncf %7 : vector<16x32xf32> to vector<16x32xbf16>
    %c0_6 = arith.constant 0 : index
    %c0_7 = arith.constant 0 : index
    %9 = vector.load %arg4[%c0_6, %c0_7] : memref<16x32xbf16, #tpu.memory_space<vmem>>, vector<16x32xbf16>
    tpu.vector_store %arg4[%c0_6, %c0_7], %8 {strides = array<i32>} : memref<16x32xbf16, #tpu.memory_space<vmem>>, vector<16x32xbf16>,
    return
  }
  func.func @transform_0(%arg0: i32) -> (i32, i32) {
    %c0_i32 = arith.constant 0 : i32
    %c0_i32_0 = arith.constant 0 : i32
    return %arg0, %c0_i32 : i32, i32
  }
  func.func @transform_1(%arg0: i32) -> (i32, i32) {
    %c0_i32 = arith.constant 0 : i32
    %c0_i32_0 = arith.constant 0 : i32
    %c0_i32_1 = arith.constant 0 : i32
    return %c0_i32, %c0_i32_0 : i32, i32
  }
  func.func @transform_2(%arg0: i32) -> (i32, i32) {
    %c0_i32 = arith.constant 0 : i32
    %c0_i32_0 = arith.constant 0 : i32
    %c0_i32_1 = arith.constant 0 : i32
    return %c0_i32, %c0_i32_0 : i32, i32
  }
  func.func @transform_3(%arg0: i32) -> (i32, i32) {
    %c0_i32 = arith.constant 0 : i32
    %c0_i32_0 = arith.constant 0 : i32
    return %arg0, %c0_i32 : i32, i32
  }
}

module attributes {stable_mosaic.version = 11 : i64} {
  func.func @_fused_matmul_kernel(%arg0: i32, %arg1: memref<16x32xbf16, #tpu.memory_space<vmem>>, %arg2: memref<32x64xbf16, #tpu.memory_space<vmem>>, %arg3: memref<1x64xf32, #tpu.memory_space<vmem>>, %arg4: memref<16x64xbf16, #tpu.memory_space<vmem>>) attributes {dimension_semantics = [#tpu.dimension_semantics<parallel>], iteration_bounds = array<i64: 2>, scalar_prefetch = 0 : i64, scratch_operands = 0 : i64, tpu.core_type = #tpu.core_type<tc>, window_params = [{transform_indices = @transform_0, window_bounds = array<i64: 16, 32>}, {pipeline_mode = #tpu.pipeline_mode<synchronous>, transform_indices = @transform_1, window_bounds = array<i64: 32, 64>}, {pipeline_mode = #tpu.pipeline_mode<synchronous>, transform_indices = @transform_2, window_bounds = array<i64: 1, 64>}, {transform_indices = @transform_3, window_bounds = array<i64: 16, 64>}]} {
    %c0 = arith.constant 0 : index
    %c0_0 = arith.constant 0 : index
    %0 = vector.load %arg1[%c0, %c0_0] : memref<16x32xbf16, #tpu.memory_space<vmem>>, vector<16x32xbf16>
    %c0_1 = arith.constant 0 : index
    %c0_2 = arith.constant 0 : index
    %1 = vector.load %arg2[%c0_1, %c0_2] : memref<32x64xbf16, #tpu.memory_space<vmem>>, vector<32x64xbf16>
    %cst = arith.constant dense<0.000000e+00> : vector<16x64xf32>
    %2 = tpu.matmul %0, %1, %cst {dimension_numbers = #tpu.dot_dimension_numbers<[1], [0], [0], [1], [0, 0, 1, 1], [], []>} : vector<16x32xbf16>, vector<32x64xbf16>, vector<16x64xf32> -> vector<16x64xf32>
    %c0_3 = arith.constant 0 : index
    %c0_4 = arith.constant 0 : index
    %3 = vector.load %arg3[%c0_3, %c0_4] : memref<1x64xf32, #tpu.memory_space<vmem>>, vector<1x64xf32>
    %4 = vector.broadcast %3 : vector<1x64xf32> to vector<16x64xf32>
    %5 = arith.addf %2, %4 : vector<16x64xf32>
    %6 = arith.truncf %5 : vector<16x64xf32> to vector<16x64xbf16>
    %c0_5 = arith.constant 0 : index
    %c0_6 = arith.constant 0 : index
    %7 = vector.load %arg4[%c0_5, %c0_6] : memref<16x64xbf16, #tpu.memory_space<vmem>>, vector<16x64xbf16>
    tpu.vector_store %arg4[%c0_5, %c0_6], %6 {strides = array<i32>} : memref<16x64xbf16, #tpu.memory_space<vmem>>, vector<16x64xbf16>,
    return
  }
  func.func @transform_0(%arg0: i32) -> (i32, i32) {
    %c0_i32 = arith.constant 0 : i32
    %c0_i32_0 = arith.constant 0 : i32
    return %arg0, %c0_i32 : i32, i32
  }
  func.func @transform_1(%arg0: i32) -> (i32, i32) {
    %c0_i32 = arith.constant 0 : i32
    %c0_i32_0 = arith.constant 0 : i32
    %c0_i32_1 = arith.constant 0 : i32
    return %c0_i32, %c0_i32_0 : i32, i32
  }
  func.func @transform_2(%arg0: i32) -> (i32, i32) {
    %c0_i32 = arith.constant 0 : i32
    %c0_i32_0 = arith.constant 0 : i32
    %c0_i32_1 = arith.constant 0 : i32
    return %c0_i32, %c0_i32_0 : i32, i32
  }
  func.func @transform_3(%arg0: i32) -> (i32, i32) {
    %c0_i32 = arith.constant 0 : i32
    %c0_i32_0 = arith.constant 0 : i32
    return %arg0, %c0_i32 : i32, i32
  }
}

module attributes {stable_mosaic.version = 11 : i64} {
  func.func @_gate_kernel(%arg0: i32, %arg1: memref<64x16xbf16, #tpu.memory_space<vmem>>, %arg2: memref<64x16xbf16, #tpu.memory_space<vmem>>, %arg3: memref<16x8xbf16, #tpu.memory_space<vmem>>, %arg4: memref<16x8xbf16, #tpu.memory_space<vmem>>, %arg5: memref<1x8xf32, #tpu.memory_space<vmem>>, %arg6: memref<1x8xf32, #tpu.memory_space<vmem>>, %arg7: memref<1x1xf32, #tpu.memory_space<vmem>>, %arg8: memref<64x16xbf16, #tpu.memory_space<vmem>>) attributes {dimension_semantics = [#tpu.dimension_semantics<parallel>], iteration_bounds = array<i64: 2>, scalar_prefetch = 0 : i64, scratch_operands = 0 : i64, tpu.core_type = #tpu.core_type<tc>, window_params = [{transform_indices = @transform_0, window_bounds = array<i64: 64, 16>}, {transform_indices = @transform_1, window_bounds = array<i64: 64, 16>}, {pipeline_mode = #tpu.pipeline_mode<synchronous>, transform_indices = @transform_2, window_bounds = array<i64: 16, 8>}, {pipeline_mode = #tpu.pipeline_mode<synchronous>, transform_indices = @transform_3, window_bounds = array<i64: 16, 8>}, {pipeline_mode = #tpu.pipeline_mode<synchronous>, transform_indices = @transform_4, window_bounds = array<i64: 1, 8>}, {pipeline_mode = #tpu.pipeline_mode<synchronous>, transform_indices = @transform_5, window_bounds = array<i64: 1, 8>}, {pipeline_mode = #tpu.pipeline_mode<synchronous>, transform_indices = @transform_6, window_bounds = array<i64: 1, 1>}, {transform_indices = @transform_7, window_bounds = array<i64: 64, 16>}]} {
    %c0 = arith.constant 0 : index
    %c0_0 = arith.constant 0 : index
    %0 = vector.load %arg1[%c0, %c0_0] : memref<64x16xbf16, #tpu.memory_space<vmem>>, vector<64x16xbf16>
    %c0_1 = arith.constant 0 : index
    %c0_2 = arith.constant 0 : index
    %1 = vector.load %arg2[%c0_1, %c0_2] : memref<64x16xbf16, #tpu.memory_space<vmem>>, vector<64x16xbf16>
    %c0_3 = arith.constant 0 : index
    %c0_4 = arith.constant 0 : index
    %2 = vector.load %arg3[%c0_3, %c0_4] : memref<16x8xbf16, #tpu.memory_space<vmem>>, vector<16x8xbf16>
    %cst = arith.constant dense<0.000000e+00> : vector<64x8xf32>
    %3 = tpu.matmul %0, %2, %cst {dimension_numbers = #tpu.dot_dimension_numbers<[1], [0], [0], [1], [0, 0, 1, 1], [], []>} : vector<64x16xbf16>, vector<16x8xbf16>, vector<64x8xf32> -> vector<64x8xf32>
    %c0_5 = arith.constant 0 : index
    %c0_6 = arith.constant 0 : index
    %4 = vector.load %arg4[%c0_5, %c0_6] : memref<16x8xbf16, #tpu.memory_space<vmem>>, vector<16x8xbf16>
    %cst_7 = arith.constant dense<0.000000e+00> : vector<64x8xf32>
    %5 = tpu.matmul %1, %4, %cst_7 {dimension_numbers = #tpu.dot_dimension_numbers<[1], [0], [0], [1], [0, 0, 1, 1], [], []>} : vector<64x16xbf16>, vector<16x8xbf16>, vector<64x8xf32> -> vector<64x8xf32>
    %6 = arith.addf %3, %5 : vector<64x8xf32>
    %c0_8 = arith.constant 0 : index
    %c0_9 = arith.constant 0 : index
    %7 = vector.load %arg5[%c0_8, %c0_9] : memref<1x8xf32, #tpu.memory_space<vmem>>, vector<1x8xf32>
    %8 = vector.broadcast %7 : vector<1x8xf32> to vector<64x8xf32>
    %9 = arith.addf %6, %8 : vector<64x8xf32>
    %cst_10 = arith.constant 0.000000e+00 : f32
    %10 = vector.broadcast %cst_10 : f32 to vector<64x8xf32>
    %11 = arith.maximumf %9, %10 : vector<64x8xf32>
    %c0_11 = arith.constant 0 : index
    %c0_12 = arith.constant 0 : index
    %12 = vector.load %arg6[%c0_11, %c0_12] : memref<1x8xf32, #tpu.memory_space<vmem>>, vector<1x8xf32>
    %13 = vector.broadcast %12 : vector<1x8xf32> to vector<64x8xf32>
    %14 = arith.mulf %11, %13 : vector<64x8xf32>
    %cst_13 = arith.constant dense<0.000000e+00> : vector<64xf32>
    %15 = vector.multi_reduction <add>, %14, %cst_13 [1] : vector<64x8xf32> to vector<64xf32>
    %16 = vector.shape_cast %15 : vector<64xf32> to vector<64x1xf32>
    %c0_14 = arith.constant 0 : index
    %c0_15 = arith.constant 0 : index
    %17 = vector.load %arg7[%c0_14, %c0_15] : memref<1x1xf32, #tpu.memory_space<vmem>>, vector<1x1xf32>
    %18 = vector.broadcast %17 : vector<1x1xf32> to vector<64x1xf32>
    %19 = arith.addf %16, %18 : vector<64x1xf32>
    %20 = arith.negf %19 : vector<64x1xf32>
    %21 = math.exp %20 : vector<64x1xf32>
    %cst_16 = arith.constant 1.000000e+00 : f32
    %22 = vector.broadcast %cst_16 : f32 to vector<64x1xf32>
    %23 = arith.addf %22, %21 : vector<64x1xf32>
    %24 = arith.divf %22, %23 : vector<64x1xf32>
    %25 = arith.extf %0 : vector<64x16xbf16> to vector<64x16xf32>
    %26 = arith.extf %1 : vector<64x16xbf16> to vector<64x16xf32>
    %27 = vector.broadcast %24 : vector<64x1xf32> to vector<64x16xf32>
    %28 = arith.mulf %26, %27 : vector<64x16xf32>
    %29 = arith.addf %25, %28 : vector<64x16xf32>
    %30 = arith.truncf %29 : vector<64x16xf32> to vector<64x16xbf16>
    %c0_17 = arith.constant 0 : index
    %c0_18 = arith.constant 0 : index
    %31 = vector.load %arg8[%c0_17, %c0_18] : memref<64x16xbf16, #tpu.memory_space<vmem>>, vector<64x16xbf16>
    tpu.vector_store %arg8[%c0_17, %c0_18], %30 {strides = array<i32>} : memref<64x16xbf16, #tpu.memory_space<vmem>>, vector<64x16xbf16>,
    return
  }
  func.func @transform_0(%arg0: i32) -> (i32, i32) {
    %c0_i32 = arith.constant 0 : i32
    %c0_i32_0 = arith.constant 0 : i32
    return %arg0, %c0_i32 : i32, i32
  }
  func.func @transform_1(%arg0: i32) -> (i32, i32) {
    %c0_i32 = arith.constant 0 : i32
    %c0_i32_0 = arith.constant 0 : i32
    return %arg0, %c0_i32 : i32, i32
  }
  func.func @transform_2(%arg0: i32) -> (i32, i32) {
    %c0_i32 = arith.constant 0 : i32
    %c0_i32_0 = arith.constant 0 : i32
    %c0_i32_1 = arith.constant 0 : i32
    return %c0_i32, %c0_i32_0 : i32, i32
  }
  func.func @transform_3(%arg0: i32) -> (i32, i32) {
    %c0_i32 = arith.constant 0 : i32
    %c0_i32_0 = arith.constant 0 : i32
    %c0_i32_1 = arith.constant 0 : i32
    return %c0_i32, %c0_i32_0 : i32, i32
  }
  func.func @transform_4(%arg0: i32) -> (i32, i32) {
    %c0_i32 = arith.constant 0 : i32
    %c0_i32_0 = arith.constant 0 : i32
    %c0_i32_1 = arith.constant 0 : i32
    return %c0_i32, %c0_i32_0 : i32, i32
  }
  func.func @transform_5(%arg0: i32) -> (i32, i32) {
    %c0_i32 = arith.constant 0 : i32
    %c0_i32_0 = arith.constant 0 : i32
    %c0_i32_1 = arith.constant 0 : i32
    return %c0_i32, %c0_i32_0 : i32, i32
  }
  func.func @transform_6(%arg0: i32) -> (i32, i32) {
    %c0_i32 = arith.constant 0 : i32
    %c0_i32_0 = arith.constant 0 : i32
    %c0_i32_1 = arith.constant 0 : i32
    return %c0_i32, %c0_i32_0 : i32, i32
  }
  func.func @transform_7(%arg0: i32) -> (i32, i32) {
    %c0_i32 = arith.constant 0 : i32
    %c0_i32_0 = arith.constant 0 : i32
    return %arg0, %c0_i32 : i32, i32
  }
}

module attributes {stable_mosaic.version = 11 : i64} {
  func.func @_fused_matmul_kernel(%arg0: i32, %arg1: memref<64x16xbf16, #tpu.memory_space<vmem>>, %arg2: memref<16x32xbf16, #tpu.memory_space<vmem>>, %arg3: memref<1x32xf32, #tpu.memory_space<vmem>>, %arg4: memref<64x32xbf16, #tpu.memory_space<vmem>>) attributes {dimension_semantics = [#tpu.dimension_semantics<parallel>], iteration_bounds = array<i64: 2>, scalar_prefetch = 0 : i64, scratch_operands = 0 : i64, tpu.core_type = #tpu.core_type<tc>, window_params = [{transform_indices = @transform_0, window_bounds = array<i64: 64, 16>}, {pipeline_mode = #tpu.pipeline_mode<synchronous>, transform_indices = @transform_1, window_bounds = array<i64: 16, 32>}, {pipeline_mode = #tpu.pipeline_mode<synchronous>, transform_indices = @transform_2, window_bounds = array<i64: 1, 32>}, {transform_indices = @transform_3, window_bounds = array<i64: 64, 32>}]} {
    %c0 = arith.constant 0 : index
    %c0_0 = arith.constant 0 : index
    %0 = vector.load %arg1[%c0, %c0_0] : memref<64x16xbf16, #tpu.memory_space<vmem>>, vector<64x16xbf16>
    %c0_1 = arith.constant 0 : index
    %c0_2 = arith.constant 0 : index
    %1 = vector.load %arg2[%c0_1, %c0_2] : memref<16x32xbf16, #tpu.memory_space<vmem>>, vector<16x32xbf16>
    %cst = arith.constant dense<0.000000e+00> : vector<64x32xf32>
    %2 = tpu.matmul %0, %1, %cst {dimension_numbers = #tpu.dot_dimension_numbers<[1], [0], [0], [1], [0, 0, 1, 1], [], []>} : vector<64x16xbf16>, vector<16x32xbf16>, vector<64x32xf32> -> vector<64x32xf32>
    %c0_3 = arith.constant 0 : index
    %c0_4 = arith.constant 0 : index
    %3 = vector.load %arg3[%c0_3, %c0_4] : memref<1x32xf32, #tpu.memory_space<vmem>>, vector<1x32xf32>
    %4 = vector.broadcast %3 : vector<1x32xf32> to vector<64x32xf32>
    %5 = arith.addf %2, %4 : vector<64x32xf32>
    %6 = arith.truncf %5 : vector<64x32xf32> to vector<64x32xbf16>
    %c0_5 = arith.constant 0 : index
    %c0_6 = arith.constant 0 : index
    %7 = vector.load %arg4[%c0_5, %c0_6] : memref<64x32xbf16, #tpu.memory_space<vmem>>, vector<64x32xbf16>
    tpu.vector_store %arg4[%c0_5, %c0_6], %6 {strides = array<i32>} : memref<64x32xbf16, #tpu.memory_space<vmem>>, vector<64x32xbf16>,
    return
  }
  func.func @transform_0(%arg0: i32) -> (i32, i32) {
    %c0_i32 = arith.constant 0 : i32
    %c0_i32_0 = arith.constant 0 : i32
    return %arg0, %c0_i32 : i32, i32
  }
  func.func @transform_1(%arg0: i32) -> (i32, i32) {
    %c0_i32 = arith.constant 0 : i32
    %c0_i32_0 = arith.constant 0 : i32
    %c0_i32_1 = arith.constant 0 : i32
    return %c0_i32, %c0_i32_0 : i32, i32
  }
  func.func @transform_2(%arg0: i32) -> (i32, i32) {
    %c0_i32 = arith.constant 0 : i32
    %c0_i32_0 = arith.constant 0 : i32
    %c0_i32_1 = arith.constant 0 : i32
    return %c0_i32, %c0_i32_0 : i32, i32
  }
  func.func @transform_3(%arg0: i32) -> (i32, i32) {
    %c0_i32 = arith.constant 0 : i32
    %c0_i32_0 = arith.constant 0 : i32
    return %arg0, %c0_i32 : i32, i32
  }
}

module attributes {stable_mosaic.version = 11 : i64} {
  func.func @_fused_matmul_kernel(%arg0: i32, %arg1: memref<256x80xbf16, #tpu.memory_space<vmem>>, %arg2: memref<80x8xbf16, #tpu.memory_space<vmem>>, %arg3: memref<1x8xf32, #tpu.memory_space<vmem>>, %arg4: memref<256x8xbf16, #tpu.memory_space<vmem>>) attributes {dimension_semantics = [#tpu.dimension_semantics<parallel>], iteration_bounds = array<i64: 2>, scalar_prefetch = 0 : i64, scratch_operands = 0 : i64, tpu.core_type = #tpu.core_type<tc>, window_params = [{transform_indices = @transform_0, window_bounds = array<i64: 256, 80>}, {pipeline_mode = #tpu.pipeline_mode<synchronous>, transform_indices = @transform_1, window_bounds = array<i64: 80, 8>}, {pipeline_mode = #tpu.pipeline_mode<synchronous>, transform_indices = @transform_2, window_bounds = array<i64: 1, 8>}, {transform_indices = @transform_3, window_bounds = array<i64: 256, 8>}]} {
    %c0 = arith.constant 0 : index
    %c0_0 = arith.constant 0 : index
    %0 = vector.load %arg1[%c0, %c0_0] : memref<256x80xbf16, #tpu.memory_space<vmem>>, vector<256x80xbf16>
    %c0_1 = arith.constant 0 : index
    %c0_2 = arith.constant 0 : index
    %1 = vector.load %arg2[%c0_1, %c0_2] : memref<80x8xbf16, #tpu.memory_space<vmem>>, vector<80x8xbf16>
    %cst = arith.constant dense<0.000000e+00> : vector<256x8xf32>
    %2 = tpu.matmul %0, %1, %cst {dimension_numbers = #tpu.dot_dimension_numbers<[1], [0], [0], [1], [0, 0, 1, 1], [], []>} : vector<256x80xbf16>, vector<80x8xbf16>, vector<256x8xf32> -> vector<256x8xf32>
    %c0_3 = arith.constant 0 : index
    %c0_4 = arith.constant 0 : index
    %3 = vector.load %arg3[%c0_3, %c0_4] : memref<1x8xf32, #tpu.memory_space<vmem>>, vector<1x8xf32>
    %4 = vector.broadcast %3 : vector<1x8xf32> to vector<256x8xf32>
    %5 = arith.addf %2, %4 : vector<256x8xf32>
    %cst_5 = arith.constant 0.000000e+00 : f32
    %6 = vector.broadcast %cst_5 : f32 to vector<256x8xf32>
    %7 = arith.maximumf %5, %6 : vector<256x8xf32>
    %8 = arith.truncf %7 : vector<256x8xf32> to vector<256x8xbf16>
    %c0_6 = arith.constant 0 : index
    %c0_7 = arith.constant 0 : index
    %9 = vector.load %arg4[%c0_6, %c0_7] : memref<256x8xbf16, #tpu.memory_space<vmem>>, vector<256x8xbf16>
    tpu.vector_store %arg4[%c0_6, %c0_7], %8 {strides = array<i32>} : memref<256x8xbf16, #tpu.memory_space<vmem>>, vector<256x8xbf16>,
    return
  }
  func.func @transform_0(%arg0: i32) -> (i32, i32) {
    %c0_i32 = arith.constant 0 : i32
    %c0_i32_0 = arith.constant 0 : i32
    return %arg0, %c0_i32 : i32, i32
  }
  func.func @transform_1(%arg0: i32) -> (i32, i32) {
    %c0_i32 = arith.constant 0 : i32
    %c0_i32_0 = arith.constant 0 : i32
    %c0_i32_1 = arith.constant 0 : i32
    return %c0_i32, %c0_i32_0 : i32, i32
  }
  func.func @transform_2(%arg0: i32) -> (i32, i32) {
    %c0_i32 = arith.constant 0 : i32
    %c0_i32_0 = arith.constant 0 : i32
    %c0_i32_1 = arith.constant 0 : i32
    return %c0_i32, %c0_i32_0 : i32, i32
  }
  func.func @transform_3(%arg0: i32) -> (i32, i32) {
    %c0_i32 = arith.constant 0 : i32
    %c0_i32_0 = arith.constant 0 : i32
    return %arg0, %c0_i32 : i32, i32
  }
}

module attributes {stable_mosaic.version = 11 : i64} {
  func.func @_gate_final_kernel(%arg0: i32, %arg1: memref<256x8xbf16, #tpu.memory_space<vmem>>, %arg2: memref<256x8xbf16, #tpu.memory_space<vmem>>, %arg3: memref<8x4xbf16, #tpu.memory_space<vmem>>, %arg4: memref<8x4xbf16, #tpu.memory_space<vmem>>, %arg5: memref<1x4xf32, #tpu.memory_space<vmem>>, %arg6: memref<1x4xf32, #tpu.memory_space<vmem>>, %arg7: memref<1x1xf32, #tpu.memory_space<vmem>>, %arg8: memref<1x8xf32, #tpu.memory_space<vmem>>, %arg9: memref<1x1xf32, #tpu.memory_space<vmem>>, %arg10: memref<256x1xf32, #tpu.memory_space<vmem>>) attributes {dimension_semantics = [#tpu.dimension_semantics<parallel>], iteration_bounds = array<i64: 2>, scalar_prefetch = 0 : i64, scratch_operands = 0 : i64, tpu.core_type = #tpu.core_type<tc>, window_params = [{transform_indices = @transform_0, window_bounds = array<i64: 256, 8>}, {transform_indices = @transform_1, window_bounds = array<i64: 256, 8>}, {pipeline_mode = #tpu.pipeline_mode<synchronous>, transform_indices = @transform_2, window_bounds = array<i64: 8, 4>}, {pipeline_mode = #tpu.pipeline_mode<synchronous>, transform_indices = @transform_3, window_bounds = array<i64: 8, 4>}, {pipeline_mode = #tpu.pipeline_mode<synchronous>, transform_indices = @transform_4, window_bounds = array<i64: 1, 4>}, {pipeline_mode = #tpu.pipeline_mode<synchronous>, transform_indices = @transform_5, window_bounds = array<i64: 1, 4>}, {pipeline_mode = #tpu.pipeline_mode<synchronous>, transform_indices = @transform_6, window_bounds = array<i64: 1, 1>}, {pipeline_mode = #tpu.pipeline_mode<synchronous>, transform_indices = @transform_7, window_bounds = array<i64: 1, 8>}, {pipeline_mode = #tpu.pipeline_mode<synchronous>, transform_indices = @transform_8, window_bounds = array<i64: 1, 1>}, {transform_indices = @transform_9, window_bounds = array<i64: 256, 1>}]} {
    %c0 = arith.constant 0 : index
    %c0_0 = arith.constant 0 : index
    %0 = vector.load %arg1[%c0, %c0_0] : memref<256x8xbf16, #tpu.memory_space<vmem>>, vector<256x8xbf16>
    %c0_1 = arith.constant 0 : index
    %c0_2 = arith.constant 0 : index
    %1 = vector.load %arg2[%c0_1, %c0_2] : memref<256x8xbf16, #tpu.memory_space<vmem>>, vector<256x8xbf16>
    %c0_3 = arith.constant 0 : index
    %c0_4 = arith.constant 0 : index
    %2 = vector.load %arg3[%c0_3, %c0_4] : memref<8x4xbf16, #tpu.memory_space<vmem>>, vector<8x4xbf16>
    %cst = arith.constant dense<0.000000e+00> : vector<256x4xf32>
    %3 = tpu.matmul %0, %2, %cst {dimension_numbers = #tpu.dot_dimension_numbers<[1], [0], [0], [1], [0, 0, 1, 1], [], []>} : vector<256x8xbf16>, vector<8x4xbf16>, vector<256x4xf32> -> vector<256x4xf32>
    %c0_5 = arith.constant 0 : index
    %c0_6 = arith.constant 0 : index
    %4 = vector.load %arg4[%c0_5, %c0_6] : memref<8x4xbf16, #tpu.memory_space<vmem>>, vector<8x4xbf16>
    %cst_7 = arith.constant dense<0.000000e+00> : vector<256x4xf32>
    %5 = tpu.matmul %1, %4, %cst_7 {dimension_numbers = #tpu.dot_dimension_numbers<[1], [0], [0], [1], [0, 0, 1, 1], [], []>} : vector<256x8xbf16>, vector<8x4xbf16>, vector<256x4xf32> -> vector<256x4xf32>
    %6 = arith.addf %3, %5 : vector<256x4xf32>
    %c0_8 = arith.constant 0 : index
    %c0_9 = arith.constant 0 : index
    %7 = vector.load %arg5[%c0_8, %c0_9] : memref<1x4xf32, #tpu.memory_space<vmem>>, vector<1x4xf32>
    %8 = vector.broadcast %7 : vector<1x4xf32> to vector<256x4xf32>
    %9 = arith.addf %6, %8 : vector<256x4xf32>
    %cst_10 = arith.constant 0.000000e+00 : f32
    %10 = vector.broadcast %cst_10 : f32 to vector<256x4xf32>
    %11 = arith.maximumf %9, %10 : vector<256x4xf32>
    %c0_11 = arith.constant 0 : index
    %c0_12 = arith.constant 0 : index
    %12 = vector.load %arg6[%c0_11, %c0_12] : memref<1x4xf32, #tpu.memory_space<vmem>>, vector<1x4xf32>
    %13 = vector.broadcast %12 : vector<1x4xf32> to vector<256x4xf32>
    %14 = arith.mulf %11, %13 : vector<256x4xf32>
    %cst_13 = arith.constant dense<0.000000e+00> : vector<256xf32>
    %15 = vector.multi_reduction <add>, %14, %cst_13 [1] : vector<256x4xf32> to vector<256xf32>
    %16 = vector.shape_cast %15 : vector<256xf32> to vector<256x1xf32>
    %c0_14 = arith.constant 0 : index
    %c0_15 = arith.constant 0 : index
    %17 = vector.load %arg7[%c0_14, %c0_15] : memref<1x1xf32, #tpu.memory_space<vmem>>, vector<1x1xf32>
    %18 = vector.broadcast %17 : vector<1x1xf32> to vector<256x1xf32>
    %19 = arith.addf %16, %18 : vector<256x1xf32>
    %20 = arith.negf %19 : vector<256x1xf32>
    %21 = math.exp %20 : vector<256x1xf32>
    %cst_16 = arith.constant 1.000000e+00 : f32
    %22 = vector.broadcast %cst_16 : f32 to vector<256x1xf32>
    %23 = arith.addf %22, %21 : vector<256x1xf32>
    %24 = arith.divf %22, %23 : vector<256x1xf32>
    %25 = arith.extf %0 : vector<256x8xbf16> to vector<256x8xf32>
    %26 = arith.extf %1 : vector<256x8xbf16> to vector<256x8xf32>
    %27 = vector.broadcast %24 : vector<256x1xf32> to vector<256x8xf32>
    %28 = arith.mulf %26, %27 : vector<256x8xf32>
    %29 = arith.addf %25, %28 : vector<256x8xf32>
    %c0_17 = arith.constant 0 : index
    %c0_18 = arith.constant 0 : index
    %30 = vector.load %arg8[%c0_17, %c0_18] : memref<1x8xf32, #tpu.memory_space<vmem>>, vector<1x8xf32>
    %31 = vector.broadcast %30 : vector<1x8xf32> to vector<256x8xf32>
    %32 = arith.mulf %29, %31 : vector<256x8xf32>
    %cst_19 = arith.constant dense<0.000000e+00> : vector<256xf32>
    %33 = vector.multi_reduction <add>, %32, %cst_19 [1] : vector<256x8xf32> to vector<256xf32>
    %34 = vector.shape_cast %33 : vector<256xf32> to vector<256x1xf32>
    %c0_20 = arith.constant 0 : index
    %c0_21 = arith.constant 0 : index
    %35 = vector.load %arg9[%c0_20, %c0_21] : memref<1x1xf32, #tpu.memory_space<vmem>>, vector<1x1xf32>
    %36 = vector.broadcast %35 : vector<1x1xf32> to vector<256x1xf32>
    %37 = arith.addf %34, %36 : vector<256x1xf32>
    %c0_22 = arith.constant 0 : index
    %c0_23 = arith.constant 0 : index
    %38 = vector.load %arg10[%c0_22, %c0_23] : memref<256x1xf32, #tpu.memory_space<vmem>>, vector<256x1xf32>
    tpu.vector_store %arg10[%c0_22, %c0_23], %37 {strides = array<i32>} : memref<256x1xf32, #tpu.memory_space<vmem>>, vector<256x1xf32>,
    return
  }
  func.func @transform_0(%arg0: i32) -> (i32, i32) {
    %c0_i32 = arith.constant 0 : i32
    %c0_i32_0 = arith.constant 0 : i32
    return %arg0, %c0_i32 : i32, i32
  }
  func.func @transform_1(%arg0: i32) -> (i32, i32) {
    %c0_i32 = arith.constant 0 : i32
    %c0_i32_0 = arith.constant 0 : i32
    return %arg0, %c0_i32 : i32, i32
  }
  func.func @transform_2(%arg0: i32) -> (i32, i32) {
    %c0_i32 = arith.constant 0 : i32
    %c0_i32_0 = arith.constant 0 : i32
    %c0_i32_1 = arith.constant 0 : i32
    return %c0_i32, %c0_i32_0 : i32, i32
  }
  func.func @transform_3(%arg0: i32) -> (i32, i32) {
    %c0_i32 = arith.constant 0 : i32
    %c0_i32_0 = arith.constant 0 : i32
    %c0_i32_1 = arith.constant 0 : i32
    return %c0_i32, %c0_i32_0 : i32, i32
  }
  func.func @transform_4(%arg0: i32) -> (i32, i32) {
    %c0_i32 = arith.constant 0 : i32
    %c0_i32_0 = arith.constant 0 : i32
    %c0_i32_1 = arith.constant 0 : i32
    return %c0_i32, %c0_i32_0 : i32, i32
  }
  func.func @transform_5(%arg0: i32) -> (i32, i32) {
    %c0_i32 = arith.constant 0 : i32
    %c0_i32_0 = arith.constant 0 : i32
    %c0_i32_1 = arith.constant 0 : i32
    return %c0_i32, %c0_i32_0 : i32, i32
  }
  func.func @transform_6(%arg0: i32) -> (i32, i32) {
    %c0_i32 = arith.constant 0 : i32
    %c0_i32_0 = arith.constant 0 : i32
    %c0_i32_1 = arith.constant 0 : i32
    return %c0_i32, %c0_i32_0 : i32, i32
  }
  func.func @transform_7(%arg0: i32) -> (i32, i32) {
    %c0_i32 = arith.constant 0 : i32
    %c0_i32_0 = arith.constant 0 : i32
    %c0_i32_1 = arith.constant 0 : i32
    return %c0_i32, %c0_i32_0 : i32, i32
  }
  func.func @transform_8(%arg0: i32) -> (i32, i32) {
    %c0_i32 = arith.constant 0 : i32
    %c0_i32_0 = arith.constant 0 : i32
    %c0_i32_1 = arith.constant 0 : i32
    return %c0_i32, %c0_i32_0 : i32, i32
  }
  func.func @transform_9(%arg0: i32) -> (i32, i32) {
    %c0_i32 = arith.constant 0 : i32
    %c0_i32_0 = arith.constant 0 : i32
    return %arg0, %c0_i32 : i32, i32
  }
}

</mosaic_0001>

<bundles_post_ra>
// kernel: _lambda_.13
= control target key start
LH: loop header
LB: loop body
LE: loop exit
PB: predicated region body
PF: predicated region fallthrough
CT: control target
= control target key end

     0   :  { %s790_s12 = smov 0   ;;  %s969_s0 = inlined_call_operand.vmem [shape: bf16[512,96], index: 0, kind: input, shape index: {}]   ;;  %s970_s1 = inlined_call_operand.vmem [shape: bf16[96,8], index: 1, kind: input, shape index: {}]   ;;  %s971_s2 = inlined_call_operand.vmem [shape: f32[1,8], index: 2, kind: input, shape index: {}]   ;;  %s972_s3 = inlined_call_operand.vmem [shape: bf16[512,8], index: 3, kind: output, shape index: {}]  }
   0x1 LB: > { %s598_s13 = sadd.s32 4294967295, %s768_s12   ;;  %p602_p0 = scmp.ge.s32.totalorder %s768_s12, 1  ;;  %s768_s12 = sphi %s790_s12, %s13_s12  }
   0x2   : > { %p138_p1 = scmp.lt.s32.totalorder %s768_s12, 3 }
   0x4   : > { %p139_p2 = pnand %p602_p0, %p138_p1 }
   0x5   : > { %s603_s18 = sshll.u32 (!%p139_p2), %s598_s13, 5 }
   0x6   : > { %142 = sbr.rel (%p139_p2) target bundleno = 230 (0xe6), region = 32  ;;  %p163_p3 = scmp.lt.s32.totalorder (!%p139_p2), %s603_s18, 63 }
   0xb   : > { %v734_v0 = vld [vmem:[%s970_s1 + $0x28] sm:$0xff]  ;;  %v733_v1 = vld [vmem:[%s970_s1 + $0x20] sm:$0xff]  ;;  %v732_v2 = vld [vmem:[%s970_s1 + $0x18] sm:$0xff]  ;;  %s974_s18 = smov (!%p163_p3, %s603_s18), 63  ;;  %vm339_vm0 = vcmask 785408   ;;  %vm509_vm1 = vcmask 60416  }
   0xc   : > { %390 = vmatpush.bf16.msra.mxu0 %v734_v0  ;;  %735 = vmatpush.bf16.msra.mxu1 %v734_v0  ;;  %v731_v3 = vld [vmem:[%s970_s1 + $0x10] sm:$0xff]  ;;  %v730_v4 = vld [vmem:[%s970_s1 + $0x8] sm:$0xff]  ;;  %s604_s25 = sshll.u32 %s974_s18, 2  ;;  %v729_v5 = vld [vmem:[%s970_s1] sm:$0xff] }
   0xd   : > { %736 = vmatpush.bf16.msra.mxu2 %v734_v0  ;;  %737 = vmatpush.bf16.msra.mxu3 %v734_v0  ;;  %s824_s30 = scalar_lea.vmem %s969_s0, %s604_s25  ;;  %v861_v22 = vld [vmem:[%s971_s2] ss:$0 sm:$0xff]  ;;  %s870_s8 = scalar_lea.vmem %s972_s3, %s604_s25 }
   0xe   : > { %v713_v6 = vld [vmem:[%s824_s30] sm:$0xff]  ;;  %v714_v10 = vld [vmem:[%s824_s30 + $0x8] sm:$0xff]  ;;  %v715_v14 = vld [vmem:[%s824_s30 + $0x10] sm:$0xff] }
   0xf   : > { %v717_v7 = vld [vmem:[%s824_s30 + $0x20] sm:$0xff]  ;;  %v718_v11 = vld [vmem:[%s824_s30 + $0x28] sm:$0xff]  ;;  %v719_v15 = vld [vmem:[%s824_s30 + $0x30] sm:$0xff] }
  0x10   : > { %391 = vmatpush.bf16.msra.mxu0 %v733_v1  ;;  %738 = vmatpush.bf16.msra.mxu1 %v733_v1  ;;  %v721_v8 = vld [vmem:[%s824_s30 + $0x40] sm:$0xff]  ;;  %v722_v12 = vld [vmem:[%s824_s30 + $0x48] sm:$0xff]  ;;  %v723_v16 = vld [vmem:[%s824_s30 + $0x50] sm:$0xff] }
  0x11   : > { %739 = vmatpush.bf16.msra.mxu2 %v733_v1  ;;  %740 = vmatpush.bf16.msra.mxu3 %v733_v1  ;;  %v725_v9 = vld [vmem:[%s824_s30 + $0x60] sm:$0xff]  ;;  %v726_v13 = vld [vmem:[%s824_s30 + $0x68] sm:$0xff]  ;;  %v727_v17 = vld [vmem:[%s824_s30 + $0x70] sm:$0xff] }
  0x12   : > { %v716_v18 = vld [vmem:[%s824_s30 + $0x18] sm:$0xff] }
  0x13   : > { %v720_v19 = vld [vmem:[%s824_s30 + $0x38] sm:$0xff] }
  0x14   : > { %392 = vmatpush.bf16.msra.mxu0 %v732_v2  ;;  %741 = vmatpush.bf16.msra.mxu1 %v732_v2  ;;  %v724_v20 = vld [vmem:[%s824_s30 + $0x58] sm:$0xff] }
  0x15   : > { %742 = vmatpush.bf16.msra.mxu2 %v732_v2  ;;  %743 = vmatpush.bf16.msra.mxu3 %v732_v2  ;;  %v728_v21 = vld [vmem:[%s824_s30 + $0x78] sm:$0xff] }
  0x18   : > { %393 = vmatpush.bf16.msra.mxu0 %v731_v3  ;;  %744 = vmatpush.bf16.msra.mxu1 %v731_v3 }
  0x19   : > { %745 = vmatpush.bf16.msra.mxu2 %v731_v3  ;;  %746 = vmatpush.bf16.msra.mxu3 %v731_v3 }
  0x1c   : > { %394 = vmatpush.bf16.msra.mxu0 %v730_v4  ;;  %747 = vmatpush.bf16.msra.mxu1 %v730_v4 }
  0x1d   : > { %748 = vmatpush.bf16.msra.mxu2 %v730_v4  ;;  %749 = vmatpush.bf16.msra.mxu3 %v730_v4 }
  0x20   : > { %395 = vmatpush.bf16.msra.mxu0 %v729_v5  ;;  %750 = vmatpush.bf16.msra.mxu1 %v729_v5 }
  0x21   : > { %751 = vmatpush.bf16.msra.mxu2 %v729_v5  ;;  %752 = vmatpush.bf16.msra.mxu3 %v729_v5 }
  0x23   : > { %695 = vmatmul.msk.bf16.vlgmr.msra.gmra.mxu0 %vm339_vm0, %v713_v6  ;;  %699 = vmatmul.msk.bf16.vlgmr.msra.gmra.mxu1 %vm339_vm0, %v717_v7 }
  0x24   : > { %703 = vmatmul.msk.bf16.vlgmr.msra.gmra.mxu2 %vm339_vm0, %v721_v8  ;;  %707 = vmatmul.msk.bf16.vlgmr.msra.gmra.mxu3 %vm339_vm0, %v725_v9 }
  0x33   : > { %696 = vmatmul.msk.bf16.gmra.mxu0 %vm339_vm0, %v714_v10  ;;  %700 = vmatmul.msk.bf16.gmra.mxu1 %vm339_vm0, %v718_v11 }
  0x34   : > { %704 = vmatmul.msk.bf16.gmra.mxu2 %vm339_vm0, %v722_v12  ;;  %708 = vmatmul.msk.bf16.gmra.mxu3 %vm339_vm0, %v726_v13 }
  0x43   : > { %697 = vmatmul.msk.bf16.gmra.mxu0 %vm339_vm0, %v715_v14  ;;  %701 = vmatmul.msk.bf16.gmra.mxu1 %vm339_vm0, %v719_v15 }
  0x44   : > { %705 = vmatmul.msk.bf16.gmra.mxu2 %vm339_vm0, %v723_v16  ;;  %709 = vmatmul.msk.bf16.gmra.mxu3 %vm339_vm0, %v727_v17 }
  0x53   : > { %698 = vmatmul.msk.bf16.gmra.mxu0 %vm339_vm0, %v716_v18  ;;  %702 = vmatmul.msk.bf16.gmra.mxu1 %vm339_vm0, %v720_v19 }
  0x54   : > { %706 = vmatmul.msk.bf16.gmra.mxu2 %vm339_vm0, %v724_v20  ;;  %710 = vmatmul.msk.bf16.gmra.mxu3 %vm339_vm0, %v728_v21 }
  0xa0   : > { %v397_v23 = vpop.f32.mrf.mxu0  ;;  %v417_v24 = vpop.f32.mrf.mxu1 }
  0xa1   : > { %v398_v25 = vadd.f32 %v861_v22, %v397_v23  ;;  %v418_v26 = vadd.f32 %v861_v22, %v417_v24 }
  0xa3   : > { %v477_v27 = vpack.c.bf16 %v398_v25, %v398_v25  ;;  %v485_v28 = vpack.c.bf16 %v418_v26, %v418_v26 }
  0xa5   : > { %510 = vst.msk [vmem:[%s870_s8] sm:$0xf] %vm509_vm1, %v477_v27 }
  0xa6   : > { %518 = vst.msk [vmem:[%s870_s8 + $0x20] sm:$0xf] %vm509_vm1, %v485_v28 }
  0xa7   : > { %v437_v29 = vpop.f32.mrf.mxu2  ;;  %v457_v30 = vpop.f32.mrf.mxu3 }
  0xa8   : > { %v438_v31 = vadd.f32 %v861_v22, %v437_v29  ;;  %v458_v32 = vadd.f32 %v861_v22, %v457_v30  ;;  %v399_v33 = vpop.f32.mrf.mxu0  ;;  %v419_v34 = vpop.f32.mrf.mxu1 }
  0xa9   : > { %v400_v35 = vadd.f32 %v861_v22, %v399_v33  ;;  %v420_v36 = vadd.f32 %v861_v22, %v419_v34 }
  0xaa   : > { %v493_v37 = vpack.c.bf16 %v438_v31, %v438_v31  ;;  %v501_v38 = vpack.c.bf16 %v458_v32, %v458_v32 }
  0xab   : > { %v478_v39 = vpack.c.bf16 %v400_v35, %v400_v35  ;;  %v486_v40 = vpack.c.bf16 %v420_v36, %v420_v36 }
  0xac   : > { %526 = vst.msk [vmem:[%s870_s8 + $0x40] sm:$0xf] %vm509_vm1, %v493_v37 }
  0xad   : > { %534 = vst.msk [vmem:[%s870_s8 + $0x60] sm:$0xf] %vm509_vm1, %v501_v38 }
  0xae   : > { %511 = vst.msk [vmem:[%s870_s8 + $0x4] sm:$0xf] %vm509_vm1, %v478_v39 }
  0xaf   : > { %519 = vst.msk [vmem:[%s870_s8 + $0x24] sm:$0xf] %vm509_vm1, %v486_v40  ;;  %v439_v41 = vpop.f32.mrf.mxu2  ;;  %v459_v42 = vpop.f32.mrf.mxu3 }
  0xb0   : > { %v440_v43 = vadd.f32 %v861_v22, %v439_v41  ;;  %v460_v44 = vadd.f32 %v861_v22, %v459_v42  ;;  %v402_v45 = vpop.f32.mrf.mxu0  ;;  %v422_v46 = vpop.f32.mrf.mxu1 }
  0xb1   : > { %v403_v47 = vadd.f32 %v861_v22, %v402_v45  ;;  %v423_v48 = vadd.f32 %v861_v22, %v422_v46 }
  0xb2   : > { %v494_v49 = vpack.c.bf16 %v440_v43, %v440_v43  ;;  %v502_v50 = vpack.c.bf16 %v460_v44, %v460_v44 }
  0xb3   : > { %v479_v51 = vpack.c.bf16 %v403_v47, %v403_v47  ;;  %v487_v52 = vpack.c.bf16 %v423_v48, %v423_v48 }
  0xb4   : > { %527 = vst.msk [vmem:[%s870_s8 + $0x44] sm:$0xf] %vm509_vm1, %v494_v49 }
  0xb5   : > { %535 = vst.msk [vmem:[%s870_s8 + $0x64] sm:$0xf] %vm509_vm1, %v502_v50 }
  0xb6   : > { %512 = vst.msk [vmem:[%s870_s8 + $0x8] sm:$0xf] %vm509_vm1, %v479_v51 }
  0xb7   : > { %520 = vst.msk [vmem:[%s870_s8 + $0x28] sm:$0xf] %vm509_vm1, %v487_v52  ;;  %v442_v53 = vpop.f32.mrf.mxu2  ;;  %v462_v54 = vpop.f32.mrf.mxu3 }
  0xb8   : > { %v443_v55 = vadd.f32 %v861_v22, %v442_v53  ;;  %v463_v56 = vadd.f32 %v861_v22, %v462_v54  ;;  %v404_v57 = vpop.f32.mrf.mxu0  ;;  %v424_v58 = vpop.f32.mrf.mxu1 }
  0xb9   : > { %v405_v59 = vadd.f32 %v861_v22, %v404_v57  ;;  %v425_v60 = vadd.f32 %v861_v22, %v424_v58 }
  0xba   : > { %v495_v61 = vpack.c.bf16 %v443_v55, %v443_v55  ;;  %v503_v62 = vpack.c.bf16 %v463_v56, %v463_v56 }
  0xbb   : > { %v480_v63 = vpack.c.bf16 %v405_v59, %v405_v59  ;;  %v488_v0 = vpack.c.bf16 %v425_v60, %v425_v60 }
  0xbc   : > { %528 = vst.msk [vmem:[%s870_s8 + $0x48] sm:$0xf] %vm509_vm1, %v495_v61 }
  0xbd   : > { %536 = vst.msk [vmem:[%s870_s8 + $0x68] sm:$0xf] %vm509_vm1, %v503_v62 }
  0xbe   : > { %513 = vst.msk [vmem:[%s870_s8 + $0xc] sm:$0xf] %vm509_vm1, %v480_v63 }
  0xbf   : > { %521 = vst.msk [vmem:[%s870_s8 + $0x2c] sm:$0xf] %vm509_vm1, %v488_v0  ;;  %v444_v1 = vpop.f32.mrf.mxu2  ;;  %v464_v2 = vpop.f32.mrf.mxu3 }
  0xc0   : > { %v445_v3 = vadd.f32 %v861_v22, %v444_v1  ;;  %v465_v4 = vadd.f32 %v861_v22, %v464_v2  ;;  %v407_v5 = vpop.f32.mrf.mxu0  ;;  %v427_v6 = vpop.f32.mrf.mxu1 }
  0xc1   : > { %v408_v7 = vadd.f32 %v861_v22, %v407_v5  ;;  %v428_v8 = vadd.f32 %v861_v22, %v427_v6 }
  0xc2   : > { %v496_v9 = vpack.c.bf16 %v445_v3, %v445_v3  ;;  %v504_v10 = vpack.c.bf16 %v465_v4, %v465_v4 }
  0xc3   : > { %v481_v11 = vpack.c.bf16 %v408_v7, %v408_v7  ;;  %v489_v12 = vpack.c.bf16 %v428_v8, %v428_v8 }
  0xc4   : > { %529 = vst.msk [vmem:[%s870_s8 + $0x4c] sm:$0xf] %vm509_vm1, %v496_v9 }
  0xc5   : > { %537 = vst.msk [vmem:[%s870_s8 + $0x6c] sm:$0xf] %vm509_vm1, %v504_v10 }
  0xc6   : > { %514 = vst.msk [vmem:[%s870_s8 + $0x10] sm:$0xf] %vm509_vm1, %v481_v11 }
  0xc7   : > { %522 = vst.msk [vmem:[%s870_s8 + $0x30] sm:$0xf] %vm509_vm1, %v489_v12  ;;  %v447_v13 = vpop.f32.mrf.mxu2  ;;  %v467_v14 = vpop.f32.mrf.mxu3 }
  0xc8   : > { %v448_v15 = vadd.f32 %v861_v22, %v447_v13  ;;  %v468_v16 = vadd.f32 %v861_v22, %v467_v14  ;;  %v409_v17 = vpop.f32.mrf.mxu0  ;;  %v429_v18 = vpop.f32.mrf.mxu1 }
  0xc9   : > { %v410_v19 = vadd.f32 %v861_v22, %v409_v17  ;;  %v430_v20 = vadd.f32 %v861_v22, %v429_v18 }
  0xca   : > { %v497_v21 = vpack.c.bf16 %v448_v15, %v448_v15  ;;  %v505_v23 = vpack.c.bf16 %v468_v16, %v468_v16 }
  0xcb   : > { %v482_v24 = vpack.c.bf16 %v410_v19, %v410_v19  ;;  %v490_v25 = vpack.c.bf16 %v430_v20, %v430_v20 }
  0xcc   : > { %530 = vst.msk [vmem:[%s870_s8 + $0x50] sm:$0xf] %vm509_vm1, %v497_v21 }
  0xcd   : > { %538 = vst.msk [vmem:[%s870_s8 + $0x70] sm:$0xf] %vm509_vm1, %v505_v23 }
  0xce   : > { %515 = vst.msk [vmem:[%s870_s8 + $0x14] sm:$0xf] %vm509_vm1, %v482_v24 }
  0xcf   : > { %523 = vst.msk [vmem:[%s870_s8 + $0x34] sm:$0xf] %vm509_vm1, %v490_v25  ;;  %v449_v26 = vpop.f32.mrf.mxu2  ;;  %v469_v27 = vpop.f32.mrf.mxu3 }
  0xd0   : > { %v450_v28 = vadd.f32 %v861_v22, %v449_v26  ;;  %v470_v29 = vadd.f32 %v861_v22, %v469_v27  ;;  %v412_v30 = vpop.f32.mrf.mxu0  ;;  %v432_v31 = vpop.f32.mrf.mxu1 }
  0xd1   : > { %v413_v32 = vadd.f32 %v861_v22, %v412_v30  ;;  %v433_v33 = vadd.f32 %v861_v22, %v432_v31 }
  0xd2   : > { %v498_v34 = vpack.c.bf16 %v450_v28, %v450_v28  ;;  %v506_v35 = vpack.c.bf16 %v470_v29, %v470_v29 }
  0xd3   : > { %v483_v36 = vpack.c.bf16 %v413_v32, %v413_v32  ;;  %v491_v37 = vpack.c.bf16 %v433_v33, %v433_v33 }
  0xd4   : > { %531 = vst.msk [vmem:[%s870_s8 + $0x54] sm:$0xf] %vm509_vm1, %v498_v34 }
  0xd5   : > { %539 = vst.msk [vmem:[%s870_s8 + $0x74] sm:$0xf] %vm509_vm1, %v506_v35 }
  0xd6   : > { %516 = vst.msk [vmem:[%s870_s8 + $0x18] sm:$0xf] %vm509_vm1, %v483_v36 }
  0xd7   : > { %524 = vst.msk [vmem:[%s870_s8 + $0x38] sm:$0xf] %vm509_vm1, %v491_v37  ;;  %v452_v38 = vpop.f32.mrf.mxu2  ;;  %v472_v39 = vpop.f32.mrf.mxu3 }
  0xd8   : > { %v453_v40 = vadd.f32 %v861_v22, %v452_v38  ;;  %v473_v41 = vadd.f32 %v861_v22, %v472_v39  ;;  %v414_v42 = vpop.f32.mrf.mxu0  ;;  %v434_v43 = vpop.f32.mrf.mxu1 }
  0xd9   : > { %v415_v44 = vadd.f32 %v861_v22, %v414_v42  ;;  %v435_v45 = vadd.f32 %v861_v22, %v434_v43 }
  0xda   : > { %v499_v46 = vpack.c.bf16 %v453_v40, %v453_v40  ;;  %v507_v47 = vpack.c.bf16 %v473_v41, %v473_v41 }
  0xdb   : > { %v484_v48 = vpack.c.bf16 %v415_v44, %v415_v44  ;;  %v492_v49 = vpack.c.bf16 %v435_v45, %v435_v45 }
  0xdc   : > { %532 = vst.msk [vmem:[%s870_s8 + $0x58] sm:$0xf] %vm509_vm1, %v499_v46 }
  0xdd   : > { %540 = vst.msk [vmem:[%s870_s8 + $0x78] sm:$0xf] %vm509_vm1, %v507_v47 }
  0xde   : > { %517 = vst.msk [vmem:[%s870_s8 + $0x1c] sm:$0xf] %vm509_vm1, %v484_v48 }
  0xdf   : > { %525 = vst.msk [vmem:[%s870_s8 + $0x3c] sm:$0xf] %vm509_vm1, %v492_v49  ;;  %v454_v50 = vpop.f32.mrf.mxu2  ;;  %v474_v51 = vpop.f32.mrf.mxu3 }
  0xe0   : > { %v455_v52 = vadd.f32 %v861_v22, %v454_v50  ;;  %v475_v53 = vadd.f32 %v861_v22, %v474_v51 }
  0xe2   : > { %v500_v54 = vpack.c.bf16 %v455_v52, %v455_v52  ;;  %v508_v55 = vpack.c.bf16 %v475_v53, %v475_v53 }
  0xe4   : > { %533 = vst.msk [vmem:[%s870_s8 + $0x5c] sm:$0xf] %vm509_vm1, %v500_v54 }
  0xe5   : > { %541 = vst.msk [vmem:[%s870_s8 + $0x7c] sm:$0xf] %vm509_vm1, %v508_v55 }
  0xe6 PF: > { %s13_s12 = sadd.s32 1, %s768_s12  }
  0xe7   : > { %p10_p4 = scmp.ge.s32.totalorder %s13_s12, 4  }
  0xe9   :  { %12 = sbr.rel (!%p10_p4) target bundleno = 1 (0x1), region = 62 }

// kernel: _lambda_.14
= control target key start
LH: loop header
LB: loop body
LE: loop exit
PB: predicated region body
PF: predicated region fallthrough
CT: control target
= control target key end

     0   :  { %s482_s12 = smov 0   ;;  %s538_s0 = inlined_call_operand.vmem [shape: bf16[128,80], index: 0, kind: input, shape index: {}]   ;;  %s539_s1 = inlined_call_operand.vmem [shape: bf16[80,16], index: 1, kind: input, shape index: {}]   ;;  %s540_s2 = inlined_call_operand.vmem [shape: f32[1,16], index: 2, kind: input, shape index: {}]   ;;  %s541_s3 = inlined_call_operand.vmem [shape: bf16[128,16], index: 3, kind: output, shape index: {}]  }
   0x1 LB: > { %s370_s13 = sadd.s32 4294967295, %s460_s12   ;;  %p374_p0 = scmp.ge.s32.totalorder %s460_s12, 1  ;;  %s460_s12 = sphi %s482_s12, %s13_s12  }
   0x2   : > { %p138_p1 = scmp.lt.s32.totalorder %s460_s12, 3 }
   0x4   : > { %p139_p2 = pnand %p374_p0, %p138_p1 }
   0x5   : > { %s375_s16 = sshll.u32 (!%p139_p2), %s370_s13, 3 }
   0x6   : > { %142 = sbr.rel (%p139_p2) target bundleno = 180 (0xb4), region = 32  ;;  %p163_p3 = scmp.lt.s32.totalorder (!%p139_p2), %s375_s16, 15 }
   0xb   : > { %v429_v0 = vld [vmem:[%s539_s1 + $0x20] sm:$0xff]  ;;  %v428_v1 = vld [vmem:[%s539_s1 + $0x18] sm:$0xff]  ;;  %v427_v2 = vld [vmem:[%s539_s1 + $0x10] sm:$0xff]  ;;  %s543_s16 = smov (!%p163_p3, %s375_s16), 15  ;;  %vm247_vm0 = vcmask 654336   ;;  %vm305_vm1 = vcmask 125952  }
   0xc   : > { %263 = vmatpush.bf16.msra.mxu0 %v429_v0  ;;  %430 = vmatpush.bf16.msra.mxu1 %v429_v0  ;;  %v426_v3 = vld [vmem:[%s539_s1 + $0x8] sm:$0xff]  ;;  %s376_s23 = sshll.u32 %s543_s16, 2  ;;  %v425_v4 = vld [vmem:[%s539_s1] sm:$0xff] }
   0xd   : > { %431 = vmatpush.bf16.msra.mxu2 %v429_v0  ;;  %432 = vmatpush.bf16.msra.mxu3 %v429_v0  ;;  %s166_s28 = scalar_lea.vmem %s538_s0, %s376_s23  ;;  %v453_v9 = vld [vmem:[%s540_s2] ss:$0 sm:$0xff]  ;;  %s517_s6 = scalar_lea.vmem %s541_s3, %s376_s23 }
   0xe   : > { %v421_v5 = vld [vmem:[%s166_s28] sm:$0xff]  ;;  %v422_v6 = vld [vmem:[%s166_s28 + $0x8] sm:$0xff]  ;;  %v423_v7 = vld [vmem:[%s166_s28 + $0x10] sm:$0xff] }
   0xf   : > { %v424_v8 = vld [vmem:[%s166_s28 + $0x18] sm:$0xff] }
  0x10   : > { %264 = vmatpush.bf16.msra.mxu0 %v428_v1  ;;  %433 = vmatpush.bf16.msra.mxu1 %v428_v1 }
  0x11   : > { %434 = vmatpush.bf16.msra.mxu2 %v428_v1  ;;  %435 = vmatpush.bf16.msra.mxu3 %v428_v1 }
  0x14   : > { %265 = vmatpush.bf16.msra.mxu0 %v427_v2  ;;  %436 = vmatpush.bf16.msra.mxu1 %v427_v2 }
  0x15   : > { %437 = vmatpush.bf16.msra.mxu2 %v427_v2  ;;  %438 = vmatpush.bf16.msra.mxu3 %v427_v2 }
  0x18   : > { %266 = vmatpush.bf16.msra.mxu0 %v426_v3  ;;  %439 = vmatpush.bf16.msra.mxu1 %v426_v3 }
  0x19   : > { %440 = vmatpush.bf16.msra.mxu2 %v426_v3  ;;  %441 = vmatpush.bf16.msra.mxu3 %v426_v3 }
  0x1c   : > { %267 = vmatpush.bf16.msra.mxu0 %v425_v4  ;;  %442 = vmatpush.bf16.msra.mxu1 %v425_v4 }
  0x1d   : > { %443 = vmatpush.bf16.msra.mxu2 %v425_v4  ;;  %444 = vmatpush.bf16.msra.mxu3 %v425_v4 }
  0x1f   : > { %415 = vmatmul.msk.bf16.vlgmr.msra.gmra.mxu0 %vm247_vm0, %v421_v5  ;;  %416 = vmatmul.msk.bf16.vlgmr.msra.gmra.mxu1 %vm247_vm0, %v422_v6 }
  0x20   : > { %417 = vmatmul.msk.bf16.vlgmr.msra.gmra.mxu2 %vm247_vm0, %v423_v7  ;;  %418 = vmatmul.msk.bf16.vlgmr.msra.gmra.mxu3 %vm247_vm0, %v424_v8 }
  0x9c   : > { %v269_v10 = vpop.f32.mrf.mxu0  ;;  %v274_v11 = vpop.f32.mrf.mxu1 }
  0x9d   : > { %v270_v12 = vadd.f32 %v453_v9, %v269_v10  ;;  %v275_v13 = vadd.f32 %v453_v9, %v274_v11 }
  0x9f   : > { %v289_v14 = vmax.f32 %v270_v12, 0.0  ;;  %v291_v15 = vmax.f32 %v275_v13, 0.0 }
  0xa1   : > { %v297_v16 = vpack.c.bf16 %v289_v14, %v289_v14  ;;  %v299_v17 = vpack.c.bf16 %v291_v15, %v291_v15 }
  0xa3   : > { %306 = vst.msk [vmem:[%s517_s6] sm:$0xf] %vm305_vm1, %v297_v16  ;;  %v279_v18 = vpop.f32.mrf.mxu2  ;;  %v284_v19 = vpop.f32.mrf.mxu3 }
  0xa4   : > { %308 = vst.msk [vmem:[%s517_s6 + $0x8] sm:$0xf] %vm305_vm1, %v299_v17  ;;  %v280_v20 = vadd.f32 %v453_v9, %v279_v18  ;;  %v285_v21 = vadd.f32 %v453_v9, %v284_v19  ;;  %v271_v22 = vpop.f32.mrf.mxu0  ;;  %v276_v23 = vpop.f32.mrf.mxu1 }
  0xa5   : > { %v272_v24 = vadd.f32 %v453_v9, %v271_v22  ;;  %v277_v25 = vadd.f32 %v453_v9, %v276_v23 }
  0xa6   : > { %v293_v26 = vmax.f32 %v280_v20, 0.0  ;;  %v295_v27 = vmax.f32 %v285_v21, 0.0 }
  0xa7   : > { %v290_v28 = vmax.f32 %v272_v24, 0.0  ;;  %v292_v29 = vmax.f32 %v277_v25, 0.0 }
  0xa8   : > { %v301_v30 = vpack.c.bf16 %v293_v26, %v293_v26  ;;  %v303_v31 = vpack.c.bf16 %v295_v27, %v295_v27 }
  0xa9   : > { %v298_v32 = vpack.c.bf16 %v290_v28, %v290_v28  ;;  %v300_v33 = vpack.c.bf16 %v292_v29, %v292_v29 }
  0xaa   : > { %310 = vst.msk [vmem:[%s517_s6 + $0x10] sm:$0xf] %vm305_vm1, %v301_v30 }
  0xab   : > { %312 = vst.msk [vmem:[%s517_s6 + $0x18] sm:$0xf] %vm305_vm1, %v303_v31  ;;  %v281_v34 = vpop.f32.mrf.mxu2  ;;  %v286_v35 = vpop.f32.mrf.mxu3 }
  0xac   : > { %307 = vst.msk [vmem:[%s517_s6 + $0x4] sm:$0xf] %vm305_vm1, %v298_v32  ;;  %v282_v36 = vadd.f32 %v453_v9, %v281_v34  ;;  %v287_v37 = vadd.f32 %v453_v9, %v286_v35 }
  0xad   : > { %309 = vst.msk [vmem:[%s517_s6 + $0xc] sm:$0xf] %vm305_vm1, %v300_v33 }
  0xae   : > { %v294_v38 = vmax.f32 %v282_v36, 0.0  ;;  %v296_v39 = vmax.f32 %v287_v37, 0.0 }
  0xb0   : > { %v302_v40 = vpack.c.bf16 %v294_v38, %v294_v38  ;;  %v304_v41 = vpack.c.bf16 %v296_v39, %v296_v39 }
  0xb2   : > { %311 = vst.msk [vmem:[%s517_s6 + $0x14] sm:$0xf] %vm305_vm1, %v302_v40 }
  0xb3   : > { %313 = vst.msk [vmem:[%s517_s6 + $0x1c] sm:$0xf] %vm305_vm1, %v304_v41 }
  0xb4 PF: > { %s13_s12 = sadd.s32 1, %s460_s12  }
  0xb5   : > { %p10_p4 = scmp.ge.s32.totalorder %s13_s12, 4  }
  0xb7   :  { %12 = sbr.rel (!%p10_p4) target bundleno = 1 (0x1), region = 62 }

// kernel: _lambda_.15
= control target key start
LH: loop header
LB: loop body
LE: loop exit
PB: predicated region body
PF: predicated region fallthrough
CT: control target
= control target key end

     0   :  { %s598_s12 = smov 0   ;;  %s689_s0 = inlined_call_operand.vmem [shape: bf16[128,144], index: 0, kind: input, shape index: {}]   ;;  %s690_s1 = inlined_call_operand.vmem [shape: bf16[144,16], index: 1, kind: input, shape index: {}]   ;;  %s691_s2 = inlined_call_operand.vmem [shape: f32[1,16], index: 2, kind: input, shape index: {}]   ;;  %s692_s3 = inlined_call_operand.vmem [shape: bf16[128,16], index: 3, kind: output, shape index: {}]  }
   0x1 LB: > { %s450_s13 = sadd.s32 4294967295, %s576_s12   ;;  %p454_p0 = scmp.ge.s32.totalorder %s576_s12, 1  ;;  %s576_s12 = sphi %s598_s12, %s13_s12  }
   0x2   : > { %p139_p1 = scmp.lt.s32.totalorder %s576_s12, 3 }
   0x4   : > { %p140_p2 = pnand %p454_p0, %p139_p1 }
   0x5   : > { %s455_s18 = sshll.u32 (!%p140_p2), %s450_s13, 3 }
   0x6   : > { %143 = sbr.rel (%p140_p2) target bundleno = 208 (0xd0), region = 32  ;;  %p165_p3 = scmp.lt.s32.totalorder (!%p140_p2), %s455_s18, 15 }
   0xb   : > { %v550_v0 = vld [vmem:[%s690_s1 + $0x38] sm:$0xff]  ;;  %v551_v1 = vld [vmem:[%s690_s1 + $0x40] sm:$0xff]  ;;  %v549_v2 = vld [vmem:[%s690_s1 + $0x30] sm:$0xff]  ;;  %s694_s18 = smov (!%p165_p3, %s455_s18), 15  ;;  %vm298_vm0 = vcmask 130048   ;;  %vm385_vm1 = vcmask 125952  }
   0xc   : > { %311 = vmatpush.bf16.msra.mxu0 %v550_v0  ;;  %552 = vmatpush.bf16.msra.mxu2 %v550_v0  ;;  %s534_s21 = sshll.u32 %s694_s18, 3  ;;  %v548_v3 = vld [vmem:[%s690_s1 + $0x28] sm:$0xff]  ;;  %v547_v8 = vld [vmem:[%s690_s1 + $0x20] sm:$0xff]  ;;  %v546_v11 = vld [vmem:[%s690_s1 + $0x18] sm:$0xff]  ;;  %s459_s13 = sshll.u32 %s694_s18, 2 }
   0xd   : > { %560 = vmatpush.bf16.msra.mxu3 %v551_v1  ;;  %347 = vmatpush.bf16.msra.mxu1 %v551_v1  ;;  %s624_s26 = scalar_lea.vmem %s689_s0, %s534_s21  ;;  %v545_v12 = vld [vmem:[%s690_s1 + $0x10] sm:$0xff]  ;;  %v544_v15 = vld [vmem:[%s690_s1 + $0x8] sm:$0xff]  ;;  %v543_v17 = vld [vmem:[%s690_s1] sm:$0xff]  ;;  %s668_s16 = scalar_lea.vmem %s692_s3, %s459_s13 }
   0xe   : > { %v537_v4 = vld [vmem:[%s624_s26 + $0x14] sm:$0xf]  ;;  %v472_v5 = vld [vmem:[%s624_s26 + $0x18] sm:$0xf0]  ;;  %v535_v7 = vld [vmem:[%s624_s26 + $0x4] sm:$0xf] }
   0xf   : > { %v475_v6 = vor.u32 %v537_v4, %v472_v5  ;;  %v464_v9 = vld [vmem:[%s624_s26 + $0x8] sm:$0xf0]  ;;  %v539_v13 = vld [vmem:[%s624_s26 + $0x24] sm:$0xf]  ;;  %v462_v18 = vld [vmem:[%s624_s26] sm:$0xf] }
  0x10   : > { %312 = vmatpush.bf16.msra.mxu0 %v549_v2  ;;  %553 = vmatpush.bf16.msra.mxu2 %v549_v2  ;;  %v467_v10 = vor.u32 %v535_v7, %v464_v9  ;;  %v480_v14 = vld [vmem:[%s624_s26 + $0x28] sm:$0xf0]  ;;  %v536_v19 = vld [vmem:[%s624_s26 + $0x4] sm:$0xf0]  ;;  %v478_v20 = vld [vmem:[%s624_s26 + $0x20] sm:$0xf] }
  0x11   : > { %529 = vmatmul.msk.bf16.vlgmr.msra.gmra.mxu3 %vm298_vm0, %v475_v6  ;;  %v483_v16 = vor.u32 %v539_v13, %v480_v14  ;;  %v540_v21 = vld [vmem:[%s624_s26 + $0x24] sm:$0xf0]  ;;  %v463_v22 = vor.u32 %v536_v19, %v462_v18  ;;  %v541_v24 = vld [vmem:[%s624_s26 + $0x34] sm:$0xf]  ;;  %v488_v25 = vld [vmem:[%s624_s26 + $0x38] sm:$0xf0] }
  0x12   : > { %528 = vmatmul.msk.bf16.vlgmr.msra.gmra.mxu1 %vm298_vm0, %v467_v10  ;;  %v479_v23 = vor.u32 %v540_v21, %v478_v20  ;;  %v491_v26 = vor.u32 %v541_v24, %v488_v25  ;;  %v470_v27 = vld [vmem:[%s624_s26 + $0x10] sm:$0xf]  ;;  %v538_v28 = vld [vmem:[%s624_s26 + $0x14] sm:$0xf0]  ;;  %v569_v35 = vld [vmem:[%s691_s2] ss:$0 sm:$0xff] }
  0x13   : > { %v486_v29 = vld [vmem:[%s624_s26 + $0x30] sm:$0xf]  ;;  %v542_v30 = vld [vmem:[%s624_s26 + $0x34] sm:$0xf0]  ;;  %v471_v31 = vor.u32 %v538_v28, %v470_v27 }
  0x14   : > { %313 = vmatpush.bf16.msra.mxu0 %v548_v3  ;;  %554 = vmatpush.bf16.msra.mxu2 %v548_v3  ;;  %v487_v32 = vor.u32 %v542_v30, %v486_v29 }
  0x18   : > { %314 = vmatpush.bf16.msra.mxu0 %v547_v8  ;;  %555 = vmatpush.bf16.msra.mxu2 %v547_v8 }
  0x1c   : > { %315 = vmatpush.bf16.msra.mxu0 %v546_v11  ;;  %556 = vmatpush.bf16.msra.mxu2 %v546_v11 }
  0x20   : > { %316 = vmatpush.bf16.msra.mxu0 %v545_v12  ;;  %557 = vmatpush.bf16.msra.mxu2 %v545_v12 }
  0x21   : > { %530 = vmatmul.msk.bf16.gmra.mxu3 %vm298_vm0, %v483_v16 }
  0x24   : > { %317 = vmatpush.bf16.msra.mxu0 %v544_v15  ;;  %558 = vmatpush.bf16.msra.mxu2 %v544_v15 }
  0x28   : > { %318 = vmatpush.bf16.msra.mxu0 %v543_v17  ;;  %559 = vmatpush.bf16.msra.mxu2 %v543_v17 }
  0x2b   : > { %319 = vmatmul.bf16.vlgmr.msra.gmra.mxu0 %v463_v22  ;;  %329 = vmatmul.bf16.vlgmr.msra.gmra.mxu2 %v479_v23 }
  0x31   : > { %531 = vmatmul.msk.bf16.gmra.mxu3 %vm298_vm0, %v491_v26 }
  0x3b   : > { %324 = vmatmul.bf16.gmra.mxu0 %v471_v31  ;;  %334 = vmatmul.bf16.gmra.mxu2 %v487_v32 }
  0x8f   : > { %v349_v36 = vpop.f32.mrf.mxu1 }
  0x94   : > { %v354_v33 = vpop.f32.mrf.mxu3 }
  0x97   : > { %v351_v46 = vpop.f32.mrf.mxu1 }
  0x9c   : > { %v356_v34 = vpop.f32.mrf.mxu3 }
  0xa4   : > { %v359_v39 = vpop.f32.mrf.mxu3 }
  0xa8   : > { %v320_v37 = vpop.f32.mrf.mxu0 }
  0xa9   : > { %v321_v38 = vadd.f32 %v569_v35, %v320_v37 }
  0xab   : > { %v350_v40 = vadd.f32 %v349_v36, %v321_v38 }
  0xac   : > { %v361_v51 = vpop.f32.mrf.mxu3 }
  0xad   : > { %v369_v41 = vmax.f32 %v350_v40, 0.0 }
  0xae   : > { %v330_v42 = vpop.f32.mrf.mxu2 }
  0xaf   : > { %v377_v43 = vpack.c.bf16 %v369_v41, %v369_v41  ;;  %v331_v44 = vadd.f32 %v569_v35, %v330_v42 }
  0xb0   : > { %v322_v45 = vpop.f32.mrf.mxu0 }
  0xb1   : > { %386 = vst.msk [vmem:[%s668_s16] sm:$0xf] %vm385_vm1, %v377_v43  ;;  %v360_v47 = vadd.f32 %v359_v39, %v331_v44  ;;  %v323_v48 = vadd.f32 %v569_v35, %v322_v45 }
  0xb3   : > { %v373_v49 = vmax.f32 %v360_v47, 0.0  ;;  %v352_v50 = vadd.f32 %v351_v46, %v323_v48 }
  0xb4   : > { %v364_v0 = vpop.f32.mrf.mxu3 }
  0xb5   : > { %v381_v52 = vpack.c.bf16 %v373_v49, %v373_v49  ;;  %v370_v53 = vmax.f32 %v352_v50, 0.0 }
  0xb6   : > { %v332_v54 = vpop.f32.mrf.mxu2 }
  0xb7   : > { %390 = vst.msk [vmem:[%s668_s16 + $0x10] sm:$0xf] %vm385_vm1, %v381_v52  ;;  %v378_v55 = vpack.c.bf16 %v370_v53, %v370_v53  ;;  %v333_v56 = vadd.f32 %v569_v35, %v332_v54 }
  0xb8   : > { %v325_v57 = vpop.f32.mrf.mxu0 }
  0xb9   : > { %387 = vst.msk [vmem:[%s668_s16 + $0x4] sm:$0xf] %vm385_vm1, %v378_v55  ;;  %v362_v58 = vadd.f32 %v361_v51, %v333_v56  ;;  %v326_v59 = vadd.f32 %v569_v35, %v325_v57 }
  0xbb   : > { %v374_v60 = vmax.f32 %v362_v58, 0.0  ;;  %v355_v61 = vadd.f32 %v354_v33, %v326_v59 }
  0xbc   : > { %v366_v14 = vpop.f32.mrf.mxu3 }
  0xbd   : > { %v382_v62 = vpack.c.bf16 %v374_v60, %v374_v60  ;;  %v371_v63 = vmax.f32 %v355_v61, 0.0 }
  0xbe   : > { %v335_v1 = vpop.f32.mrf.mxu2 }
  0xbf   : > { %391 = vst.msk [vmem:[%s668_s16 + $0x14] sm:$0xf] %vm385_vm1, %v382_v62  ;;  %v379_v2 = vpack.c.bf16 %v371_v63, %v371_v63  ;;  %v336_v3 = vadd.f32 %v569_v35, %v335_v1 }
  0xc0   : > { %v327_v4 = vpop.f32.mrf.mxu0 }
  0xc1   : > { %388 = vst.msk [vmem:[%s668_s16 + $0x8] sm:$0xf] %vm385_vm1, %v379_v2  ;;  %v365_v5 = vadd.f32 %v364_v0, %v336_v3  ;;  %v328_v6 = vadd.f32 %v569_v35, %v327_v4 }
  0xc3   : > { %v375_v7 = vmax.f32 %v365_v5, 0.0  ;;  %v357_v8 = vadd.f32 %v356_v34, %v328_v6 }
  0xc5   : > { %v383_v9 = vpack.c.bf16 %v375_v7, %v375_v7  ;;  %v372_v10 = vmax.f32 %v357_v8, 0.0 }
  0xc6   : > { %v337_v11 = vpop.f32.mrf.mxu2 }
  0xc7   : > { %392 = vst.msk [vmem:[%s668_s16 + $0x18] sm:$0xf] %vm385_vm1, %v383_v9  ;;  %v380_v12 = vpack.c.bf16 %v372_v10, %v372_v10  ;;  %v338_v13 = vadd.f32 %v569_v35, %v337_v11 }
  0xc9   : > { %389 = vst.msk [vmem:[%s668_s16 + $0xc] sm:$0xf] %vm385_vm1, %v380_v12  ;;  %v367_v15 = vadd.f32 %v366_v14, %v338_v13 }
  0xcb   : > { %v376_v16 = vmax.f32 %v367_v15, 0.0 }
  0xcd   : > { %v384_v17 = vpack.c.bf16 %v376_v16, %v376_v16 }
  0xcf   : > { %393 = vst.msk [vmem:[%s668_s16 + $0x1c] sm:$0xf] %vm385_vm1, %v384_v17 }
  0xd0 PF: > { %s13_s12 = sadd.s32 1, %s576_s12  }
  0xd1   : > { %p10_p4 = scmp.ge.s32.totalorder %s13_s12, 4  }
  0xd3   :  { %12 = sbr.rel (!%p10_p4) target bundleno = 1 (0x1), region = 62 }

// kernel: tile.13
= control target key start
LH: loop header
LB: loop body
LE: loop exit
PB: predicated region body
PF: predicated region fallthrough
CT: control target
= control target key end

     0   :  { %s22_s0 = inlined_call_operand.vmem [shape: f32[16], index: 0, kind: input, shape index: {}]   ;;  %s23_s1 = inlined_call_operand.vmem [shape: f32[4,16], index: 1, kind: output, shape index: {}]  }
   0x1   :  { %v4_v0 = vld [vmem:[%s22_s0] ss:$0 sm:$0xff] }
   0x2   :  { %5 = vst [vmem:[%s23_s1] sm:$0xf] %v4_v0 }

// kernel: tile.14
= control target key start
LH: loop header
LB: loop body
LE: loop exit
PB: predicated region body
PF: predicated region fallthrough
CT: control target
= control target key end

     0   :  { %s37_s8 = smov 16   ;;  %s38_s9 = smov 32   ;;  %vm7_vm0 = vcmask 130048   ;;  %vm13_vm1 = vcmask 523648   ;;  %vm19_vm2 = vcmask 392448   ;;  %vm25_vm3 = vcmask 261248   ;;  %s55_s0 = inlined_call_operand.vmem [shape: f32[4,16], index: 0, kind: input, shape index: {}]   ;;  %s56_s1 = inlined_call_operand.vmem [shape: f32[1,64], index: 1, kind: output, shape index: {}]  }
   0x1   :  { %v4_v0 = vld [vmem:[%s55_s0] sm:$0xf]  ;;  %s36_s0 = smov 48  }
   0x2   :  { %5 = vst [vmem:[#allocation1] sm:$0xf] %v4_v0 }
   0x9   :  { %v10_v1 = vld [vmem:[#allocation1 + $0x3] sm:$0x1]   ;;  %v22_v2 = vld [vmem:[#allocation1 + $0x1] sm:$0x1]   ;;  %v16_v3 = vld [vmem:[#allocation1 + $0x2] sm:$0x1]  }
   0xa   :  { %11 = vrot.lane.b32.xlu0 %v10_v1, %s36_s0  ;;  %23 = vrot.lane.b32.xlu1 %v22_v2, %s37_s8  ;;  %v6_v4 = vld [vmem:[#allocation1] sm:$0x1]  }
   0xb   :  { %8 = vst.msk [vmem:[#allocation0] sm:$0x1] %vm7_vm0, %v6_v4  }
  0x12   :  { %17 = vrot.lane.b32.xlu0 %v16_v3, %s38_s9 }
  0x7c   :  { %v12_v5 = vpop.permute.xlu0 %11   ;;  %v24_v6 = vpop.permute.xlu1 %23  }
  0x7d   :  { %14 = vst.msk [vmem:[#allocation0] sm:$0x1] %vm13_vm1, %v12_v5  }
  0x84   :  { %v18_v7 = vpop.permute.xlu0 %17  }
  0x85   :  { %20 = vst.msk [vmem:[#allocation0] sm:$0x1] %vm19_vm2, %v18_v7  }
  0x86   :  { %26 = vst.msk [vmem:[#allocation0] sm:$0x1] %vm25_vm3, %v24_v6  }
  0x8d   :  { %v29_v8 = vld [vmem:[#allocation0] sm:$0x1] }
  0x8e   :  { %32 = vst [vmem:[%s56_s1] sm:$0x1] %v29_v8 }

// kernel: _lambda_.16
= control target key start
LH: loop header
LB: loop body
LE: loop exit
PB: predicated region body
PF: predicated region fallthrough
CT: control target
= control target key end

     0   :  { %s466_s12 = smov 0   ;;  %s517_s0 = inlined_call_operand.vmem [shape: bf16[32,144], index: 0, kind: input, shape index: {}]   ;;  %s518_s1 = inlined_call_operand.vmem [shape: bf16[144,32], index: 1, kind: input, shape index: {}]   ;;  %s519_s2 = inlined_call_operand.vmem [shape: f32[1,32], index: 2, kind: input, shape index: {}]   ;;  %s520_s3 = inlined_call_operand.vmem [shape: bf16[32,32], index: 3, kind: output, shape index: {}]  }
   0x1 LB: > { %s360_s13 = sadd.s32 4294967295, %s444_s12   ;;  %p364_p0 = scmp.ge.s32.totalorder %s444_s12, 1  ;;  %s444_s12 = sphi %s466_s12, %s13_s12  }
   0x2   : > { %p139_p1 = scmp.lt.s32.totalorder %s444_s12, 3 }
   0x4   : > { %p140_p2 = pnand %p364_p0, %p139_p1 }
   0x5   : > { %s365_s16 = sshll.u32 (!%p140_p2), %s360_s13, 1 }
   0x6   : > { %143 = sbr.rel (%p140_p2) target bundleno = 186 (0xba), region = 32  ;;  %p165_p3 = scmp.lt.s32.totalorder (!%p140_p2), %s365_s16, 3 }
   0xb   : > { %v427_v0 = vld [vmem:[%s518_s1 + $0x38] sm:$0xff]  ;;  %v426_v1 = vld [vmem:[%s518_s1 + $0x30] sm:$0xff]  ;;  %v428_v2 = vld [vmem:[%s518_s1 + $0x40] sm:$0xff]  ;;  %s522_s16 = smov (!%p165_p3, %s365_s16), 3  ;;  %vm265_vm0 = vcmask 130048   ;;  %vm301_vm1 = vcmask 257024  }
   0xc   : > { %269 = vmatpush.bf16.msra.mxu0 %v427_v0  ;;  %290 = vmatpush.bf16.msra.mxu1 %v428_v2  ;;  %s417_s21 = sshll.u32 %s522_s16, 3  ;;  %v425_v3 = vld [vmem:[%s518_s1 + $0x28] sm:$0xff]  ;;  %v424_v7 = vld [vmem:[%s518_s1 + $0x20] sm:$0xff]  ;;  %v423_v8 = vld [vmem:[%s518_s1 + $0x18] sm:$0xff]  ;;  %s369_s13 = sshll.u32 %s522_s16, 2 }
   0xd   : > { %s169_s26 = scalar_lea.vmem %s517_s0, %s417_s21  ;;  %v422_v9 = vld [vmem:[%s518_s1 + $0x10] sm:$0xff]  ;;  %v421_v10 = vld [vmem:[%s518_s1 + $0x8] sm:$0xff]  ;;  %v420_v11 = vld [vmem:[%s518_s1] sm:$0xff]  ;;  %s175_s17 = scalar_lea.vmem %s520_s3, %s369_s13 }
   0xe   : > { %v418_v4 = vld [vmem:[%s169_s26 + $0x4] sm:$0xf]  ;;  %v374_v5 = vld [vmem:[%s169_s26 + $0x8] sm:$0xf0]  ;;  %v372_v12 = vld [vmem:[%s169_s26] sm:$0xf] }
   0xf   : > { %v377_v6 = vor.u32 %v418_v4, %v374_v5  ;;  %v419_v13 = vld [vmem:[%s169_s26 + $0x4] sm:$0xf0]  ;;  %v437_v15 = vld [vmem:[%s519_s2] ss:$0 sm:$0xff] }
  0x10   : > { %270 = vmatpush.bf16.msra.mxu0 %v426_v1  ;;  %v373_v14 = vor.u32 %v419_v13, %v372_v12 }
  0x11   : > { %414 = vmatmul.msk.bf16.vlgmr.msra.gmra.mxu1 %vm265_vm0, %v377_v6 }
  0x14   : > { %271 = vmatpush.bf16.msra.mxu0 %v425_v3 }
  0x18   : > { %272 = vmatpush.bf16.msra.mxu0 %v424_v7 }
  0x1c   : > { %273 = vmatpush.bf16.msra.mxu0 %v423_v8 }
  0x20   : > { %274 = vmatpush.bf16.msra.mxu0 %v422_v9 }
  0x24   : > { %275 = vmatpush.bf16.msra.mxu0 %v421_v10 }
  0x28   : > { %276 = vmatpush.bf16.msra.mxu0 %v420_v11 }
  0x2b   : > { %277 = vmatmul.bf16.vlgmr.msra.gmra.mxu0 %v373_v14 }
  0x8e   : > { %v292_v16 = vpop.f32.mrf.mxu1 }
  0x96   : > { %v294_v24 = vpop.f32.mrf.mxu1 }
  0xa8   : > { %v278_v17 = vpop.f32.mrf.mxu0 }
  0xa9   : > { %v279_v18 = vadd.f32 %v437_v15, %v278_v17 }
  0xab   : > { %v293_v19 = vadd.f32 %v292_v16, %v279_v18 }
  0xad   : > { %v297_v20 = vmax.f32 %v293_v19, 0.0 }
  0xaf   : > { %v299_v21 = vpack.c.bf16 %v297_v20, %v297_v20 }
  0xb0   : > { %v280_v22 = vpop.f32.mrf.mxu0 }
  0xb1   : > { %302 = vst.msk [vmem:[%s175_s17] sm:$0xf] %vm301_vm1, %v299_v21  ;;  %v281_v23 = vadd.f32 %v437_v15, %v280_v22 }
  0xb3   : > { %v295_v25 = vadd.f32 %v294_v24, %v281_v23 }
  0xb5   : > { %v298_v26 = vmax.f32 %v295_v25, 0.0 }
  0xb7   : > { %v300_v27 = vpack.c.bf16 %v298_v26, %v298_v26 }
  0xb9   : > { %303 = vst.msk [vmem:[%s175_s17 + $0x4] sm:$0xf] %vm301_vm1, %v300_v27 }
  0xba PF: > { %s13_s12 = sadd.s32 1, %s444_s12  }
  0xbb   : > { %p10_p4 = scmp.ge.s32.totalorder %s13_s12, 4  }
  0xbd   :  { %12 = sbr.rel (!%p10_p4) target bundleno = 1 (0x1), region = 62 }

// kernel: _lambda_.17
= control target key start
LH: loop header
LB: loop body
LE: loop exit
PB: predicated region body
PF: predicated region fallthrough
CT: control target
= control target key end

     0   :  { %s609_s12 = smov 0   ;;  %s687_s0 = inlined_call_operand.vmem [shape: bf16[32,288], index: 0, kind: input, shape index: {}]   ;;  %s688_s1 = inlined_call_operand.vmem [shape: bf16[288,32], index: 1, kind: input, shape index: {}]   ;;  %s689_s2 = inlined_call_operand.vmem [shape: f32[1,32], index: 2, kind: input, shape index: {}]   ;;  %s690_s3 = inlined_call_operand.vmem [shape: bf16[32,32], index: 3, kind: output, shape index: {}]  }
   0x1 LB: > { %s454_s13 = sadd.s32 4294967295, %s587_s12   ;;  %p458_p0 = scmp.ge.s32.totalorder %s587_s12, 1  ;;  %s587_s12 = sphi %s609_s12, %s13_s12  }
   0x2   : > { %p139_p1 = scmp.lt.s32.totalorder %s587_s12, 3 }
   0x4   : > { %p140_p2 = pnand %p458_p0, %p139_p1 }
   0x5   : > { %s459_s18 = sshll.u32 (!%p140_p2), %s454_s13, 1 }
   0x6   : > { %143 = sbr.rel (%p140_p2) target bundleno = 188 (0xbc), region = 32  ;;  %p165_p3 = scmp.lt.s32.totalorder (!%p140_p2), %s459_s18, 3 }
   0xb   : > { %v560_v0 = vld [vmem:[%s688_s1 + $0x38] sm:$0xff]  ;;  %v559_v2 = vld [vmem:[%s688_s1 + $0x30] sm:$0xff]  ;;  %v570_v4 = vld [vmem:[%s688_s1 + $0x88] sm:$0xff]  ;;  %s692_s18 = smov (!%p165_p3, %s459_s18), 3  ;;  %vm345_vm0 = vcmask 261120   ;;  %vm395_vm1 = vcmask 257024  }
   0xc   : > { %v568_v1 = vld [vmem:[%s688_s1 + $0x78] sm:$0xff]  ;;  %349 = vmatpush.bf16.msra.mxu0 %v560_v0  ;;  %v567_v3 = vld [vmem:[%s688_s1 + $0x70] sm:$0xff]  ;;  %383 = vmatpush.bf16.msra.mxu2 %v570_v4  ;;  %v569_v5 = vld [vmem:[%s688_s1 + $0x80] sm:$0xff]  ;;  %s571_s27 = smul.u32 12, %s692_s18  ;;  %s462_s5 = sshll.u32 %s692_s18, 2 }
   0xd   : > { %363 = vmatpush.bf16.msra.mxu1 %v568_v1  ;;  %v558_v6 = vld [vmem:[%s688_s1 + $0x28] sm:$0xff]  ;;  %v557_v11 = vld [vmem:[%s688_s1 + $0x20] sm:$0xff]  ;;  %v556_v13 = vld [vmem:[%s688_s1 + $0x18] sm:$0xff]  ;;  %s175_s8 = scalar_lea.vmem %s690_s3, %s462_s5 }
   0xe   : > { %v566_v7 = vld [vmem:[%s688_s1 + $0x68] sm:$0xff]  ;;  %s169_s7 = scalar_lea.vmem %s687_s0, %s571_s27  ;;  %v565_v12 = vld [vmem:[%s688_s1 + $0x60] sm:$0xff]  ;;  %v564_v14 = vld [vmem:[%s688_s1 + $0x58] sm:$0xff] }
   0xf   : > { %v473_v8 = vld [vmem:[%s169_s7 + $0x8] sm:$0xf]  ;;  %v552_v9 = vld [vmem:[%s169_s7 + $0x10] sm:$0xf0]  ;;  %v553_v19 = vld [vmem:[%s688_s1] sm:$0xff] }
  0x10   : > { %350 = vmatpush.bf16.msra.mxu0 %v559_v2  ;;  %384 = vmatpush.bf16.msra.mxu2 %v569_v5  ;;  %v474_v10 = vor.u32 %v552_v9, %v473_v8  ;;  %v555_v15 = vld [vmem:[%s688_s1 + $0x10] sm:$0xff]  ;;  %v554_v17 = vld [vmem:[%s688_s1 + $0x8] sm:$0xff]  ;;  %v561_v20 = vld [vmem:[%s688_s1 + $0x40] sm:$0xff] }
  0x11   : > { %364 = vmatpush.bf16.msra.mxu1 %v567_v3  ;;  %v563_v16 = vld [vmem:[%s688_s1 + $0x50] sm:$0xff]  ;;  %v562_v18 = vld [vmem:[%s688_s1 + $0x48] sm:$0xff]  ;;  %v465_v21 = vld [vmem:[%s169_s7] sm:$0xf] }
  0x12   : > { %v551_v22 = vld [vmem:[%s169_s7 + $0x8] sm:$0xf0]  ;;  %v550_v23 = vld [vmem:[%s169_s7 + $0x4] sm:$0xf]  ;;  %v467_v24 = vld [vmem:[%s169_s7 + $0xc] sm:$0xf0] }
  0x13   : > { %547 = vmatmul.msk.bf16.vlgmr.msra.gmra.mxu2 %vm345_vm0, %v474_v10  ;;  %v466_v25 = vor.u32 %v551_v22, %v465_v21  ;;  %v470_v26 = vor.u32 %v550_v23, %v467_v24  ;;  %v580_v27 = vld [vmem:[%s689_s2] ss:$0 sm:$0xff] }
  0x14   : > { %351 = vmatpush.bf16.msra.mxu0 %v558_v6 }
  0x15   : > { %365 = vmatpush.bf16.msra.mxu1 %v566_v7 }
  0x18   : > { %352 = vmatpush.bf16.msra.mxu0 %v557_v11 }
  0x19   : > { %366 = vmatpush.bf16.msra.mxu1 %v565_v12 }
  0x1c   : > { %353 = vmatpush.bf16.msra.mxu0 %v556_v13 }
  0x1d   : > { %367 = vmatpush.bf16.msra.mxu1 %v564_v14 }
  0x20   : > { %354 = vmatpush.bf16.msra.mxu0 %v555_v15 }
  0x21   : > { %368 = vmatpush.bf16.msra.mxu1 %v563_v16 }
  0x24   : > { %355 = vmatpush.bf16.msra.mxu0 %v554_v17 }
  0x25   : > { %369 = vmatpush.bf16.msra.mxu1 %v562_v18 }
  0x28   : > { %356 = vmatpush.bf16.msra.mxu0 %v553_v19 }
  0x29   : > { %370 = vmatpush.bf16.msra.mxu1 %v561_v20 }
  0x2b   : > { %357 = vmatmul.bf16.vlgmr.msra.gmra.mxu0 %v466_v25 }
  0x2c   : > { %371 = vmatmul.bf16.vlgmr.msra.gmra.mxu1 %v470_v26 }
  0x96   : > { %v386_v31 = vpop.f32.mrf.mxu2 }
  0x9e   : > { %v388_v40 = vpop.f32.mrf.mxu2 }
  0xa8   : > { %v358_v28 = vpop.f32.mrf.mxu0 }
  0xa9   : > { %v372_v29 = vpop.f32.mrf.mxu1  ;;  %v359_v30 = vadd.f32 %v580_v27, %v358_v28 }
  0xab   : > { %v373_v32 = vadd.f32 %v372_v29, %v359_v30 }
  0xad   : > { %v387_v33 = vadd.f32 %v386_v31, %v373_v32 }
  0xaf   : > { %v391_v34 = vmax.f32 %v387_v33, 0.0 }
  0xb0   : > { %v360_v35 = vpop.f32.mrf.mxu0 }
  0xb1   : > { %v393_v36 = vpack.c.bf16 %v391_v34, %v391_v34  ;;  %v361_v37 = vadd.f32 %v580_v27, %v360_v35  ;;  %v374_v38 = vpop.f32.mrf.mxu1 }
  0xb3   : > { %396 = vst.msk [vmem:[%s175_s8] sm:$0xf] %vm395_vm1, %v393_v36  ;;  %v375_v39 = vadd.f32 %v374_v38, %v361_v37 }
  0xb5   : > { %v389_v41 = vadd.f32 %v388_v40, %v375_v39 }
  0xb7   : > { %v392_v42 = vmax.f32 %v389_v41, 0.0 }
  0xb9   : > { %v394_v43 = vpack.c.bf16 %v392_v42, %v392_v42 }
  0xbb   : > { %397 = vst.msk [vmem:[%s175_s8 + $0x4] sm:$0xf] %vm395_vm1, %v394_v43 }
  0xbc PF: > { %s13_s12 = sadd.s32 1, %s587_s12  }
  0xbd   : > { %p10_p4 = scmp.ge.s32.totalorder %s13_s12, 4  }
  0xbf   :  { %12 = sbr.rel (!%p10_p4) target bundleno = 1 (0x1), region = 62 }

// kernel: tile.18
= control target key start
LH: loop header
LB: loop body
LE: loop exit
PB: predicated region body
PF: predicated region fallthrough
CT: control target
= control target key end

     0   :  { %s22_s0 = inlined_call_operand.vmem [shape: f32[8], index: 0, kind: input, shape index: {}]   ;;  %s23_s1 = inlined_call_operand.vmem [shape: f32[4,8], index: 1, kind: output, shape index: {}]  }
   0x1   :  { %v4_v0 = vld [vmem:[%s22_s0] ss:$0 sm:$0xff] }
   0x2   :  { %5 = vst [vmem:[%s23_s1] sm:$0xf] %v4_v0 }

// kernel: tile.19
= control target key start
LH: loop header
LB: loop body
LE: loop exit
PB: predicated region body
PF: predicated region fallthrough
CT: control target
= control target key end

     0   :  { %s37_s8 = smov 8   ;;  %s38_s9 = smov 16   ;;  %vm7_vm0 = vcmask 64512   ;;  %vm13_vm1 = vcmask 261312   ;;  %vm19_vm2 = vcmask 195712   ;;  %vm25_vm3 = vcmask 130112   ;;  %s55_s0 = inlined_call_operand.vmem [shape: f32[4,8], index: 0, kind: input, shape index: {}]   ;;  %s56_s1 = inlined_call_operand.vmem [shape: f32[1,32], index: 1, kind: output, shape index: {}]  }
   0x1   :  { %v4_v0 = vld [vmem:[%s55_s0] sm:$0xf]  ;;  %s36_s0 = smov 24  }
   0x2   :  { %5 = vst [vmem:[#allocation1] sm:$0xf] %v4_v0 }
   0x9   :  { %v10_v1 = vld [vmem:[#allocation1 + $0x3] sm:$0x1]   ;;  %v22_v2 = vld [vmem:[#allocation1 + $0x1] sm:$0x1]   ;;  %v16_v3 = vld [vmem:[#allocation1 + $0x2] sm:$0x1]  }
   0xa   :  { %11 = vrot.lane.b32.xlu0 %v10_v1, %s36_s0  ;;  %23 = vrot.lane.b32.xlu1 %v22_v2, %s37_s8  ;;  %v6_v4 = vld [vmem:[#allocation1] sm:$0x1]  }
   0xb   :  { %8 = vst.msk [vmem:[#allocation0] sm:$0x1] %vm7_vm0, %v6_v4  }
  0x12   :  { %17 = vrot.lane.b32.xlu0 %v16_v3, %s38_s9 }
  0x7c   :  { %v12_v5 = vpop.permute.xlu0 %11   ;;  %v24_v6 = vpop.permute.xlu1 %23  }
  0x7d   :  { %14 = vst.msk [vmem:[#allocation0] sm:$0x1] %vm13_vm1, %v12_v5  }
  0x84   :  { %v18_v7 = vpop.permute.xlu0 %17  }
  0x85   :  { %20 = vst.msk [vmem:[#allocation0] sm:$0x1] %vm19_vm2, %v18_v7  }
  0x86   :  { %26 = vst.msk [vmem:[#allocation0] sm:$0x1] %vm25_vm3, %v24_v6  }
  0x8d   :  { %v29_v8 = vld [vmem:[#allocation0] sm:$0x1] }
  0x8e   :  { %32 = vst [vmem:[%s56_s1] sm:$0x1] %v29_v8 }

// kernel: _lambda_.18
= control target key start
LH: loop header
LB: loop body
LE: loop exit
PB: predicated region body
PF: predicated region fallthrough
CT: control target
= control target key end

     0   :  { %s345_s12 = smov 0   ;;  %s371_s0 = inlined_call_operand.vmem [shape: bf16[32,32], index: 0, kind: input, shape index: {}]   ;;  %s372_s1 = inlined_call_operand.vmem [shape: bf16[32,64], index: 1, kind: input, shape index: {}]   ;;  %s373_s2 = inlined_call_operand.vmem [shape: f32[1,64], index: 2, kind: input, shape index: {}]   ;;  %s374_s3 = inlined_call_operand.vmem [shape: bf16[32,64], index: 3, kind: output, shape index: {}]  }
   0x1 LB: > { %s281_s13 = sadd.s32 4294967295, %s323_s12   ;;  %p285_p0 = scmp.ge.s32.totalorder %s323_s12, 1  ;;  %s323_s12 = sphi %s345_s12, %s13_s12  }
   0x2   : > { %p138_p1 = scmp.lt.s32.totalorder %s323_s12, 3 }
   0x4   : > { %p139_p2 = pnand %p285_p0, %p138_p1 }
   0x5   : > { %s286_s16 = sshll.u32 (!%p139_p2), %s281_s13, 1 }
   0x6   : > { %142 = sbr.rel (%p139_p2) target bundleno = 158 (0x9e), region = 32  ;;  %p163_p3 = scmp.lt.s32.totalorder (!%p139_p2), %s286_s16, 3 }
   0xb   : > { %v307_v0 = vld [vmem:[%s372_s1 + $0x8] sm:$0xff]  ;;  %v306_v1 = vld [vmem:[%s372_s1] sm:$0xff]  ;;  %s376_s16 = smov (!%p163_p3, %s286_s16), 3  ;;  %vm202_vm0 = vcmask 261120   ;;  %vm222_vm1 = vcmask 519168  }
   0xc   : > { %212 = vmatpush.bf16.msra.mxu0 %v307_v0  ;;  %s287_s19 = sshll.u32 %s376_s16, 2  ;;  %v316_v3 = vld [vmem:[%s373_s2] ss:$0 sm:$0xff] }
   0xd   : > { %s166_s22 = scalar_lea.vmem %s371_s0, %s287_s19  ;;  %s172_s27 = scalar_lea.vmem %s374_s3, %s287_s19 }
   0xe   : > { %v305_v2 = vld [vmem:[%s166_s22] sm:$0xff] }
  0x10   : > { %213 = vmatpush.bf16.msra.mxu0 %v306_v1 }
  0x13   : > { %302 = vmatmul.msk.bf16.vlgmr.msra.gmra.mxu0 %vm202_vm0, %v305_v2 }
  0x90   : > { %v215_v4 = vpop.f32.mrf.mxu0 }
  0x91   : > { %v216_v5 = vadd.f32 %v316_v3, %v215_v4 }
  0x93   : > { %v220_v6 = vpack.c.bf16 %v216_v5, %v216_v5 }
  0x95   : > { %223 = vst.msk [vmem:[%s172_s27] sm:$0xf] %vm222_vm1, %v220_v6 }
  0x98   : > { %v217_v7 = vpop.f32.mrf.mxu0 }
  0x99   : > { %v218_v8 = vadd.f32 %v316_v3, %v217_v7 }
  0x9b   : > { %v221_v9 = vpack.c.bf16 %v218_v8, %v218_v8 }
  0x9d   : > { %224 = vst.msk [vmem:[%s172_s27 + $0x4] sm:$0xf] %vm222_vm1, %v221_v9 }
  0x9e PF: > { %s13_s12 = sadd.s32 1, %s323_s12  }
  0x9f   : > { %p10_p4 = scmp.ge.s32.totalorder %s13_s12, 4  }
  0xa1   :  { %12 = sbr.rel (!%p10_p4) target bundleno = 1 (0x1), region = 62 }

// kernel: _lambda_.21
= control target key start
LH: loop header
LB: loop body
LE: loop exit
PB: predicated region body
PF: predicated region fallthrough
CT: control target
= control target key end

     0   :  { %s1020_s26 = smov 0   ;;  %s1169_s0 = inlined_call_operand.vmem [shape: bf16[128,16], index: 0, kind: input, shape index: {}]   ;;  %s1170_s1 = inlined_call_operand.vmem [shape: bf16[128,16], index: 1, kind: input, shape index: {}]   ;;  %s1171_s2 = inlined_call_operand.vmem [shape: bf16[16,8], index: 2, kind: input, shape index: {}]   ;;  %s1172_s3 = inlined_call_operand.vmem [shape: bf16[16,8], index: 3, kind: input, shape index: {}]   ;;  %s1173_s4 = inlined_call_operand.vmem [shape: f32[1,8], index: 4, kind: input, shape index: {}]   ;;  %s1174_s5 = inlined_call_operand.vmem [shape: f32[1,8], index: 5, kind: input, shape index: {}]   ;;  %s1175_s6 = inlined_call_operand.<no memory space> [shape: f32[1,1], index: 6, kind: input, shape index: {}]   ;;  %s1176_s7 = inlined_call_operand.vmem [shape: bf16[128,16], index: 7, kind: output, shape index: {}]  }
   0x1   :  { %v12_v0 = vstv %s1175_s6 }
   0x2   :  { %13 = vst [vmem:[#allocation2] sm:$0x1] %v12_v0 }
   0x3 LB: > { %s840_s27 = sadd.s32 4294967295, %s974_s26   ;;  %p844_p0 = scmp.ge.s32.totalorder %s974_s26, 1  ;;  %s974_s26 = sphi %s1020_s26, %s19_s26  }
   0x4   : > { %p251_p1 = scmp.lt.s32.totalorder %s974_s26, 3 }
   0x6   : > { %p252_p2 = pnand %p844_p0, %p251_p1 }
   0x7   : > { %s845_s8 = sshll.u32 (!%p252_p2), %s840_s27, 3 }
   0x8   : > { %255 = sbr.rel (%p252_p2) target bundleno = 453 (0x1c5), region = 48  ;;  %p289_p3 = scmp.lt.s32.totalorder (!%p252_p2), %s845_s8, 15 }
   0xd   : > { %v918_v1 = vld [vmem:[%s1172_s3] sm:$0xff]  ;;  %s1182_s8 = smov (!%p289_p3, %s845_s8), 15  ;;  %vm353_vm0 = vcmask 130048   ;;  %vm494_vm1 = vcmask 64512  }
   0xe   : > { %v917_v2 = vld [vmem:[%s1171_s2] sm:$0xff]  ;;  %373 = vmatpush.bf16.msra.mxu0 %v918_v1  ;;  %919 = vmatpush.bf16.msra.mxu2 %v918_v1  ;;  %s1034_s9 = sshll.u32 %s1182_s8, 2 }
   0xf   : > { %440 = vmatpush.bf16.msra.mxu1 %v917_v2  ;;  %920 = vmatpush.bf16.msra.mxu3 %v917_v2  ;;  %s1040_s12 = scalar_lea.vmem %s1170_s1, %s1034_s9  ;;  %s1046_s15 = scalar_lea.vmem %s1169_s0, %s1034_s9  ;;  %v933_v12 = vld [vmem:[%s1173_s4] ss:$0 sm:$0xff] }
  0x10   : > { %v913_v3 = vld [vmem:[%s1040_s12] sm:$0xff]  ;;  %v915_v4 = vld [vmem:[%s1040_s12 + $0x10] sm:$0xff]  ;;  %v914_v7 = vld [vmem:[%s1040_s12 + $0x8] sm:$0xff]  ;;  %s1143_s22 = scalar_lea.vmem %s1176_s7, %s1034_s9 }
  0x11   : > { %v909_v5 = vld [vmem:[%s1046_s15] sm:$0xff]  ;;  %v911_v6 = vld [vmem:[%s1046_s15 + $0x10] sm:$0xff]  ;;  %871 = vmatmul.msk.bf16.vlgmr.msra.gmra.mxu0 %vm353_vm0, %v913_v3  ;;  %873 = vmatmul.msk.bf16.vlgmr.msra.gmra.mxu2 %vm353_vm0, %v915_v4  ;;  %v916_v8 = vld [vmem:[%s1040_s12 + $0x18] sm:$0xff] }
  0x12   : > { %895 = vmatmul.msk.bf16.vlgmr.msra.gmra.mxu1 %vm353_vm0, %v909_v5  ;;  %897 = vmatmul.msk.bf16.vlgmr.msra.gmra.mxu3 %vm353_vm0, %v911_v6  ;;  %v910_v9 = vld [vmem:[%s1046_s15 + $0x8] sm:$0xff]  ;;  %v912_v10 = vld [vmem:[%s1046_s15 + $0x18] sm:$0xff]  ;;  %v934_v16 = vld [vmem:[%s1174_s5] ss:$0 sm:$0xff]  ;;  %v976_v6 = vmov 0  }
  0x13   : > { %v1078_v5 = vld [vmem:[#allocation2] ss:$0 sm:$0xff]  ;;  %930 = vset.pattern.permute.xlu2 %v976_v6  ;;  %931 = vset.pattern.permute.xlu0 %v976_v6 }
  0x14   : > { %932 = vset.pattern.permute.xlu1 %v976_v6 }
  0x21   : > { %872 = vmatmul.msk.bf16.gmra.mxu0 %vm353_vm0, %v914_v7  ;;  %874 = vmatmul.msk.bf16.gmra.mxu2 %vm353_vm0, %v916_v8 }
  0x22   : > { %896 = vmatmul.msk.bf16.gmra.mxu1 %vm353_vm0, %v910_v9  ;;  %898 = vmatmul.msk.bf16.gmra.mxu3 %vm353_vm0, %v912_v10 }
  0x8e   : > { %v375_v11 = vpop.f32.mrf.mxu0 }
  0x8f   : > { %v442_v13 = vpop.f32.mrf.mxu1 }
  0x90   : > { %v443_v14 = vadd.f32 %v442_v13, %v375_v11 }
  0x92   : > { %v466_v15 = vadd.f32 %v933_v12, %v443_v14 }
  0x94   : > { %v474_v17 = vmax.f32 %v466_v15, 0.0  ;;  %v385_v18 = vpop.f32.mrf.mxu2 }
  0x95   : > { %v452_v19 = vpop.f32.mrf.mxu3 }
  0x96   : > { %v453_v20 = vadd.f32 %v452_v19, %v385_v18  ;;  %v377_v21 = vpop.f32.mrf.mxu0  ;;  %v486_v22 = vmul.f32 %v934_v16, %v474_v17 }
  0x97   : > { %v444_v23 = vpop.f32.mrf.mxu1 }
  0x98   : > { %v470_v24 = vadd.f32 %v933_v12, %v453_v20  ;;  %v445_v25 = vadd.f32 %v444_v23, %v377_v21  ;;  %v495_v26 = vsel %vm494_vm1, %v486_v22, 0.0 }
  0x99   : > { %496 = vadd.xlane.f32.xlu0 %v495_v26 }
  0x9a   : > { %v478_v27 = vmax.f32 %v470_v24, 0.0  ;;  %v467_v28 = vadd.f32 %v933_v12, %v445_v25 }
  0x9c   : > { %v475_v29 = vmax.f32 %v467_v28, 0.0  ;;  %v387_v30 = vpop.f32.mrf.mxu2  ;;  %v490_v31 = vmul.f32 %v934_v16, %v478_v27 }
  0x9d   : > { %v454_v32 = vpop.f32.mrf.mxu3 }
  0x9e   : > { %v455_v33 = vadd.f32 %v454_v32, %v387_v30  ;;  %v380_v34 = vpop.f32.mrf.mxu0  ;;  %v507_v35 = vsel %vm494_vm1, %v490_v31, 0.0  ;;  %v487_v36 = vmul.f32 %v934_v16, %v475_v29 }
  0x9f   : > { %508 = vadd.xlane.f32.xlu2 %v507_v35  ;;  %v447_v37 = vpop.f32.mrf.mxu1 }
  0xa0   : > { %v471_v38 = vadd.f32 %v933_v12, %v455_v33  ;;  %v448_v39 = vadd.f32 %v447_v37, %v380_v34  ;;  %v498_v40 = vsel %vm494_vm1, %v487_v36, 0.0 }
  0xa1   : > { %499 = vadd.xlane.f32.xlu0 %v498_v40 }
  0xa2   : > { %v479_v41 = vmax.f32 %v471_v38, 0.0  ;;  %v468_v42 = vadd.f32 %v933_v12, %v448_v39 }
  0xa4   : > { %v476_v43 = vmax.f32 %v468_v42, 0.0  ;;  %v390_v44 = vpop.f32.mrf.mxu2  ;;  %v491_v45 = vmul.f32 %v934_v16, %v479_v41 }
  0xa5   : > { %v457_v46 = vpop.f32.mrf.mxu3 }
  0xa6   : > { %v458_v47 = vadd.f32 %v457_v46, %v390_v44  ;;  %v382_v48 = vpop.f32.mrf.mxu0  ;;  %v510_v49 = vsel %vm494_vm1, %v491_v45, 0.0  ;;  %v488_v50 = vmul.f32 %v934_v16, %v476_v43 }
  0xa7   : > { %511 = vadd.xlane.f32.xlu2 %v510_v49  ;;  %v449_v51 = vpop.f32.mrf.mxu1 }
  0xa8   : > { %v472_v52 = vadd.f32 %v933_v12, %v458_v47  ;;  %v450_v53 = vadd.f32 %v449_v51, %v382_v48  ;;  %v501_v54 = vsel %vm494_vm1, %v488_v50, 0.0 }
  0xa9   : > { %502 = vadd.xlane.f32.xlu1 %v501_v54 }
  0xaa   : > { %v480_v55 = vmax.f32 %v472_v52, 0.0  ;;  %v469_v56 = vadd.f32 %v933_v12, %v450_v53 }
  0xac   : > { %v477_v57 = vmax.f32 %v469_v56, 0.0  ;;  %v392_v58 = vpop.f32.mrf.mxu2  ;;  %v492_v59 = vmul.f32 %v934_v16, %v480_v55 }
  0xad   : > { %v459_v60 = vpop.f32.mrf.mxu3 }
  0xae   : > { %v460_v61 = vadd.f32 %v459_v60, %v392_v58  ;;  %v513_v62 = vsel %vm494_vm1, %v492_v59, 0.0  ;;  %v489_v63 = vmul.f32 %v934_v16, %v477_v57 }
  0xaf   : > { %514 = vadd.xlane.f32.xlu0 %v513_v62 }
  0xb0   : > { %v473_v0 = vadd.f32 %v933_v12, %v460_v61  ;;  %v504_v1 = vsel %vm494_vm1, %v489_v63, 0.0 }
  0xb1   : > { %505 = vadd.xlane.f32.xlu1 %v504_v1 }
  0xb2   : > { %v481_v2 = vmax.f32 %v473_v0, 0.0 }
  0xb4   : > { %v493_v3 = vmul.f32 %v934_v16, %v481_v2  ;;  %v307_v2 = vld [vmem:[%s1046_s15] sm:$0xff]  }
  0xb6   : > { %v516_v4 = vsel %vm494_vm1, %v493_v3, 0.0 }
  0xb9   : > { %517 = vadd.xlane.f32.xlu1 %v516_v4 }
 0x10c   : > { %v497_v7 = vpop.xlane.xlu0 %496 }
 0x10d   : > { %v523_v8 = vadd.f32 %v1078_v5, %v497_v7 }
 0x10f   : > { %v899_v9 = vmul.f32 -1.442695, %v523_v8 }
 0x111   : > { %936 = vpow2.f32 %v899_v9 }
 0x112   : > { %v509_v10 = vpop.xlane.xlu2 %508 }
 0x113   : > { %v527_v11 = vadd.f32 %v1078_v5, %v509_v10 }
 0x114   : > { %v500_v12 = vpop.xlane.xlu0 %499 }
 0x115   : > { %v903_v13 = vmul.f32 -1.442695, %v527_v11  ;;  %v524_v14 = vadd.f32 %v1078_v5, %v500_v12 }
 0x117   : > { %v937_v15 = vpop.eup %936  ;;  %938 = vpow2.f32 %v903_v13  ;;  %v900_v16 = vmul.f32 -1.442695, %v524_v14 }
 0x118   : > { %v555_v17 = vadd.f32 1.0, %v937_v15 }
 0x119   : > { %940 = vpow2.f32 %v900_v16 }
 0x11a   : > { %942 = vrcp.f32 %v555_v17  ;;  %v512_v18 = vpop.xlane.xlu2 %511  ;;  %v572_v34 = vand.u32 2147483647, %v555_v17  ;;  %v574_v35 = vand.u32 2147483648, %v555_v17  ;;  %vm568_vm3 = vweird.f32 %v555_v17 }
 0x11b   : > { %v528_v19 = vadd.f32 %v1078_v5, %v512_v18 }
 0x11c   : > { %v503_v20 = vpop.xlane.xlu1 %502  ;;  %vm573_vm5 = vcmp.eq.f32.partialorder %v572_v34, 8.507059e+37  ;;  %v575_v48 = vor.u32 1.1754944e-38, %v574_v35 }
 0x11d   : > { %v939_v21 = vpop.eup %938  ;;  %v904_v22 = vmul.f32 -1.442695, %v528_v19  ;;  %v525_v23 = vadd.f32 %v1078_v5, %v503_v20 }
 0x11e   : > { %v559_v24 = vadd.f32 1.0, %v939_v21 }
 0x11f   : > { %v941_v25 = vpop.eup %940  ;;  %944 = vpow2.f32 %v904_v22  ;;  %v901_v26 = vmul.f32 -1.442695, %v525_v23 }
 0x120   : > { %v943_v27 = vpop.eup %942  ;;  %946 = vrcp.f32 %v559_v24  ;;  %v1085_v28 = vadd.f32 1.0, %v941_v25  ;;  %v632_v53 = vand.u32 2147483647, %v559_v24  ;;  %v634_v54 = vand.u32 2147483648, %v559_v24 }
 0x121   : > { %948 = vpow2.f32 %v901_v26  ;;  %v564_v29 = vmul.f32 %v943_v27, %v555_v17  ;;  %vm569_vm2 = vweird.f32 %v943_v27  ;;  %vm628_vm7 = vweird.f32 %v559_v24 }
 0x122   : > { %950 = vrcp.f32 %v1085_v28  ;;  %v515_v30 = vpop.xlane.xlu0 %514  ;;  %vm570_vm4 = vmor %vm568_vm3, %vm569_vm2  ;;  %v587_v58 = vand.u32 2147483647, %v1085_v28  ;;  %v589_v59 = vand.u32 2147483648, %v1085_v28  ;;  %vm1106_vm10 = vcmp.eq.f32.partialorder %v632_v53, 8.507059e+37 }
 0x123   : > { %v529_v31 = vadd.f32 %v1078_v5, %v515_v30  ;;  %v565_v32 = vsub.f32 1.0, %v564_v29  ;;  %v635_v4 = vor.u32 1.1754944e-38, %v634_v54  ;;  %vm583_vm11 = vweird.f32 %v1085_v28 }
 0x124   : > { %v506_v33 = vpop.xlane.xlu1 %505  ;;  %vm588_vm13 = vcmp.eq.f32.partialorder %v587_v58, 8.507059e+37  ;;  %v590_v12 = vor.u32 1.1754944e-38, %v589_v59 }
 0x125   : > { %v945_v36 = vpop.eup %944  ;;  %v905_v37 = vmul.f32 -1.442695, %v529_v31  ;;  %v526_v38 = vadd.f32 %v1078_v5, %v506_v33  ;;  %v566_v39 = vmul.f32 %v943_v27, %v565_v32 }
 0x126   : > { %v947_v40 = vpop.eup %946  ;;  %v1090_v41 = vadd.f32 1.0, %v945_v36 }
 0x127   : > { %v949_v42 = vpop.eup %948  ;;  %952 = vpow2.f32 %v905_v37  ;;  %v902_v43 = vmul.f32 -1.442695, %v526_v38  ;;  %v567_v44 = vadd.f32 %v943_v27, %v566_v39  ;;  %v624_v45 = vmul.f32 %v947_v40, %v559_v24 }
 0x128   : > { %v951_v46 = vpop.eup %950  ;;  %954 = vrcp.f32 %v1090_v41  ;;  %v1093_v47 = vadd.f32 1.0, %v949_v42  ;;  %vm629_vm6 = vweird.f32 %v947_v40  ;;  %v649_v18 = vand.u32 2147483648, %v1090_v41 }
 0x129   : > { %956 = vpow2.f32 %v902_v43  ;;  %v571_v49 = vsel %vm570_vm4, %v943_v27, %v567_v44  ;;  %v625_v50 = vsub.f32 1.0, %v624_v45  ;;  %v579_v51 = vmul.f32 %v951_v46, %v1085_v28  ;;  %vm1102_vm9 = vmor %vm628_vm7, %vm629_vm6 }
 0x12a   : > { %958 = vrcp.f32 %v1093_v47  ;;  %v576_v52 = vsel %vm573_vm5, %v575_v48, %v571_v49  ;;  %vm584_vm8 = vweird.f32 %v951_v46  ;;  %v647_v20 = vand.u32 2147483647, %v1090_v41 }
 0x12b   : > { %701 = vperm.xlu2 %930, %v576_v52   ;;  %v626_v55 = vmul.f32 %v947_v40, %v625_v50  ;;  %v580_v56 = vsub.f32 1.0, %v579_v51  ;;  %vm585_vm12 = vmor %vm583_vm11, %vm584_vm8  ;;  %vm643_vm15 = vweird.f32 %v1090_v41  ;;  %v650_v25 = vor.u32 1.1754944e-38, %v649_v18  ;;  %v310_v18 = vld [vmem:[%s1046_s15 + $0x8] sm:$0xff]  }
 0x12c   : > { %v518_v57 = vpop.xlane.xlu1 %517  ;;  %vm648_vm1 = vcmp.eq.f32.partialorder %v647_v20, 8.507059e+37  ;;  %v604_v34 = vand.u32 2147483648, %v1093_v47  ;;  %vm598_vm3 = vweird.f32 %v1093_v47  ;;  %v602_v35 = vand.u32 2147483647, %v1093_v47 }
 0x12d   : > { %v953_v60 = vpop.eup %952  ;;  %v530_v61 = vadd.f32 %v1078_v5, %v518_v57  ;;  %v627_v62 = vadd.f32 %v947_v40, %v626_v55  ;;  %v581_v63 = vmul.f32 %v951_v46, %v580_v56  ;;  %v686_v20 = vunpack.c.h.bf16 %v310_v18 }
 0x12e   : > { %v955_v0 = vpop.eup %954  ;;  %v1100_v1 = vadd.f32 1.0, %v953_v60  ;;  %v605_v42 = vor.u32 1.1754944e-38, %v604_v34  ;;  %vm603_vm6 = vcmp.eq.f32.partialorder %v602_v35, 8.507059e+37 }
 0x12f   : > { %v957_v6 = vpop.eup %956  ;;  %v906_v7 = vmul.f32 -1.442695, %v530_v61  ;;  %v631_v5 = vsel %vm1102_vm9, %v947_v40, %v627_v62  ;;  %v582_v8 = vadd.f32 %v951_v46, %v581_v63  ;;  %v639_v9 = vmul.f32 %v955_v0, %v1090_v41 }
 0x130   : > { %v959_v10 = vpop.eup %958  ;;  %960 = vrcp.f32 %v1100_v1  ;;  %v558_v11 = vadd.f32 1.0, %v957_v6  ;;  %v636_v16 = vsel %vm1106_vm10, %v635_v4, %v631_v5  ;;  %vm644_vm14 = vweird.f32 %v955_v0  ;;  %v319_v5 = vld [vmem:[%s1040_s12 + $0x10] sm:$0xff]  }
 0x131   : > { %962 = vpow2.f32 %v906_v7  ;;  %v586_v13 = vsel %vm585_vm12, %v951_v46, %v582_v8  ;;  %v640_v14 = vsub.f32 1.0, %v639_v9  ;;  %v594_v15 = vmul.f32 %v959_v10, %v1093_v47  ;;  %vm645_vm0 = vmor %vm643_vm15, %vm644_vm14  ;;  %v311_v9 = vld [vmem:[%s1046_s15 + $0x10] sm:$0xff]  }
 0x132   : > { %964 = vrcp.f32 %v558_v11  ;;  %v591_v17 = vsel %vm588_vm13, %v590_v12, %v586_v13  ;;  %vm599_vm2 = vweird.f32 %v959_v10  ;;  %v619_v38 = vand.u32 2147483648, %v558_v11 }
 0x133   : > { %721 = vperm.xlu2 %930, %v636_v16   ;;  %706 = vperm.xlu0 %931, %v591_v17   ;;  %v641_v19 = vmul.f32 %v955_v0, %v640_v14  ;;  %v595_v21 = vsub.f32 1.0, %v594_v15  ;;  %vm600_vm4 = vmor %vm598_vm3, %vm599_vm2  ;;  %v617_v41 = vand.u32 2147483647, %v558_v11  ;;  %vm613_vm7 = vweird.f32 %v558_v11  ;;  %v318_v17 = vld [vmem:[%s1040_s12 + $0x8] sm:$0xff]  }
 0x134   : > { %v620_v48 = vor.u32 1.1754944e-38, %v619_v38  ;;  %vm658_vm11 = vweird.f32 %v1100_v1  ;;  %v664_v54 = vand.u32 2147483648, %v1100_v1  ;;  %v662_v57 = vand.u32 2147483647, %v1100_v1 }
 0x135   : > { %v642_v22 = vadd.f32 %v955_v0, %v641_v19  ;;  %v596_v23 = vmul.f32 %v959_v10, %v595_v21  ;;  %vm618_vm9 = vcmp.eq.f32.partialorder %v617_v41, 8.507059e+37  ;;  %v683_v4 = vunpack.c.l.bf16 %v307_v2 }
 0x136   : > { %v1122_v24 = vpop.eup %960  ;;  %v665_v61 = vor.u32 1.1754944e-38, %v664_v54  ;;  %vm763_vm2 = vcmask 125952   ;;  %v687_v12 = vunpack.c.l.bf16 %v311_v9  ;;  %v694_v19 = vunpack.c.h.bf16 %v318_v17 }
 0x137   : > { %v963_v26 = vpop.eup %962  ;;  %v646_v27 = vsel %vm645_vm0, %v955_v0, %v642_v22  ;;  %v654_v28 = vmul.f32 %v1122_v24, %v1100_v1  ;;  %v597_v32 = vadd.f32 %v959_v10, %v596_v23  ;;  %vm659_vm10 = vweird.f32 %v1122_v24  ;;  %v315_v1 = vld [vmem:[%s1040_s12] sm:$0xff]   ;;  %v321_v23 = vld [vmem:[%s1040_s12 + $0x18] sm:$0xff]  }
 0x138   : > { %v965_v29 = vpop.eup %964  ;;  %v562_v30 = vadd.f32 1.0, %v963_v26  ;;  %v651_v31 = vsel %vm648_vm1, %v650_v25, %v646_v27  ;;  %vm660_vm13 = vmor %vm658_vm11, %vm659_vm10  ;;  %vm663_vm1 = vcmp.eq.f32.partialorder %v662_v57, 8.507059e+37  ;;  %v691_v3 = vunpack.c.l.bf16 %v315_v1  ;;  %v313_v25 = vld [vmem:[%s1046_s15 + $0x18] sm:$0xff]  }
 0x139   : > { %726 = vperm.xlu1 %932, %v651_v31   ;;  %v609_v33 = vmul.f32 %v965_v29, %v558_v11  ;;  %v655_v37 = vsub.f32 1.0, %v654_v28  ;;  %v601_v39 = vsel %vm600_vm4, %v959_v10, %v597_v32  ;;  %vm614_vm5 = vweird.f32 %v965_v29 }
 0x13a   : > { %966 = vrcp.f32 %v562_v30  ;;  %v606_v46 = vsel %vm603_vm6, %v605_v42, %v601_v39  ;;  %vm615_vm8 = vmor %vm613_vm7, %vm614_vm5  ;;  %v679_v53 = vand.u32 2147483648, %v562_v30  ;;  %v677_v56 = vand.u32 2147483647, %v562_v30 }
 0x13b   : > { %v610_v36 = vsub.f32 1.0, %v609_v33  ;;  %v656_v44 = vmul.f32 %v1122_v24, %v655_v37  ;;  %vm673_vm14 = vweird.f32 %v562_v30  ;;  %v695_v11 = vunpack.c.l.bf16 %v319_v5 }
 0x13c   : > { %v680_v60 = vor.u32 1.1754944e-38, %v679_v53  ;;  %vm678_vm0 = vcmp.eq.f32.partialorder %v677_v56, 8.507059e+37  ;;  %v697_v27 = vunpack.c.l.bf16 %v321_v23  ;;  %v692_v28 = vunpack.c.h.bf16 %v315_v1 }
 0x13d   : > { %v611_v40 = vmul.f32 %v965_v29, %v610_v36  ;;  %v657_v52 = vadd.f32 %v1122_v24, %v656_v44  ;;  %v696_v37 = vunpack.c.h.bf16 %v319_v5 }
 0x13f   : > { %v612_v43 = vadd.f32 %v965_v29, %v611_v40  ;;  %v661_v59 = vsel %vm660_vm13, %v1122_v24, %v657_v52  ;;  %v688_v40 = vunpack.c.h.bf16 %v311_v9  ;;  %v690_v52 = vunpack.c.h.bf16 %v313_v25 }
 0x140   : > { %v967_v45 = vpop.eup %966  ;;  %v666_v0 = vsel %vm663_vm1, %v665_v61, %v661_v59 }
 0x141   : > { %711 = vperm.xlu1 %932, %v606_v46   ;;  %v616_v47 = vsel %vm615_vm8, %v965_v29, %v612_v43  ;;  %v669_v49 = vmul.f32 %v967_v45, %v562_v30  ;;  %vm674_vm12 = vweird.f32 %v967_v45  ;;  %v689_v29 = vunpack.c.l.bf16 %v313_v25 }
 0x142   : > { %v621_v50 = vsel %vm618_vm9, %v620_v48, %v616_v47  ;;  %vm675_vm15 = vmor %vm673_vm14, %vm674_vm12  ;;  %v684_v30 = vunpack.c.h.bf16 %v307_v2  ;;  %v685_v46 = vunpack.c.l.bf16 %v310_v18 }
 0x143   : > { %716 = vperm.xlu2 %930, %v621_v50   ;;  %v670_v51 = vsub.f32 1.0, %v669_v49 }
 0x145   : > { %v671_v55 = vmul.f32 %v967_v45, %v670_v51  ;;  %v698_v51 = vunpack.c.h.bf16 %v321_v23 }
 0x147   : > { %v672_v58 = vadd.f32 %v967_v45, %v671_v55 }
 0x149   : > { %v676_v62 = vsel %vm675_vm15, %v967_v45, %v672_v58  ;;  %v693_v45 = vunpack.c.l.bf16 %v318_v17 }
 0x14a   : > { %v681_v63 = vsel %vm678_vm0, %v680_v60, %v676_v62 }
 0x14b   : > { %736 = vperm.xlu1 %932, %v681_v63   ;;  %731 = vperm.xlu2 %930, %v666_v0  }
 0x185   : > { %v702_v6 = vpop.permute.xlu2 %701 }
 0x186   : > { %v739_v7 = vmul.f32 %v702_v6, %v691_v3 }
 0x188   : > { %v747_v8 = vadd.f32 %v739_v7, %v683_v4 }
 0x18a   : > { %v755_v10 = vpack.c.bf16 %v747_v8, %v747_v8 }
 0x18c   : > { %764 = vst.msk [vmem:[%s1143_s22] sm:$0xf] %vm763_vm2, %v755_v10 }
 0x18d   : > { %v722_v13 = vpop.permute.xlu2 %721 }
 0x18e   : > { %v743_v14 = vmul.f32 %v722_v13, %v695_v11 }
 0x190   : > { %v751_v15 = vadd.f32 %v743_v14, %v687_v12 }
 0x192   : > { %v759_v16 = vpack.c.bf16 %v751_v15, %v751_v15 }
 0x194   : > { %768 = vst.msk [vmem:[%s1143_s22 + $0x10] sm:$0xf] %vm763_vm2, %v759_v16 }
 0x19d   : > { %v717_v21 = vpop.permute.xlu2 %716 }
 0x19e   : > { %v742_v22 = vmul.f32 %v717_v21, %v694_v19 }
 0x1a0   : > { %v750_v24 = vadd.f32 %v742_v22, %v686_v20 }
 0x1a2   : > { %v758_v26 = vpack.c.bf16 %v750_v24, %v750_v24 }
 0x1a4   : > { %767 = vst.msk [vmem:[%s1143_s22 + $0xc] sm:$0xf] %vm763_vm2, %v758_v26 }
 0x1a5   : > { %v732_v31 = vpop.permute.xlu2 %731  ;;  %v707_v32 = vpop.permute.xlu0 %706 }
 0x1a6   : > { %v745_v33 = vmul.f32 %v732_v31, %v697_v27  ;;  %v740_v34 = vmul.f32 %v707_v32, %v692_v28 }
 0x1a8   : > { %v753_v35 = vadd.f32 %v745_v33, %v689_v29  ;;  %v748_v36 = vadd.f32 %v740_v34, %v684_v30 }
 0x1aa   : > { %v761_v38 = vpack.c.bf16 %v753_v35, %v753_v35  ;;  %v756_v39 = vpack.c.bf16 %v748_v36, %v748_v36 }
 0x1ab   : > { %v727_v41 = vpop.permute.xlu1 %726 }
 0x1ac   : > { %770 = vst.msk [vmem:[%s1143_s22 + $0x18] sm:$0xf] %vm763_vm2, %v761_v38  ;;  %v744_v42 = vmul.f32 %v727_v41, %v696_v37 }
 0x1ad   : > { %765 = vst.msk [vmem:[%s1143_s22 + $0x4] sm:$0xf] %vm763_vm2, %v756_v39 }
 0x1ae   : > { %v752_v43 = vadd.f32 %v744_v42, %v688_v40 }
 0x1b0   : > { %v760_v44 = vpack.c.bf16 %v752_v43, %v752_v43 }
 0x1b2   : > { %769 = vst.msk [vmem:[%s1143_s22 + $0x14] sm:$0xf] %vm763_vm2, %v760_v44 }
 0x1b3   : > { %v712_v48 = vpop.permute.xlu1 %711 }
 0x1b4   : > { %v741_v47 = vmul.f32 %v712_v48, %v693_v45 }
 0x1b6   : > { %v749_v49 = vadd.f32 %v741_v47, %v685_v46 }
 0x1b8   : > { %v757_v50 = vpack.c.bf16 %v749_v49, %v749_v49 }
 0x1ba   : > { %766 = vst.msk [vmem:[%s1143_s22 + $0x8] sm:$0xf] %vm763_vm2, %v757_v50 }
 0x1bd   : > { %v737_v53 = vpop.permute.xlu1 %736 }
 0x1be   : > { %v746_v54 = vmul.f32 %v737_v53, %v698_v51 }
 0x1c0   : > { %v754_v55 = vadd.f32 %v746_v54, %v690_v52 }
 0x1c2   : > { %v762_v56 = vpack.c.bf16 %v754_v55, %v754_v55 }
 0x1c4   : > { %771 = vst.msk [vmem:[%s1143_s22 + $0x1c] sm:$0xf] %vm763_vm2, %v762_v56 }
 0x1c5 PF: > { %s19_s26 = sadd.s32 1, %s974_s26  }
 0x1c6   : > { %p16_p4 = scmp.ge.s32.totalorder %s19_s26, 4  }
 0x1c8   :  { %18 = sbr.rel (!%p16_p4) target bundleno = 3 (0x3), region = 81 }

// kernel: _lambda_.22
= control target key start
LH: loop header
LB: loop body
LE: loop exit
PB: predicated region body
PF: predicated region fallthrough
CT: control target
= control target key end

     0   :  { %s410_s12 = smov 0   ;;  %s441_s0 = inlined_call_operand.vmem [shape: bf16[128,16], index: 0, kind: input, shape index: {}]   ;;  %s442_s1 = inlined_call_operand.vmem [shape: bf16[16,32], index: 1, kind: input, shape index: {}]   ;;  %s443_s2 = inlined_call_operand.vmem [shape: f32[1,32], index: 2, kind: input, shape index: {}]   ;;  %s444_s3 = inlined_call_operand.vmem [shape: bf16[128,32], index: 3, kind: output, shape index: {}]  }
   0x1 LB: > { %s330_s13 = sadd.s32 4294967295, %s388_s12   ;;  %p334_p0 = scmp.ge.s32.totalorder %s388_s12, 1  ;;  %s388_s12 = sphi %s410_s12, %s13_s12  }
   0x2   : > { %p138_p1 = scmp.lt.s32.totalorder %s388_s12, 3 }
   0x4   : > { %p139_p2 = pnand %p334_p0, %p138_p1 }
   0x5   : > { %s335_s16 = sshll.u32 (!%p139_p2), %s330_s13, 3 }
   0x6   : > { %142 = sbr.rel (%p139_p2) target bundleno = 162 (0xa2), region = 32  ;;  %p163_p3 = scmp.lt.s32.totalorder (!%p139_p2), %s335_s16, 15 }
   0xb   : > { %v369_v0 = vld [vmem:[%s442_s1] sm:$0xff]  ;;  %s446_s16 = smov (!%p163_p3, %s335_s16), 15  ;;  %vm215_vm0 = vcmask 130048   ;;  %vm265_vm1 = vcmask 257024  }
   0xc   : > { %235 = vmatpush.bf16.msra.mxu0 %v369_v0  ;;  %370 = vmatpush.bf16.msra.mxu1 %v369_v0  ;;  %s336_s17 = sshll.u32 %s446_s16, 2  ;;  %v381_v5 = vld [vmem:[%s443_s2] ss:$0 sm:$0xff] }
   0xd   : > { %371 = vmatpush.bf16.msra.mxu2 %v369_v0  ;;  %372 = vmatpush.bf16.msra.mxu3 %v369_v0  ;;  %s166_s20 = scalar_lea.vmem %s441_s0, %s336_s17  ;;  %s172_s25 = scalar_lea.vmem %s444_s3, %s336_s17 }
   0xe   : > { %v365_v1 = vld [vmem:[%s166_s20] sm:$0xff]  ;;  %v366_v2 = vld [vmem:[%s166_s20 + $0x8] sm:$0xff]  ;;  %v367_v3 = vld [vmem:[%s166_s20 + $0x10] sm:$0xff] }
   0xf   : > { %v368_v4 = vld [vmem:[%s166_s20 + $0x18] sm:$0xff]  ;;  %359 = vmatmul.msk.bf16.vlgmr.msra.gmra.mxu0 %vm215_vm0, %v365_v1  ;;  %360 = vmatmul.msk.bf16.vlgmr.msra.gmra.mxu1 %vm215_vm0, %v366_v2 }
  0x10   : > { %361 = vmatmul.msk.bf16.vlgmr.msra.gmra.mxu2 %vm215_vm0, %v367_v3  ;;  %362 = vmatmul.msk.bf16.vlgmr.msra.gmra.mxu3 %vm215_vm0, %v368_v4 }
  0x8c   : > { %v237_v6 = vpop.f32.mrf.mxu0  ;;  %v242_v7 = vpop.f32.mrf.mxu1 }
  0x8d   : > { %v238_v8 = vadd.f32 %v381_v5, %v237_v6  ;;  %v243_v9 = vadd.f32 %v381_v5, %v242_v7 }
  0x8f   : > { %v257_v10 = vpack.c.bf16 %v238_v8, %v238_v8  ;;  %v259_v11 = vpack.c.bf16 %v243_v9, %v243_v9 }
  0x91   : > { %266 = vst.msk [vmem:[%s172_s25] sm:$0xf] %vm265_vm1, %v257_v10 }
  0x92   : > { %268 = vst.msk [vmem:[%s172_s25 + $0x8] sm:$0xf] %vm265_vm1, %v259_v11 }
  0x93   : > { %v247_v12 = vpop.f32.mrf.mxu2  ;;  %v252_v13 = vpop.f32.mrf.mxu3 }
  0x94   : > { %v248_v14 = vadd.f32 %v381_v5, %v247_v12  ;;  %v253_v15 = vadd.f32 %v381_v5, %v252_v13  ;;  %v239_v16 = vpop.f32.mrf.mxu0  ;;  %v244_v17 = vpop.f32.mrf.mxu1 }
  0x95   : > { %v240_v18 = vadd.f32 %v381_v5, %v239_v16  ;;  %v245_v19 = vadd.f32 %v381_v5, %v244_v17 }
  0x96   : > { %v261_v20 = vpack.c.bf16 %v248_v14, %v248_v14  ;;  %v263_v21 = vpack.c.bf16 %v253_v15, %v253_v15 }
  0x97   : > { %v258_v22 = vpack.c.bf16 %v240_v18, %v240_v18  ;;  %v260_v23 = vpack.c.bf16 %v245_v19, %v245_v19 }
  0x98   : > { %270 = vst.msk [vmem:[%s172_s25 + $0x10] sm:$0xf] %vm265_vm1, %v261_v20 }
  0x99   : > { %272 = vst.msk [vmem:[%s172_s25 + $0x18] sm:$0xf] %vm265_vm1, %v263_v21 }
  0x9a   : > { %267 = vst.msk [vmem:[%s172_s25 + $0x4] sm:$0xf] %vm265_vm1, %v258_v22 }
  0x9b   : > { %269 = vst.msk [vmem:[%s172_s25 + $0xc] sm:$0xf] %vm265_vm1, %v260_v23  ;;  %v249_v24 = vpop.f32.mrf.mxu2  ;;  %v254_v25 = vpop.f32.mrf.mxu3 }
  0x9c   : > { %v250_v26 = vadd.f32 %v381_v5, %v249_v24  ;;  %v255_v27 = vadd.f32 %v381_v5, %v254_v25 }
  0x9e   : > { %v262_v28 = vpack.c.bf16 %v250_v26, %v250_v26  ;;  %v264_v29 = vpack.c.bf16 %v255_v27, %v255_v27 }
  0xa0   : > { %271 = vst.msk [vmem:[%s172_s25 + $0x14] sm:$0xf] %vm265_vm1, %v262_v28 }
  0xa1   : > { %273 = vst.msk [vmem:[%s172_s25 + $0x1c] sm:$0xf] %vm265_vm1, %v264_v29 }
  0xa2 PF: > { %s13_s12 = sadd.s32 1, %s388_s12  }
  0xa3   : > { %p10_p4 = scmp.ge.s32.totalorder %s13_s12, 4  }
  0xa5   :  { %12 = sbr.rel (!%p10_p4) target bundleno = 1 (0x1), region = 62 }

// kernel: _lambda_.23
= control target key start
LH: loop header
LB: loop body
LE: loop exit
PB: predicated region body
PF: predicated region fallthrough
CT: control target
= control target key end

     0   :  { %s806_s12 = smov 0   ;;  %s982_s0 = inlined_call_operand.vmem [shape: bf16[512,80], index: 0, kind: input, shape index: {}]   ;;  %s983_s1 = inlined_call_operand.vmem [shape: bf16[80,8], index: 1, kind: input, shape index: {}]   ;;  %s984_s2 = inlined_call_operand.vmem [shape: f32[1,8], index: 2, kind: input, shape index: {}]   ;;  %s985_s3 = inlined_call_operand.vmem [shape: bf16[512,8], index: 3, kind: output, shape index: {}]  }
   0x1 LB: > { %s622_s13 = sadd.s32 4294967295, %s784_s12   ;;  %p626_p0 = scmp.ge.s32.totalorder %s784_s12, 1  ;;  %s784_s12 = sphi %s806_s12, %s13_s12  }
   0x2   : > { %p138_p1 = scmp.lt.s32.totalorder %s784_s12, 3 }
   0x4   : > { %p139_p2 = pnand %p626_p0, %p138_p1 }
   0x5   : > { %s627_s16 = sshll.u32 (!%p139_p2), %s622_s13, 5 }
   0x6   : > { %142 = sbr.rel (%p139_p2) target bundleno = 228 (0xe4), region = 32  ;;  %p163_p3 = scmp.lt.s32.totalorder (!%p139_p2), %s627_s16, 63 }
   0xb   : > { %v753_v0 = vld [vmem:[%s983_s1 + $0x20] sm:$0xff]  ;;  %v752_v1 = vld [vmem:[%s983_s1 + $0x18] sm:$0xff]  ;;  %v751_v2 = vld [vmem:[%s983_s1 + $0x10] sm:$0xff]  ;;  %s987_s16 = smov (!%p163_p3, %s627_s16), 63  ;;  %vm331_vm0 = vcmask 654336   ;;  %vm533_vm1 = vcmask 60416  }
   0xc   : > { %383 = vmatpush.bf16.msra.mxu0 %v753_v0  ;;  %754 = vmatpush.bf16.msra.mxu1 %v753_v0  ;;  %v750_v3 = vld [vmem:[%s983_s1 + $0x8] sm:$0xff]  ;;  %s628_s23 = sshll.u32 %s987_s16, 2  ;;  %v749_v4 = vld [vmem:[%s983_s1] sm:$0xff] }
   0xd   : > { %755 = vmatpush.bf16.msra.mxu2 %v753_v0  ;;  %756 = vmatpush.bf16.msra.mxu3 %v753_v0  ;;  %s837_s28 = scalar_lea.vmem %s982_s0, %s628_s23  ;;  %v874_v21 = vld [vmem:[%s984_s2] ss:$0 sm:$0xff]  ;;  %s883_s6 = scalar_lea.vmem %s985_s3, %s628_s23 }
   0xe   : > { %v733_v5 = vld [vmem:[%s837_s28] sm:$0xff]  ;;  %v734_v9 = vld [vmem:[%s837_s28 + $0x8] sm:$0xff]  ;;  %v735_v13 = vld [vmem:[%s837_s28 + $0x10] sm:$0xff] }
   0xf   : > { %v737_v6 = vld [vmem:[%s837_s28 + $0x20] sm:$0xff]  ;;  %v738_v10 = vld [vmem:[%s837_s28 + $0x28] sm:$0xff]  ;;  %v739_v14 = vld [vmem:[%s837_s28 + $0x30] sm:$0xff] }
  0x10   : > { %384 = vmatpush.bf16.msra.mxu0 %v752_v1  ;;  %757 = vmatpush.bf16.msra.mxu1 %v752_v1  ;;  %v741_v7 = vld [vmem:[%s837_s28 + $0x40] sm:$0xff]  ;;  %v742_v11 = vld [vmem:[%s837_s28 + $0x48] sm:$0xff]  ;;  %v743_v15 = vld [vmem:[%s837_s28 + $0x50] sm:$0xff] }
  0x11   : > { %758 = vmatpush.bf16.msra.mxu2 %v752_v1  ;;  %759 = vmatpush.bf16.msra.mxu3 %v752_v1  ;;  %v745_v8 = vld [vmem:[%s837_s28 + $0x60] sm:$0xff]  ;;  %v746_v12 = vld [vmem:[%s837_s28 + $0x68] sm:$0xff]  ;;  %v747_v16 = vld [vmem:[%s837_s28 + $0x70] sm:$0xff] }
  0x12   : > { %v736_v17 = vld [vmem:[%s837_s28 + $0x18] sm:$0xff] }
  0x13   : > { %v740_v18 = vld [vmem:[%s837_s28 + $0x38] sm:$0xff] }
  0x14   : > { %385 = vmatpush.bf16.msra.mxu0 %v751_v2  ;;  %760 = vmatpush.bf16.msra.mxu1 %v751_v2  ;;  %v744_v19 = vld [vmem:[%s837_s28 + $0x58] sm:$0xff] }
  0x15   : > { %761 = vmatpush.bf16.msra.mxu2 %v751_v2  ;;  %762 = vmatpush.bf16.msra.mxu3 %v751_v2  ;;  %v748_v20 = vld [vmem:[%s837_s28 + $0x78] sm:$0xff] }
  0x18   : > { %386 = vmatpush.bf16.msra.mxu0 %v750_v3  ;;  %763 = vmatpush.bf16.msra.mxu1 %v750_v3 }
  0x19   : > { %764 = vmatpush.bf16.msra.mxu2 %v750_v3  ;;  %765 = vmatpush.bf16.msra.mxu3 %v750_v3 }
  0x1c   : > { %387 = vmatpush.bf16.msra.mxu0 %v749_v4  ;;  %766 = vmatpush.bf16.msra.mxu1 %v749_v4 }
  0x1d   : > { %767 = vmatpush.bf16.msra.mxu2 %v749_v4  ;;  %768 = vmatpush.bf16.msra.mxu3 %v749_v4 }
  0x1f   : > { %715 = vmatmul.msk.bf16.vlgmr.msra.gmra.mxu0 %vm331_vm0, %v733_v5  ;;  %719 = vmatmul.msk.bf16.vlgmr.msra.gmra.mxu1 %vm331_vm0, %v737_v6 }
  0x20   : > { %723 = vmatmul.msk.bf16.vlgmr.msra.gmra.mxu2 %vm331_vm0, %v741_v7  ;;  %727 = vmatmul.msk.bf16.vlgmr.msra.gmra.mxu3 %vm331_vm0, %v745_v8 }
  0x2f   : > { %716 = vmatmul.msk.bf16.gmra.mxu0 %vm331_vm0, %v734_v9  ;;  %720 = vmatmul.msk.bf16.gmra.mxu1 %vm331_vm0, %v738_v10 }
  0x30   : > { %724 = vmatmul.msk.bf16.gmra.mxu2 %vm331_vm0, %v742_v11  ;;  %728 = vmatmul.msk.bf16.gmra.mxu3 %vm331_vm0, %v746_v12 }
  0x3f   : > { %717 = vmatmul.msk.bf16.gmra.mxu0 %vm331_vm0, %v735_v13  ;;  %721 = vmatmul.msk.bf16.gmra.mxu1 %vm331_vm0, %v739_v14 }
  0x40   : > { %725 = vmatmul.msk.bf16.gmra.mxu2 %vm331_vm0, %v743_v15  ;;  %729 = vmatmul.msk.bf16.gmra.mxu3 %vm331_vm0, %v747_v16 }
  0x4f   : > { %718 = vmatmul.msk.bf16.gmra.mxu0 %vm331_vm0, %v736_v17  ;;  %722 = vmatmul.msk.bf16.gmra.mxu1 %vm331_vm0, %v740_v18 }
  0x50   : > { %726 = vmatmul.msk.bf16.gmra.mxu2 %vm331_vm0, %v744_v19  ;;  %730 = vmatmul.msk.bf16.gmra.mxu3 %vm331_vm0, %v748_v20 }
  0x9c   : > { %v389_v22 = vpop.f32.mrf.mxu0  ;;  %v409_v23 = vpop.f32.mrf.mxu1 }
  0x9d   : > { %v390_v24 = vadd.f32 %v874_v21, %v389_v22  ;;  %v410_v25 = vadd.f32 %v874_v21, %v409_v23 }
  0x9f   : > { %v469_v26 = vmax.f32 %v390_v24, 0.0  ;;  %v477_v27 = vmax.f32 %v410_v25, 0.0 }
  0xa1   : > { %v501_v28 = vpack.c.bf16 %v469_v26, %v469_v26  ;;  %v509_v29 = vpack.c.bf16 %v477_v27, %v477_v27 }
  0xa3   : > { %534 = vst.msk [vmem:[%s883_s6] sm:$0xf] %vm533_vm1, %v501_v28  ;;  %v429_v30 = vpop.f32.mrf.mxu2  ;;  %v449_v31 = vpop.f32.mrf.mxu3 }
  0xa4   : > { %542 = vst.msk [vmem:[%s883_s6 + $0x20] sm:$0xf] %vm533_vm1, %v509_v29  ;;  %v430_v32 = vadd.f32 %v874_v21, %v429_v30  ;;  %v450_v33 = vadd.f32 %v874_v21, %v449_v31  ;;  %v391_v34 = vpop.f32.mrf.mxu0  ;;  %v411_v35 = vpop.f32.mrf.mxu1 }
  0xa5   : > { %v392_v36 = vadd.f32 %v874_v21, %v391_v34  ;;  %v412_v37 = vadd.f32 %v874_v21, %v411_v35 }
  0xa6   : > { %v485_v38 = vmax.f32 %v430_v32, 0.0  ;;  %v493_v39 = vmax.f32 %v450_v33, 0.0 }
  0xa7   : > { %v470_v40 = vmax.f32 %v392_v36, 0.0  ;;  %v478_v41 = vmax.f32 %v412_v37, 0.0 }
  0xa8   : > { %v517_v42 = vpack.c.bf16 %v485_v38, %v485_v38  ;;  %v525_v43 = vpack.c.bf16 %v493_v39, %v493_v39 }
  0xa9   : > { %v502_v44 = vpack.c.bf16 %v470_v40, %v470_v40  ;;  %v510_v45 = vpack.c.bf16 %v478_v41, %v478_v41 }
  0xaa   : > { %550 = vst.msk [vmem:[%s883_s6 + $0x40] sm:$0xf] %vm533_vm1, %v517_v42 }
  0xab   : > { %558 = vst.msk [vmem:[%s883_s6 + $0x60] sm:$0xf] %vm533_vm1, %v525_v43  ;;  %v431_v46 = vpop.f32.mrf.mxu2  ;;  %v451_v47 = vpop.f32.mrf.mxu3 }
  0xac   : > { %535 = vst.msk [vmem:[%s883_s6 + $0x4] sm:$0xf] %vm533_vm1, %v502_v44  ;;  %v432_v48 = vadd.f32 %v874_v21, %v431_v46  ;;  %v452_v49 = vadd.f32 %v874_v21, %v451_v47  ;;  %v394_v50 = vpop.f32.mrf.mxu0  ;;  %v414_v51 = vpop.f32.mrf.mxu1 }
  0xad   : > { %543 = vst.msk [vmem:[%s883_s6 + $0x24] sm:$0xf] %vm533_vm1, %v510_v45  ;;  %v395_v52 = vadd.f32 %v874_v21, %v394_v50  ;;  %v415_v53 = vadd.f32 %v874_v21, %v414_v51 }
  0xae   : > { %v486_v54 = vmax.f32 %v432_v48, 0.0  ;;  %v494_v55 = vmax.f32 %v452_v49, 0.0 }
  0xaf   : > { %v471_v56 = vmax.f32 %v395_v52, 0.0  ;;  %v479_v57 = vmax.f32 %v415_v53, 0.0 }
  0xb0   : > { %v518_v58 = vpack.c.bf16 %v486_v54, %v486_v54  ;;  %v526_v59 = vpack.c.bf16 %v494_v55, %v494_v55 }
  0xb1   : > { %v503_v60 = vpack.c.bf16 %v471_v56, %v471_v56  ;;  %v511_v61 = vpack.c.bf16 %v479_v57, %v479_v57 }
  0xb2   : > { %551 = vst.msk [vmem:[%s883_s6 + $0x44] sm:$0xf] %vm533_vm1, %v518_v58 }
  0xb3   : > { %559 = vst.msk [vmem:[%s883_s6 + $0x64] sm:$0xf] %vm533_vm1, %v526_v59  ;;  %v434_v62 = vpop.f32.mrf.mxu2  ;;  %v454_v63 = vpop.f32.mrf.mxu3 }
  0xb4   : > { %536 = vst.msk [vmem:[%s883_s6 + $0x8] sm:$0xf] %vm533_vm1, %v503_v60  ;;  %v435_v0 = vadd.f32 %v874_v21, %v434_v62  ;;  %v455_v1 = vadd.f32 %v874_v21, %v454_v63  ;;  %v396_v2 = vpop.f32.mrf.mxu0  ;;  %v416_v3 = vpop.f32.mrf.mxu1 }
  0xb5   : > { %544 = vst.msk [vmem:[%s883_s6 + $0x28] sm:$0xf] %vm533_vm1, %v511_v61  ;;  %v397_v4 = vadd.f32 %v874_v21, %v396_v2  ;;  %v417_v5 = vadd.f32 %v874_v21, %v416_v3 }
  0xb6   : > { %v487_v6 = vmax.f32 %v435_v0, 0.0  ;;  %v495_v7 = vmax.f32 %v455_v1, 0.0 }
  0xb7   : > { %v472_v8 = vmax.f32 %v397_v4, 0.0  ;;  %v480_v9 = vmax.f32 %v417_v5, 0.0 }
  0xb8   : > { %v519_v10 = vpack.c.bf16 %v487_v6, %v487_v6  ;;  %v527_v11 = vpack.c.bf16 %v495_v7, %v495_v7 }
  0xb9   : > { %v504_v12 = vpack.c.bf16 %v472_v8, %v472_v8  ;;  %v512_v13 = vpack.c.bf16 %v480_v9, %v480_v9 }
  0xba   : > { %552 = vst.msk [vmem:[%s883_s6 + $0x48] sm:$0xf] %vm533_vm1, %v519_v10 }
  0xbb   : > { %560 = vst.msk [vmem:[%s883_s6 + $0x68] sm:$0xf] %vm533_vm1, %v527_v11  ;;  %v436_v14 = vpop.f32.mrf.mxu2  ;;  %v456_v15 = vpop.f32.mrf.mxu3 }
  0xbc   : > { %537 = vst.msk [vmem:[%s883_s6 + $0xc] sm:$0xf] %vm533_vm1, %v504_v12  ;;  %v437_v16 = vadd.f32 %v874_v21, %v436_v14  ;;  %v457_v17 = vadd.f32 %v874_v21, %v456_v15  ;;  %v399_v18 = vpop.f32.mrf.mxu0  ;;  %v419_v19 = vpop.f32.mrf.mxu1 }
  0xbd   : > { %545 = vst.msk [vmem:[%s883_s6 + $0x2c] sm:$0xf] %vm533_vm1, %v512_v13  ;;  %v400_v20 = vadd.f32 %v874_v21, %v399_v18  ;;  %v420_v22 = vadd.f32 %v874_v21, %v419_v19 }
  0xbe   : > { %v488_v23 = vmax.f32 %v437_v16, 0.0  ;;  %v496_v24 = vmax.f32 %v457_v17, 0.0 }
  0xbf   : > { %v473_v25 = vmax.f32 %v400_v20, 0.0  ;;  %v481_v26 = vmax.f32 %v420_v22, 0.0 }
  0xc0   : > { %v520_v27 = vpack.c.bf16 %v488_v23, %v488_v23  ;;  %v528_v28 = vpack.c.bf16 %v496_v24, %v496_v24 }
  0xc1   : > { %v505_v29 = vpack.c.bf16 %v473_v25, %v473_v25  ;;  %v513_v30 = vpack.c.bf16 %v481_v26, %v481_v26 }
  0xc2   : > { %553 = vst.msk [vmem:[%s883_s6 + $0x4c] sm:$0xf] %vm533_vm1, %v520_v27 }
  0xc3   : > { %561 = vst.msk [vmem:[%s883_s6 + $0x6c] sm:$0xf] %vm533_vm1, %v528_v28  ;;  %v439_v31 = vpop.f32.mrf.mxu2  ;;  %v459_v32 = vpop.f32.mrf.mxu3 }
  0xc4   : > { %538 = vst.msk [vmem:[%s883_s6 + $0x10] sm:$0xf] %vm533_vm1, %v505_v29  ;;  %v440_v33 = vadd.f32 %v874_v21, %v439_v31  ;;  %v460_v34 = vadd.f32 %v874_v21, %v459_v32  ;;  %v401_v35 = vpop.f32.mrf.mxu0  ;;  %v421_v36 = vpop.f32.mrf.mxu1 }
  0xc5   : > { %546 = vst.msk [vmem:[%s883_s6 + $0x30] sm:$0xf] %vm533_vm1, %v513_v30  ;;  %v402_v37 = vadd.f32 %v874_v21, %v401_v35  ;;  %v422_v38 = vadd.f32 %v874_v21, %v421_v36 }
  0xc6   : > { %v489_v39 = vmax.f32 %v440_v33, 0.0  ;;  %v497_v40 = vmax.f32 %v460_v34, 0.0 }
  0xc7   : > { %v474_v41 = vmax.f32 %v402_v37, 0.0  ;;  %v482_v42 = vmax.f32 %v422_v38, 0.0 }
  0xc8   : > { %v521_v43 = vpack.c.bf16 %v489_v39, %v489_v39  ;;  %v529_v44 = vpack.c.bf16 %v497_v40, %v497_v40 }
  0xc9   : > { %v506_v45 = vpack.c.bf16 %v474_v41, %v474_v41  ;;  %v514_v46 = vpack.c.bf16 %v482_v42, %v482_v42 }
  0xca   : > { %554 = vst.msk [vmem:[%s883_s6 + $0x50] sm:$0xf] %vm533_vm1, %v521_v43 }
  0xcb   : > { %562 = vst.msk [vmem:[%s883_s6 + $0x70] sm:$0xf] %vm533_vm1, %v529_v44  ;;  %v441_v47 = vpop.f32.mrf.mxu2  ;;  %v461_v48 = vpop.f32.mrf.mxu3 }
  0xcc   : > { %539 = vst.msk [vmem:[%s883_s6 + $0x14] sm:$0xf] %vm533_vm1, %v506_v45  ;;  %v442_v49 = vadd.f32 %v874_v21, %v441_v47  ;;  %v462_v50 = vadd.f32 %v874_v21, %v461_v48  ;;  %v404_v51 = vpop.f32.mrf.mxu0  ;;  %v424_v52 = vpop.f32.mrf.mxu1 }
  0xcd   : > { %547 = vst.msk [vmem:[%s883_s6 + $0x34] sm:$0xf] %vm533_vm1, %v514_v46  ;;  %v405_v53 = vadd.f32 %v874_v21, %v404_v51  ;;  %v425_v54 = vadd.f32 %v874_v21, %v424_v52 }
  0xce   : > { %v490_v55 = vmax.f32 %v442_v49, 0.0  ;;  %v498_v56 = vmax.f32 %v462_v50, 0.0 }
  0xcf   : > { %v475_v57 = vmax.f32 %v405_v53, 0.0  ;;  %v483_v58 = vmax.f32 %v425_v54, 0.0 }
  0xd0   : > { %v522_v59 = vpack.c.bf16 %v490_v55, %v490_v55  ;;  %v530_v60 = vpack.c.bf16 %v498_v56, %v498_v56 }
  0xd1   : > { %v507_v61 = vpack.c.bf16 %v475_v57, %v475_v57  ;;  %v515_v62 = vpack.c.bf16 %v483_v58, %v483_v58 }
  0xd2   : > { %555 = vst.msk [vmem:[%s883_s6 + $0x54] sm:$0xf] %vm533_vm1, %v522_v59 }
  0xd3   : > { %563 = vst.msk [vmem:[%s883_s6 + $0x74] sm:$0xf] %vm533_vm1, %v530_v60  ;;  %v444_v63 = vpop.f32.mrf.mxu2  ;;  %v464_v0 = vpop.f32.mrf.mxu3 }
  0xd4   : > { %540 = vst.msk [vmem:[%s883_s6 + $0x18] sm:$0xf] %vm533_vm1, %v507_v61  ;;  %v445_v1 = vadd.f32 %v874_v21, %v444_v63  ;;  %v465_v2 = vadd.f32 %v874_v21, %v464_v0  ;;  %v406_v3 = vpop.f32.mrf.mxu0  ;;  %v426_v4 = vpop.f32.mrf.mxu1 }
  0xd5   : > { %548 = vst.msk [vmem:[%s883_s6 + $0x38] sm:$0xf] %vm533_vm1, %v515_v62  ;;  %v407_v5 = vadd.f32 %v874_v21, %v406_v3  ;;  %v427_v6 = vadd.f32 %v874_v21, %v426_v4 }
  0xd6   : > { %v491_v7 = vmax.f32 %v445_v1, 0.0  ;;  %v499_v8 = vmax.f32 %v465_v2, 0.0 }
  0xd7   : > { %v476_v9 = vmax.f32 %v407_v5, 0.0  ;;  %v484_v10 = vmax.f32 %v427_v6, 0.0 }
  0xd8   : > { %v523_v11 = vpack.c.bf16 %v491_v7, %v491_v7  ;;  %v531_v12 = vpack.c.bf16 %v499_v8, %v499_v8 }
  0xd9   : > { %v508_v13 = vpack.c.bf16 %v476_v9, %v476_v9  ;;  %v516_v14 = vpack.c.bf16 %v484_v10, %v484_v10 }
  0xda   : > { %556 = vst.msk [vmem:[%s883_s6 + $0x58] sm:$0xf] %vm533_vm1, %v523_v11 }
  0xdb   : > { %564 = vst.msk [vmem:[%s883_s6 + $0x78] sm:$0xf] %vm533_vm1, %v531_v12  ;;  %v446_v15 = vpop.f32.mrf.mxu2  ;;  %v466_v16 = vpop.f32.mrf.mxu3 }
  0xdc   : > { %541 = vst.msk [vmem:[%s883_s6 + $0x1c] sm:$0xf] %vm533_vm1, %v508_v13  ;;  %v447_v17 = vadd.f32 %v874_v21, %v446_v15  ;;  %v467_v18 = vadd.f32 %v874_v21, %v466_v16 }
  0xdd   : > { %549 = vst.msk [vmem:[%s883_s6 + $0x3c] sm:$0xf] %vm533_vm1, %v516_v14 }
  0xde   : > { %v492_v19 = vmax.f32 %v447_v17, 0.0  ;;  %v500_v20 = vmax.f32 %v467_v18, 0.0 }
  0xe0   : > { %v524_v22 = vpack.c.bf16 %v492_v19, %v492_v19  ;;  %v532_v23 = vpack.c.bf16 %v500_v20, %v500_v20 }
  0xe2   : > { %557 = vst.msk [vmem:[%s883_s6 + $0x5c] sm:$0xf] %vm533_vm1, %v524_v22 }
  0xe3   : > { %565 = vst.msk [vmem:[%s883_s6 + $0x7c] sm:$0xf] %vm533_vm1, %v532_v23 }
  0xe4 PF: > { %s13_s12 = sadd.s32 1, %s784_s12  }
  0xe5   : > { %p10_p4 = scmp.ge.s32.totalorder %s13_s12, 4  }
  0xe7   :  { %12 = sbr.rel (!%p10_p4) target bundleno = 1 (0x1), region = 62 }

// kernel: _lambda_.25
= control target key start
LH: loop header
LB: loop body
LE: loop exit
PB: predicated region body
PF: predicated region fallthrough
CT: control target
= control target key end

     0   :  { %s2723_s13 = smov 0   ;;  %s3644_s0 = inlined_call_operand.vmem [shape: bf16[512,8], index: 0, kind: input, shape index: {}]   ;;  %s3645_s1 = inlined_call_operand.vmem [shape: bf16[512,8], index: 1, kind: input, shape index: {}]   ;;  %s3646_s2 = inlined_call_operand.vmem [shape: bf16[8,4], index: 2, kind: input, shape index: {}]   ;;  %s3647_s3 = inlined_call_operand.vmem [shape: bf16[8,4], index: 3, kind: input, shape index: {}]   ;;  %s3648_s4 = inlined_call_operand.vmem [shape: f32[1,4], index: 4, kind: input, shape index: {}]   ;;  %s3649_s5 = inlined_call_operand.vmem [shape: f32[1,4], index: 5, kind: input, shape index: {}]   ;;  %s3650_s6 = inlined_call_operand.<no memory space> [shape: f32[1,1], index: 6, kind: input, shape index: {}]   ;;  %s3651_s7 = inlined_call_operand.vmem [shape: f32[1,8], index: 7, kind: input, shape index: {}]   ;;  %s3652_s9 = inlined_call_operand.vmem [shape: f32[512,1], index: 9, kind: output, shape index: {}]   ;;  %s3653_s8 = inlined_call_operand.<no memory space> [shape: f32[1,1], index: 8, kind: input, shape index: {}]  }
   0x1   :  { %v14_v0 = vstv %s3650_s6  ;;  %v16_v1 = vstv %s3653_s8 }
   0x2   :  { %15 = vst [vmem:[#allocation2] sm:$0x1] %v14_v0 }
   0x3   :  { %17 = vst [vmem:[#allocation3] sm:$0x1] %v16_v1 }
   0x4 LB: > { %s2273_s14 = sadd.s32 4294967295, %s2664_s13   ;;  %p2277_p0 = scmp.ge.s32.totalorder %s2664_s13, 1  ;;  %s2664_s13 = sphi %s2723_s13, %s23_s13  }
   0x5   : > { %p303_p1 = scmp.lt.s32.totalorder %s2664_s13, 3 }
   0x7   : > { %p304_p2 = pnand %p2277_p0, %p303_p1 }
   0x8   : > { %s2278_s17 = sshll.u32 (!%p304_p2), %s2273_s14, 5 }
   0x9   : > { %307 = sbr.rel (%p304_p2) target bundleno = 672 (0x2a0), region = 56  ;;  %p345_p3 = scmp.lt.s32.totalorder (!%p304_p2), %s2278_s17, 63 }
   0xe   : > { %v428_v2 = vld [vmem:[%s3647_s3] sm:$0xf]  ;;  %vm558_vm0 = vcmask 1043456   ;;  %s3701_s17 = smov (!%p345_p3, %s2278_s17), 63  ;;  %vm509_vm1 = vcmask 64512   ;;  %vm975_vm2 = vcmask 31744  }
   0xf   : > { %v427_v3 = vld [vmem:[%s3646_s2] sm:$0xf]  ;;  %v560_v4 = vsel %vm558_vm0, %v428_v2, 0  ;;  %s2279_s18 = sshll.u32 %s3701_s17, 2  ;;  %s2283_s10 = sshll.u32 %s3701_s17, 3 }
  0x10   : > { %v780_v5 = vsel %vm558_vm0, %v427_v3, 0  ;;  %569 = vmatpush.bf16.msra.mxu0 %v560_v4  ;;  %2510 = vmatpush.bf16.msra.mxu2 %v560_v4  ;;  %s2743_s21 = scalar_lea.vmem %s3645_s1, %s2279_s18  ;;  %s2748_s24 = scalar_lea.vmem %s3644_s0, %s2279_s18  ;;  %v2817_v39 = vld [vmem:[%s3648_s4] ss:$0 sm:$0xff] }
  0x11   : > { %789 = vmatpush.bf16.msra.mxu1 %v780_v5  ;;  %2511 = vmatpush.bf16.msra.mxu3 %v780_v5  ;;  %v2494_v6 = vld [vmem:[%s2743_s21] sm:$0xff]  ;;  %v2495_v10 = vld [vmem:[%s2743_s21 + $0x8] sm:$0xff]  ;;  %v2496_v14 = vld [vmem:[%s2743_s21 + $0x10] sm:$0xff]  ;;  %s3543_s14 = scalar_lea.vmem %s3652_s9, %s2283_s10 }
  0x12   : > { %v2502_v7 = vld [vmem:[%s2743_s21 + $0x40] sm:$0xff]  ;;  %v2503_v11 = vld [vmem:[%s2743_s21 + $0x48] sm:$0xff]  ;;  %v2504_v15 = vld [vmem:[%s2743_s21 + $0x50] sm:$0xff] }
  0x13   : > { %v2478_v8 = vld [vmem:[%s2748_s24] sm:$0xff]  ;;  %2348 = vmatmul.msk.bf16.vlgmr.msra.gmra.mxu0 %vm509_vm1, %v2494_v6  ;;  %2356 = vmatmul.msk.bf16.vlgmr.msra.gmra.mxu2 %vm509_vm1, %v2502_v7  ;;  %v2479_v12 = vld [vmem:[%s2748_s24 + $0x8] sm:$0xff]  ;;  %v2480_v16 = vld [vmem:[%s2748_s24 + $0x10] sm:$0xff] }
  0x14   : > { %v2486_v9 = vld [vmem:[%s2748_s24 + $0x40] sm:$0xff]  ;;  %2428 = vmatmul.msk.bf16.vlgmr.msra.gmra.mxu1 %vm509_vm1, %v2478_v8  ;;  %v2487_v13 = vld [vmem:[%s2748_s24 + $0x48] sm:$0xff]  ;;  %v2488_v17 = vld [vmem:[%s2748_s24 + $0x50] sm:$0xff] }
  0x15   : > { %2436 = vmatmul.msk.bf16.vlgmr.msra.gmra.mxu3 %vm509_vm1, %v2486_v9  ;;  %v2497_v18 = vld [vmem:[%s2743_s21 + $0x18] sm:$0xff]  ;;  %v2498_v22 = vld [vmem:[%s2743_s21 + $0x20] sm:$0xff]  ;;  %v2499_v26 = vld [vmem:[%s2743_s21 + $0x28] sm:$0xff] }
  0x16   : > { %v2505_v19 = vld [vmem:[%s2743_s21 + $0x58] sm:$0xff]  ;;  %v2506_v23 = vld [vmem:[%s2743_s21 + $0x60] sm:$0xff]  ;;  %v2507_v27 = vld [vmem:[%s2743_s21 + $0x68] sm:$0xff] }
  0x17   : > { %v2481_v20 = vld [vmem:[%s2748_s24 + $0x18] sm:$0xff]  ;;  %v2482_v24 = vld [vmem:[%s2748_s24 + $0x20] sm:$0xff]  ;;  %v2483_v28 = vld [vmem:[%s2748_s24 + $0x28] sm:$0xff] }
  0x18   : > { %v2489_v21 = vld [vmem:[%s2748_s24 + $0x58] sm:$0xff]  ;;  %v2490_v25 = vld [vmem:[%s2748_s24 + $0x60] sm:$0xff]  ;;  %v2491_v29 = vld [vmem:[%s2748_s24 + $0x68] sm:$0xff] }
  0x19   : > { %v2500_v30 = vld [vmem:[%s2743_s21 + $0x30] sm:$0xff]  ;;  %v2501_v34 = vld [vmem:[%s2743_s21 + $0x38] sm:$0xff]  ;;  %v2823_v43 = vld [vmem:[%s3649_s5] ss:$0 sm:$0xff] }
  0x1a   : > { %v2508_v31 = vld [vmem:[%s2743_s21 + $0x70] sm:$0xff]  ;;  %v2509_v35 = vld [vmem:[%s2743_s21 + $0x78] sm:$0xff] }
  0x1b   : > { %v2484_v32 = vld [vmem:[%s2748_s24 + $0x30] sm:$0xff]  ;;  %v2485_v36 = vld [vmem:[%s2748_s24 + $0x38] sm:$0xff] }
  0x1c   : > { %v2492_v33 = vld [vmem:[%s2748_s24 + $0x70] sm:$0xff]  ;;  %v2493_v37 = vld [vmem:[%s2748_s24 + $0x78] sm:$0xff] }
  0x23   : > { %2349 = vmatmul.msk.bf16.gmra.mxu0 %vm509_vm1, %v2495_v10  ;;  %2357 = vmatmul.msk.bf16.gmra.mxu2 %vm509_vm1, %v2503_v11 }
  0x24   : > { %2429 = vmatmul.msk.bf16.gmra.mxu1 %vm509_vm1, %v2479_v12 }
  0x25   : > { %2437 = vmatmul.msk.bf16.gmra.mxu3 %vm509_vm1, %v2487_v13 }
  0x33   : > { %2350 = vmatmul.msk.bf16.gmra.mxu0 %vm509_vm1, %v2496_v14  ;;  %2358 = vmatmul.msk.bf16.gmra.mxu2 %vm509_vm1, %v2504_v15 }
  0x34   : > { %2430 = vmatmul.msk.bf16.gmra.mxu1 %vm509_vm1, %v2480_v16 }
  0x35   : > { %2438 = vmatmul.msk.bf16.gmra.mxu3 %vm509_vm1, %v2488_v17 }
  0x43   : > { %2351 = vmatmul.msk.bf16.gmra.mxu0 %vm509_vm1, %v2497_v18  ;;  %2359 = vmatmul.msk.bf16.gmra.mxu2 %vm509_vm1, %v2505_v19 }
  0x44   : > { %2431 = vmatmul.msk.bf16.gmra.mxu1 %vm509_vm1, %v2481_v20 }
  0x45   : > { %2439 = vmatmul.msk.bf16.gmra.mxu3 %vm509_vm1, %v2489_v21 }
  0x53   : > { %2352 = vmatmul.msk.bf16.gmra.mxu0 %vm509_vm1, %v2498_v22  ;;  %2360 = vmatmul.msk.bf16.gmra.mxu2 %vm509_vm1, %v2506_v23 }
  0x54   : > { %2432 = vmatmul.msk.bf16.gmra.mxu1 %vm509_vm1, %v2482_v24 }
  0x55   : > { %2440 = vmatmul.msk.bf16.gmra.mxu3 %vm509_vm1, %v2490_v25 }
  0x63   : > { %2353 = vmatmul.msk.bf16.gmra.mxu0 %vm509_vm1, %v2499_v26  ;;  %2361 = vmatmul.msk.bf16.gmra.mxu2 %vm509_vm1, %v2507_v27 }
  0x64   : > { %2433 = vmatmul.msk.bf16.gmra.mxu1 %vm509_vm1, %v2483_v28 }
  0x65   : > { %2441 = vmatmul.msk.bf16.gmra.mxu3 %vm509_vm1, %v2491_v29 }
  0x73   : > { %2354 = vmatmul.msk.bf16.gmra.mxu0 %vm509_vm1, %v2500_v30  ;;  %2362 = vmatmul.msk.bf16.gmra.mxu2 %vm509_vm1, %v2508_v31 }
  0x74   : > { %2434 = vmatmul.msk.bf16.gmra.mxu1 %vm509_vm1, %v2484_v32 }
  0x75   : > { %2442 = vmatmul.msk.bf16.gmra.mxu3 %vm509_vm1, %v2492_v33 }
  0x83   : > { %2355 = vmatmul.msk.bf16.gmra.mxu0 %vm509_vm1, %v2501_v34  ;;  %2363 = vmatmul.msk.bf16.gmra.mxu2 %vm509_vm1, %v2509_v35 }
  0x84   : > { %2435 = vmatmul.msk.bf16.gmra.mxu1 %vm509_vm1, %v2485_v36 }
  0x85   : > { %2443 = vmatmul.msk.bf16.gmra.mxu3 %vm509_vm1, %v2493_v37 }
  0x90   : > { %v571_v38 = vpop.f32.mrf.mxu0 }
  0x91   : > { %v791_v40 = vpop.f32.mrf.mxu1 }
  0x92   : > { %v792_v41 = vadd.f32 %v791_v40, %v571_v38 }
  0x94   : > { %v875_v42 = vadd.f32 %v2817_v39, %v792_v41 }
  0x96   : > { %v907_v44 = vmax.f32 %v875_v42, 0.0  ;;  %v611_v45 = vpop.f32.mrf.mxu2 }
  0x98   : > { %v831_v46 = vpop.f32.mrf.mxu3  ;;  %v573_v48 = vpop.f32.mrf.mxu0  ;;  %v943_v49 = vmul.f32 %v2823_v43, %v907_v44 }
  0x99   : > { %v832_v47 = vadd.f32 %v831_v46, %v611_v45  ;;  %v793_v50 = vpop.f32.mrf.mxu1 }
  0x9a   : > { %v794_v52 = vadd.f32 %v793_v50, %v573_v48  ;;  %v976_v53 = vsel %vm975_vm2, %v943_v49, 0.0 }
  0x9b   : > { %v891_v51 = vadd.f32 %v2817_v39, %v832_v47  ;;  %977 = vadd.xlane.f32.xlu0 %v976_v53 }
  0x9c   : > { %v876_v55 = vadd.f32 %v2817_v39, %v794_v52 }
  0x9d   : > { %v923_v54 = vmax.f32 %v891_v51, 0.0 }
  0x9e   : > { %v908_v56 = vmax.f32 %v876_v55, 0.0  ;;  %v613_v57 = vpop.f32.mrf.mxu2 }
  0x9f   : > { %v959_v58 = vmul.f32 %v2823_v43, %v923_v54 }
  0xa0   : > { %v833_v59 = vpop.f32.mrf.mxu3  ;;  %v576_v61 = vpop.f32.mrf.mxu0  ;;  %v944_v63 = vmul.f32 %v2823_v43, %v908_v56 }
  0xa1   : > { %v834_v60 = vadd.f32 %v833_v59, %v613_v57  ;;  %v1024_v62 = vsel %vm975_vm2, %v959_v58, 0.0  ;;  %v796_v0 = vpop.f32.mrf.mxu1 }
  0xa2   : > { %1025 = vadd.xlane.f32.xlu1 %v1024_v62  ;;  %v797_v2 = vadd.f32 %v796_v0, %v576_v61  ;;  %v979_v3 = vsel %vm975_vm2, %v944_v63, 0.0 }
  0xa3   : > { %v892_v1 = vadd.f32 %v2817_v39, %v834_v60  ;;  %980 = vadd.xlane.f32.xlu0 %v979_v3 }
  0xa4   : > { %v877_v5 = vadd.f32 %v2817_v39, %v797_v2 }
  0xa5   : > { %v924_v4 = vmax.f32 %v892_v1, 0.0 }
  0xa6   : > { %v909_v6 = vmax.f32 %v877_v5, 0.0  ;;  %v616_v7 = vpop.f32.mrf.mxu2 }
  0xa7   : > { %v960_v8 = vmul.f32 %v2823_v43, %v924_v4 }
  0xa8   : > { %v836_v9 = vpop.f32.mrf.mxu3  ;;  %v578_v11 = vpop.f32.mrf.mxu0  ;;  %v945_v13 = vmul.f32 %v2823_v43, %v909_v6 }
  0xa9   : > { %v837_v10 = vadd.f32 %v836_v9, %v616_v7  ;;  %v1027_v12 = vsel %vm975_vm2, %v960_v8, 0.0  ;;  %v798_v14 = vpop.f32.mrf.mxu1 }
  0xaa   : > { %1028 = vadd.xlane.f32.xlu2 %v1027_v12  ;;  %v799_v16 = vadd.f32 %v798_v14, %v578_v11  ;;  %v982_v17 = vsel %vm975_vm2, %v945_v13, 0.0 }
  0xab   : > { %v893_v15 = vadd.f32 %v2817_v39, %v837_v10  ;;  %983 = vadd.xlane.f32.xlu1 %v982_v17 }
  0xac   : > { %v878_v19 = vadd.f32 %v2817_v39, %v799_v16 }
  0xad   : > { %v925_v18 = vmax.f32 %v893_v15, 0.0 }
  0xae   : > { %v910_v20 = vmax.f32 %v878_v19, 0.0  ;;  %v618_v21 = vpop.f32.mrf.mxu2 }
  0xaf   : > { %v961_v22 = vmul.f32 %v2823_v43, %v925_v18 }
  0xb0   : > { %v838_v23 = vpop.f32.mrf.mxu3  ;;  %v581_v25 = vpop.f32.mrf.mxu0  ;;  %v946_v27 = vmul.f32 %v2823_v43, %v910_v20 }
  0xb1   : > { %v839_v24 = vadd.f32 %v838_v23, %v618_v21  ;;  %v1030_v26 = vsel %vm975_vm2, %v961_v22, 0.0  ;;  %v801_v28 = vpop.f32.mrf.mxu1 }
  0xb2   : > { %1031 = vadd.xlane.f32.xlu0 %v1030_v26  ;;  %v802_v30 = vadd.f32 %v801_v28, %v581_v25  ;;  %v985_v31 = vsel %vm975_vm2, %v946_v27, 0.0 }
  0xb3   : > { %v894_v29 = vadd.f32 %v2817_v39, %v839_v24  ;;  %986 = vadd.xlane.f32.xlu1 %v985_v31 }
  0xb4   : > { %v879_v33 = vadd.f32 %v2817_v39, %v802_v30 }
  0xb5   : > { %v926_v32 = vmax.f32 %v894_v29, 0.0 }
  0xb6   : > { %v911_v34 = vmax.f32 %v879_v33, 0.0  ;;  %v621_v35 = vpop.f32.mrf.mxu2 }
  0xb7   : > { %v962_v36 = vmul.f32 %v2823_v43, %v926_v32 }
  0xb8   : > { %v841_v37 = vpop.f32.mrf.mxu3  ;;  %v583_v40 = vpop.f32.mrf.mxu0  ;;  %v947_v41 = vmul.f32 %v2823_v43, %v911_v34 }
  0xb9   : > { %v842_v38 = vadd.f32 %v841_v37, %v621_v35  ;;  %v803_v42 = vpop.f32.mrf.mxu1  ;;  %v1033_v47 = vsel %vm975_vm2, %v962_v36, 0.0 }
  0xba   : > { %v804_v45 = vadd.f32 %v803_v42, %v583_v40  ;;  %v988_v46 = vsel %vm975_vm2, %v947_v41, 0.0 }
  0xbb   : > { %v895_v44 = vadd.f32 %v2817_v39, %v842_v38  ;;  %989 = vadd.xlane.f32.xlu2 %v988_v46  ;;  %1034 = vadd.xlane.f32.xlu1 %v1033_v47 }
  0xbc   : > { %v880_v49 = vadd.f32 %v2817_v39, %v804_v45 }
  0xbd   : > { %v927_v48 = vmax.f32 %v895_v44, 0.0 }
  0xbe   : > { %v623_v50 = vpop.f32.mrf.mxu2  ;;  %v912_v56 = vmax.f32 %v880_v49, 0.0 }
  0xbf   : > { %v963_v51 = vmul.f32 %v2823_v43, %v927_v48 }
  0xc0   : > { %v843_v52 = vpop.f32.mrf.mxu3  ;;  %v586_v54 = vpop.f32.mrf.mxu0  ;;  %v948_v1 = vmul.f32 %v2823_v43, %v912_v56 }
  0xc1   : > { %v844_v53 = vadd.f32 %v843_v52, %v623_v50  ;;  %v806_v55 = vpop.f32.mrf.mxu1  ;;  %v1036_v59 = vsel %vm975_vm2, %v963_v51, 0.0 }
  0xc2   : > { %v807_v58 = vadd.f32 %v806_v55, %v586_v54  ;;  %v991_v9 = vsel %vm975_vm2, %v948_v1, 0.0 }
  0xc3   : > { %v896_v57 = vadd.f32 %v2817_v39, %v844_v53  ;;  %1037 = vadd.xlane.f32.xlu2 %v1036_v59 }
  0xc4   : > { %v881_v61 = vadd.f32 %v2817_v39, %v807_v58 }
  0xc5   : > { %v928_v60 = vmax.f32 %v896_v57, 0.0 }
  0xc6   : > { %v913_v62 = vmax.f32 %v881_v61, 0.0  ;;  %v626_v63 = vpop.f32.mrf.mxu2 }
  0xc7   : > { %v964_v0 = vmul.f32 %v2823_v43, %v928_v60 }
  0xc8   : > { %v846_v2 = vpop.f32.mrf.mxu3  ;;  %v588_v4 = vpop.f32.mrf.mxu0  ;;  %v949_v10 = vmul.f32 %v2823_v43, %v913_v62 }
  0xc9   : > { %v847_v3 = vadd.f32 %v846_v2, %v626_v63  ;;  %v1039_v5 = vsel %vm975_vm2, %v964_v0, 0.0  ;;  %v808_v6 = vpop.f32.mrf.mxu1 }
  0xca   : > { %1040 = vadd.xlane.f32.xlu0 %v1039_v5  ;;  %v809_v8 = vadd.f32 %v808_v6, %v588_v4  ;;  %v994_v15 = vsel %vm975_vm2, %v949_v10, 0.0 }
  0xcb   : > { %v897_v7 = vadd.f32 %v2817_v39, %v847_v3  ;;  %992 = vadd.xlane.f32.xlu2 %v991_v9 }
  0xcc   : > { %v882_v12 = vadd.f32 %v2817_v39, %v809_v8 }
  0xcd   : > { %v929_v11 = vmax.f32 %v897_v7, 0.0 }
  0xce   : > { %v628_v13 = vpop.f32.mrf.mxu2  ;;  %v914_v17 = vmax.f32 %v882_v12, 0.0 }
  0xcf   : > { %v965_v14 = vmul.f32 %v2823_v43, %v929_v11 }
  0xd0   : > { %v848_v16 = vpop.f32.mrf.mxu3  ;;  %v591_v19 = vpop.f32.mrf.mxu0  ;;  %v950_v26 = vmul.f32 %v2823_v43, %v914_v17 }
  0xd1   : > { %v849_v18 = vadd.f32 %v848_v16, %v628_v13  ;;  %v1042_v20 = vsel %vm975_vm2, %v965_v14, 0.0  ;;  %v811_v21 = vpop.f32.mrf.mxu1 }
  0xd2   : > { %1043 = vadd.xlane.f32.xlu1 %v1042_v20  ;;  %995 = vadd.xlane.f32.xlu0 %v994_v15  ;;  %v812_v23 = vadd.f32 %v811_v21, %v591_v19  ;;  %v997_v34 = vsel %vm975_vm2, %v950_v26, 0.0 }
  0xd3   : > { %v898_v22 = vadd.f32 %v2817_v39, %v849_v18 }
  0xd4   : > { %v883_v25 = vadd.f32 %v2817_v39, %v812_v23 }
  0xd5   : > { %v930_v24 = vmax.f32 %v898_v22, 0.0 }
  0xd6   : > { %v915_v27 = vmax.f32 %v883_v25, 0.0  ;;  %v631_v28 = vpop.f32.mrf.mxu2 }
  0xd7   : > { %v966_v29 = vmul.f32 %v2823_v43, %v930_v24 }
  0xd8   : > { %v851_v30 = vpop.f32.mrf.mxu3  ;;  %v593_v32 = vpop.f32.mrf.mxu0  ;;  %v951_v38 = vmul.f32 %v2823_v43, %v915_v27 }
  0xd9   : > { %v852_v31 = vadd.f32 %v851_v30, %v631_v28  ;;  %v1045_v33 = vsel %vm975_vm2, %v966_v29, 0.0  ;;  %v813_v35 = vpop.f32.mrf.mxu1 }
  0xda   : > { %1046 = vadd.xlane.f32.xlu2 %v1045_v33  ;;  %998 = vadd.xlane.f32.xlu1 %v997_v34  ;;  %v814_v37 = vadd.f32 %v813_v35, %v593_v32  ;;  %v1000_v44 = vsel %vm975_vm2, %v951_v38, 0.0 }
  0xdb   : > { %v899_v36 = vadd.f32 %v2817_v39, %v852_v31 }
  0xdc   : > { %v884_v41 = vadd.f32 %v2817_v39, %v814_v37 }
  0xdd   : > { %v931_v40 = vmax.f32 %v899_v36, 0.0 }
  0xde   : > { %v633_v42 = vpop.f32.mrf.mxu2  ;;  %v916_v47 = vmax.f32 %v884_v41, 0.0 }
  0xdf   : > { %v967_v45 = vmul.f32 %v2823_v43, %v931_v40 }
  0xe0   : > { %v853_v46 = vpop.f32.mrf.mxu3  ;;  %v596_v49 = vpop.f32.mrf.mxu0  ;;  %v952_v56 = vmul.f32 %v2823_v43, %v916_v47 }
  0xe1   : > { %v854_v48 = vadd.f32 %v853_v46, %v633_v42  ;;  %v1048_v50 = vsel %vm975_vm2, %v967_v45, 0.0  ;;  %v816_v51 = vpop.f32.mrf.mxu1 }
  0xe2   : > { %1001 = vadd.xlane.f32.xlu2 %v1000_v44  ;;  %1049 = vadd.xlane.f32.xlu0 %v1048_v50  ;;  %v817_v53 = vadd.f32 %v816_v51, %v596_v49  ;;  %v1003_v0 = vsel %vm975_vm2, %v952_v56, 0.0 }
  0xe3   : > { %v900_v52 = vadd.f32 %v2817_v39, %v854_v48 }
  0xe4   : > { %v885_v55 = vadd.f32 %v2817_v39, %v817_v53 }
  0xe5   : > { %v932_v54 = vmax.f32 %v900_v52, 0.0 }
  0xe6   : > { %v917_v57 = vmax.f32 %v885_v55, 0.0  ;;  %v636_v58 = vpop.f32.mrf.mxu2 }
  0xe7   : > { %v968_v59 = vmul.f32 %v2823_v43, %v932_v54 }
  0xe8   : > { %v856_v60 = vpop.f32.mrf.mxu3  ;;  %v598_v62 = vpop.f32.mrf.mxu0  ;;  %v953_v4 = vmul.f32 %v2823_v43, %v917_v57 }
  0xe9   : > { %v857_v61 = vadd.f32 %v856_v60, %v636_v58  ;;  %v1051_v63 = vsel %vm975_vm2, %v968_v59, 0.0  ;;  %v818_v1 = vpop.f32.mrf.mxu1 }
  0xea   : > { %1052 = vadd.xlane.f32.xlu1 %v1051_v63  ;;  %1004 = vadd.xlane.f32.xlu0 %v1003_v0  ;;  %v819_v3 = vadd.f32 %v818_v1, %v598_v62  ;;  %v1006_v9 = vsel %vm975_vm2, %v953_v4, 0.0  ;;  %v2911_v63 = vld [vmem:[#allocation2] ss:$0 sm:$0xff] }
  0xeb   : > { %v901_v2 = vadd.f32 %v2817_v39, %v857_v61 }
  0xec   : > { %v886_v6 = vadd.f32 %v2817_v39, %v819_v3 }
  0xed   : > { %v933_v5 = vmax.f32 %v901_v2, 0.0  ;;  %v2666_v2 = vmov 0  }
  0xee   : > { %v638_v7 = vpop.f32.mrf.mxu2  ;;  %v918_v11 = vmax.f32 %v886_v6, 0.0  ;;  %2521 = vset.pattern.permute.xlu2 %v2666_v2  ;;  %2522 = vset.pattern.permute.xlu1 %v2666_v2 }
  0xef   : > { %v969_v8 = vmul.f32 %v2823_v43, %v933_v5  ;;  %2523 = vset.pattern.permute.xlu0 %v2666_v2 }
  0xf0   : > { %v858_v10 = vpop.f32.mrf.mxu3  ;;  %v601_v13 = vpop.f32.mrf.mxu0  ;;  %v954_v20 = vmul.f32 %v2823_v43, %v918_v11 }
  0xf1   : > { %v859_v12 = vadd.f32 %v858_v10, %v638_v7  ;;  %v1054_v14 = vsel %vm975_vm2, %v969_v8, 0.0  ;;  %v821_v15 = vpop.f32.mrf.mxu1 }
  0xf2   : > { %1055 = vadd.xlane.f32.xlu2 %v1054_v14  ;;  %1007 = vadd.xlane.f32.xlu1 %v1006_v9  ;;  %v822_v17 = vadd.f32 %v821_v15, %v601_v13  ;;  %v1009_v27 = vsel %vm975_vm2, %v954_v20, 0.0 }
  0xf3   : > { %v902_v16 = vadd.f32 %v2817_v39, %v859_v12 }
  0xf4   : > { %v887_v19 = vadd.f32 %v2817_v39, %v822_v17 }
  0xf5   : > { %v934_v18 = vmax.f32 %v902_v16, 0.0 }
  0xf6   : > { %v919_v21 = vmax.f32 %v887_v19, 0.0  ;;  %v641_v22 = vpop.f32.mrf.mxu2 }
  0xf7   : > { %v970_v23 = vmul.f32 %v2823_v43, %v934_v18 }
  0xf8   : > { %v861_v24 = vpop.f32.mrf.mxu3  ;;  %v603_v26 = vpop.f32.mrf.mxu0  ;;  %v955_v32 = vmul.f32 %v2823_v43, %v919_v21 }
  0xf9   : > { %v862_v25 = vadd.f32 %v861_v24, %v641_v22  ;;  %v1057_v28 = vsel %vm975_vm2, %v970_v23, 0.0  ;;  %v823_v29 = vpop.f32.mrf.mxu1 }
  0xfa   : > { %1010 = vadd.xlane.f32.xlu2 %v1009_v27  ;;  %1058 = vadd.xlane.f32.xlu0 %v1057_v28  ;;  %v824_v31 = vadd.f32 %v823_v29, %v603_v26  ;;  %v1012_v37 = vsel %vm975_vm2, %v955_v32, 0.0 }
  0xfb   : > { %v903_v30 = vadd.f32 %v2817_v39, %v862_v25 }
  0xfc   : > { %v888_v34 = vadd.f32 %v2817_v39, %v824_v31 }
  0xfd   : > { %v935_v33 = vmax.f32 %v903_v30, 0.0 }
  0xfe   : > { %v643_v35 = vpop.f32.mrf.mxu2  ;;  %v920_v40 = vmax.f32 %v888_v34, 0.0 }
  0xff   : > { %v971_v36 = vmul.f32 %v2823_v43, %v935_v33 }
 0x100   : > { %v863_v38 = vpop.f32.mrf.mxu3  ;;  %v606_v42 = vpop.f32.mrf.mxu0  ;;  %v956_v50 = vmul.f32 %v2823_v43, %v920_v40 }
 0x101   : > { %v864_v41 = vadd.f32 %v863_v38, %v643_v35  ;;  %v1060_v44 = vsel %vm975_vm2, %v971_v36, 0.0  ;;  %v826_v45 = vpop.f32.mrf.mxu1 }
 0x102   : > { %1061 = vadd.xlane.f32.xlu1 %v1060_v44  ;;  %1013 = vadd.xlane.f32.xlu0 %v1012_v37  ;;  %v827_v47 = vadd.f32 %v826_v45, %v606_v42  ;;  %v1015_v58 = vsel %vm975_vm2, %v956_v50, 0.0 }
 0x103   : > { %v904_v46 = vadd.f32 %v2817_v39, %v864_v41 }
 0x104   : > { %v889_v49 = vadd.f32 %v2817_v39, %v827_v47 }
 0x105   : > { %v936_v48 = vmax.f32 %v904_v46, 0.0 }
 0x106   : > { %v921_v51 = vmax.f32 %v889_v49, 0.0  ;;  %v646_v52 = vpop.f32.mrf.mxu2 }
 0x107   : > { %v972_v53 = vmul.f32 %v2823_v43, %v936_v48 }
 0x108   : > { %v866_v54 = vpop.f32.mrf.mxu3  ;;  %v608_v56 = vpop.f32.mrf.mxu0  ;;  %v957_v62 = vmul.f32 %v2823_v43, %v921_v51 }
 0x109   : > { %v867_v55 = vadd.f32 %v866_v54, %v646_v52  ;;  %v1063_v57 = vsel %vm975_vm2, %v972_v53, 0.0  ;;  %v828_v59 = vpop.f32.mrf.mxu1 }
 0x10a   : > { %1064 = vadd.xlane.f32.xlu2 %v1063_v57  ;;  %1016 = vadd.xlane.f32.xlu1 %v1015_v58  ;;  %v829_v61 = vadd.f32 %v828_v59, %v608_v56  ;;  %v1018_v5 = vsel %vm975_vm2, %v957_v62, 0.0 }
 0x10b   : > { %v905_v60 = vadd.f32 %v2817_v39, %v867_v55 }
 0x10c   : > { %v890_v1 = vadd.f32 %v2817_v39, %v829_v61 }
 0x10d   : > { %v937_v0 = vmax.f32 %v905_v60, 0.0 }
 0x10e   : > { %v978_v3 = vpop.xlane.xlu0 %977  ;;  %v648_v4 = vpop.f32.mrf.mxu2  ;;  %v922_v9 = vmax.f32 %v890_v1, 0.0 }
 0x10f   : > { %v973_v6 = vmul.f32 %v2823_v43, %v937_v0  ;;  %v1076_v7 = vadd.f32 %v2911_v63, %v978_v3 }
 0x110   : > { %v868_v8 = vpop.f32.mrf.mxu3  ;;  %v958_v16 = vmul.f32 %v2823_v43, %v922_v9 }
 0x111   : > { %v869_v10 = vadd.f32 %v868_v8, %v648_v4  ;;  %v1066_v11 = vsel %vm975_vm2, %v973_v6, 0.0  ;;  %v2444_v12 = vmul.f32 -1.442695, %v1076_v7 }
 0x112   : > { %1019 = vadd.xlane.f32.xlu2 %v1018_v5  ;;  %1067 = vadd.xlane.f32.xlu0 %v1066_v11  ;;  %v1021_v23 = vsel %vm975_vm2, %v958_v16, 0.0 }
 0x113   : > { %v906_v13 = vadd.f32 %v2817_v39, %v869_v10  ;;  %2529 = vpow2.f32 %v2444_v12 }
 0x115   : > { %v938_v14 = vmax.f32 %v906_v13, 0.0  ;;  %v1026_v15 = vpop.xlane.xlu1 %1025 }
 0x116   : > { %v1092_v17 = vadd.f32 %v2911_v63, %v1026_v15  ;;  %v981_v18 = vpop.xlane.xlu0 %980 }
 0x117   : > { %v974_v19 = vmul.f32 %v2823_v43, %v938_v14  ;;  %v1077_v21 = vadd.f32 %v2911_v63, %v981_v18 }
 0x118   : > { %v2460_v20 = vmul.f32 -1.442695, %v1092_v17 }
 0x119   : > { %v1069_v22 = vsel %vm975_vm2, %v974_v19, 0.0  ;;  %v2530_v24 = vpop.eup %2529  ;;  %v2445_v39 = vmul.f32 -1.442695, %v1077_v21 }
 0x11a   : > { %2531 = vpow2.f32 %v2460_v20  ;;  %1070 = vadd.xlane.f32.xlu1 %v1069_v22  ;;  %1022 = vadd.xlane.f32.xlu0 %v1021_v23  ;;  %v1204_v25 = vadd.f32 1.0, %v2530_v24 }
 0x11b   : > { %2533 = vpow2.f32 %v2445_v39 }
 0x11c   : > { %2535 = vrcp.f32 %v1204_v25  ;;  %v1245_v38 = vand.u32 2147483647, %v1204_v25  ;;  %v1247_v40 = vand.u32 2147483648, %v1204_v25  ;;  %vm1241_vm3 = vweird.f32 %v1204_v25 }
 0x11d   : > { %v1029_v26 = vpop.xlane.xlu2 %1028 }
 0x11e   : > { %v1093_v27 = vadd.f32 %v2911_v63, %v1029_v26  ;;  %v984_v28 = vpop.xlane.xlu1 %983  ;;  %vm2937_vm5 = vcmp.eq.f32.partialorder %v1245_v38, 8.507059e+37  ;;  %v1248_v52 = vor.u32 1.1754944e-38, %v1247_v40 }
 0x11f   : > { %v1078_v30 = vadd.f32 %v2911_v63, %v984_v28 }
 0x120   : > { %v2532_v43 = vpop.eup %2531  ;;  %v2461_v29 = vmul.f32 -1.442695, %v1093_v27 }
 0x121   : > { %v2927_v31 = vadd.f32 1.0, %v2532_v43  ;;  %v2534_v32 = vpop.eup %2533  ;;  %v2446_v33 = vmul.f32 -1.442695, %v1078_v30 }
 0x122   : > { %2537 = vpow2.f32 %v2461_v29  ;;  %v2536_v34 = vpop.eup %2535  ;;  %v2930_v35 = vadd.f32 1.0, %v2534_v32 }
 0x123   : > { %2539 = vrcp.f32 %v2927_v31  ;;  %v1237_v36 = vmul.f32 %v2536_v34, %v1204_v25  ;;  %vm1242_vm4 = vweird.f32 %v2536_v34  ;;  %v1485_v59 = vand.u32 2147483647, %v2927_v31 }
 0x124   : > { %2541 = vpow2.f32 %v2446_v33  ;;  %vm1243_vm6 = vmor %vm1241_vm3, %vm1242_vm4  ;;  %v1487_v60 = vand.u32 2147483648, %v2927_v31  ;;  %v1260_v2 = vand.u32 2147483647, %v2930_v35  ;;  %v1262_v3 = vand.u32 2147483648, %v2930_v35 }
 0x125   : > { %2543 = vrcp.f32 %v2930_v35  ;;  %v1032_v37 = vpop.xlane.xlu0 %1031  ;;  %v1238_v42 = vsub.f32 1.0, %v1237_v36  ;;  %vm1481_vm7 = vweird.f32 %v2927_v31  ;;  %vm2955_vm9 = vcmp.eq.f32.partialorder %v1485_v59, 8.507059e+37 }
 0x126   : > { %v1094_v41 = vadd.f32 %v2911_v63, %v1032_v37  ;;  %v987_v44 = vpop.xlane.xlu1 %986  ;;  %v1488_v9 = vor.u32 1.1754944e-38, %v1487_v60  ;;  %vm1256_vm10 = vweird.f32 %v2930_v35  ;;  %vm2967_vm13 = vcmp.eq.f32.partialorder %v1260_v2, 8.507059e+37 }
 0x127   : > { %v1079_v47 = vadd.f32 %v2911_v63, %v987_v44  ;;  %v1239_v48 = vmul.f32 %v2536_v34, %v1238_v42  ;;  %v1263_v18 = vor.u32 1.1754944e-38, %v1262_v3 }
 0x128   : > { %v2538_v45 = vpop.eup %2537  ;;  %v2462_v46 = vmul.f32 -1.442695, %v1094_v41 }
 0x129   : > { %v2540_v49 = vpop.eup %2539  ;;  %v2935_v50 = vadd.f32 1.0, %v2538_v45  ;;  %v2447_v54 = vmul.f32 -1.442695, %v1079_v47  ;;  %v1240_v55 = vadd.f32 %v2536_v34, %v1239_v48 }
 0x12a   : > { %v2542_v53 = vpop.eup %2541  ;;  %2545 = vpow2.f32 %v2462_v46  ;;  %v1477_v56 = vmul.f32 %v2540_v49, %v2927_v31  ;;  %vm1482_vm8 = vweird.f32 %v2540_v49 }
 0x12b   : > { %v2544_v57 = vpop.eup %2543  ;;  %2547 = vrcp.f32 %v2935_v50  ;;  %v2943_v58 = vadd.f32 1.0, %v2542_v53  ;;  %v1244_v61 = vsel %vm1243_vm6, %v2536_v34, %v1240_v55  ;;  %vm1483_vm12 = vmor %vm1481_vm7, %vm1482_vm8  ;;  %v1500_v32 = vand.u32 2147483647, %v2935_v50 }
 0x12c   : > { %2549 = vpow2.f32 %v2447_v54  ;;  %v1478_v62 = vsub.f32 1.0, %v1477_v56  ;;  %v1252_v0 = vmul.f32 %v2544_v57, %v2930_v35  ;;  %v1249_v1 = vsel %vm2937_vm5, %v1248_v52, %v1244_v61 }
 0x12d   : > { %2551 = vrcp.f32 %v2943_v58  ;;  %1782 = vperm.xlu2 %2521, %v1249_v1   ;;  %vm1257_vm11 = vweird.f32 %v2544_v57  ;;  %v1275_v19 = vand.u32 2147483647, %v2943_v58  ;;  %v1277_v29 = vand.u32 2147483648, %v2943_v58 }
 0x12e   : > { %v1479_v4 = vmul.f32 %v2540_v49, %v1478_v62  ;;  %v1253_v5 = vsub.f32 1.0, %v1252_v0  ;;  %v990_v6 = vpop.xlane.xlu2 %989  ;;  %v1035_v7 = vpop.xlane.xlu1 %1034  ;;  %vm1258_vm14 = vmor %vm1256_vm10, %vm1257_vm11  ;;  %v1502_v34 = vand.u32 2147483648, %v2935_v50  ;;  %vm1496_vm15 = vweird.f32 %v2935_v50 }
 0x12f   : > { %v1080_v11 = vadd.f32 %v2911_v63, %v990_v6  ;;  %v1095_v12 = vadd.f32 %v2911_v63, %v1035_v7  ;;  %vm1271_vm2 = vweird.f32 %v2943_v58  ;;  %vm2991_vm4 = vcmp.eq.f32.partialorder %v1275_v19, 8.507059e+37 }
 0x130   : > { %v2546_v10 = vpop.eup %2545  ;;  %v1480_v13 = vadd.f32 %v2540_v49, %v1479_v4  ;;  %v1254_v14 = vmul.f32 %v2544_v57, %v1253_v5  ;;  %v1278_v42 = vor.u32 1.1754944e-38, %v1277_v29  ;;  %vm2995_vm5 = vcmp.eq.f32.partialorder %v1500_v32, 8.507059e+37 }
 0x131   : > { %v2548_v15 = vpop.eup %2547  ;;  %v2962_v16 = vadd.f32 1.0, %v2546_v10  ;;  %v2448_v21 = vmul.f32 -1.442695, %v1080_v11  ;;  %v2463_v22 = vmul.f32 -1.442695, %v1095_v12 }
 0x132   : > { %v2550_v20 = vpop.eup %2549  ;;  %v1484_v23 = vsel %vm1483_vm12, %v2540_v49, %v1480_v13  ;;  %v1255_v24 = vadd.f32 %v2544_v57, %v1254_v14  ;;  %v1492_v27 = vmul.f32 %v2548_v15, %v2935_v50  ;;  %vm1497_vm0 = vweird.f32 %v2548_v15 }
 0x133   : > { %v2552_v39 = vpop.eup %2551  ;;  %2553 = vrcp.f32 %v2962_v16  ;;  %v2973_v25 = vadd.f32 1.0, %v2550_v20  ;;  %v1489_v26 = vsel %vm2955_vm9, %v1488_v9, %v1484_v23  ;;  %vm1498_vm6 = vmor %vm1496_vm15, %vm1497_vm0  ;;  %v1503_v49 = vor.u32 1.1754944e-38, %v1502_v34 }
 0x134   : > { %2555 = vpow2.f32 %v2448_v21  ;;  %1862 = vperm.xlu1 %2522, %v1489_v26   ;;  %v1259_v28 = vsel %vm1258_vm14, %v2544_v57, %v1255_v24  ;;  %v1267_v43 = vmul.f32 %v2552_v39, %v2943_v58  ;;  %v1493_v31 = vsub.f32 1.0, %v1492_v27 }
 0x135   : > { %2557 = vrcp.f32 %v2973_v25  ;;  %v1264_v30 = vsel %vm2967_vm13, %v1263_v18, %v1259_v28  ;;  %vm1272_vm3 = vweird.f32 %v2552_v39  ;;  %v1515_v54 = vand.u32 2147483647, %v2962_v16 }
 0x136   : > { %2559 = vpow2.f32 %v2463_v22  ;;  %1787 = vperm.xlu0 %2523, %v1264_v30   ;;  %v1268_v33 = vsub.f32 1.0, %v1267_v43  ;;  %v1038_v35 = vpop.xlane.xlu2 %1037  ;;  %v1494_v36 = vmul.f32 %v2548_v15, %v1493_v31  ;;  %vm1273_vm7 = vmor %vm1271_vm2, %vm1272_vm3  ;;  %v1517_v55 = vand.u32 2147483648, %v2962_v16 }
 0x137   : > { %v1096_v37 = vadd.f32 %v2911_v63, %v1038_v35  ;;  %vm1511_vm9 = vweird.f32 %v2962_v16  ;;  %v1290_v8 = vand.u32 2147483647, %v2973_v25  ;;  %vm1516_vm11 = vcmp.eq.f32.partialorder %v1515_v54, 8.507059e+37 }
 0x138   : > { %v1269_v38 = vmul.f32 %v2552_v39, %v1268_v33  ;;  %v1495_v44 = vadd.f32 %v2548_v15, %v1494_v36  ;;  %v1518_v9 = vor.u32 1.1754944e-38, %v1517_v55  ;;  %v1292_v11 = vand.u32 2147483648, %v2973_v25 }
 0x139   : > { %v2554_v40 = vpop.eup %2553  ;;  %v2464_v47 = vmul.f32 -1.442695, %v1096_v37  ;;  %vm1286_vm13 = vweird.f32 %v2973_v25  ;;  %vm3032_vm14 = vcmp.eq.f32.partialorder %v1290_v8, 8.507059e+37 }
 0x13a   : > { %v2556_v46 = vpop.eup %2555  ;;  %v1270_v48 = vadd.f32 %v2552_v39, %v1269_v38  ;;  %v1507_v50 = vmul.f32 %v2554_v40, %v2962_v16  ;;  %v1499_v53 = vsel %vm1498_vm6, %v2548_v15, %v1495_v44  ;;  %vm1512_vm8 = vweird.f32 %v2554_v40 }
 0x13b   : > { %v3000_v51 = vpop.eup %2557  ;;  %v3002_v52 = vadd.f32 1.0, %v2556_v46  ;;  %2561 = vpow2.f32 %v2464_v47  ;;  %v1504_v59 = vsel %vm2995_vm5, %v1503_v49, %v1499_v53  ;;  %vm1513_vm10 = vmor %vm1511_vm9, %vm1512_vm8 }
 0x13c   : > { %v2560_v56 = vpop.eup %2559  ;;  %v1274_v57 = vsel %vm1273_vm7, %v2552_v39, %v1270_v48  ;;  %v1508_v60 = vsub.f32 1.0, %v1507_v50  ;;  %v1282_v0 = vmul.f32 %v3000_v51, %v2973_v25  ;;  %vm1287_vm12 = vweird.f32 %v3000_v51 }
 0x13d   : > { %2563 = vrcp.f32 %v3002_v52  ;;  %v3011_v61 = vadd.f32 1.0, %v2560_v56  ;;  %v1041_v62 = vpop.xlane.xlu0 %1040  ;;  %v1279_v58 = vsel %vm2991_vm4, %v1278_v42, %v1274_v57  ;;  %v1293_v39 = vor.u32 1.1754944e-38, %v1292_v11  ;;  %vm3045_vm2 = vmor %vm1286_vm13, %vm1287_vm12 }
 0x13e   : > { %v1097_v1 = vadd.f32 %v2911_v63, %v1041_v62  ;;  %1792 = vperm.xlu1 %2522, %v1279_v58   ;;  %1867 = vperm.xlu0 %2523, %v1504_v59   ;;  %v1509_v2 = vmul.f32 %v2554_v40, %v1508_v60  ;;  %v993_v3 = vpop.xlane.xlu2 %992  ;;  %v1283_v4 = vsub.f32 1.0, %v1282_v0  ;;  %vm1301_vm0 = vweird.f32 %v3002_v52 }
 0x13f   : > { %2565 = vrcp.f32 %v3011_v61  ;;  %v1081_v6 = vadd.f32 %v2911_v63, %v993_v3  ;;  %v1530_v19 = vand.u32 2147483647, %v3011_v61  ;;  %vm1526_vm15 = vweird.f32 %v3011_v61 }
 0x140   : > { %v2465_v5 = vmul.f32 -1.442695, %v1097_v1  ;;  %v1510_v7 = vadd.f32 %v2554_v40, %v1509_v2  ;;  %v1284_v10 = vmul.f32 %v3000_v51, %v1283_v4  ;;  %v1532_v43 = vand.u32 2147483648, %v3011_v61 }
 0x141   : > { %v2562_v12 = vpop.eup %2561  ;;  %v2449_v13 = vmul.f32 -1.442695, %v1081_v6  ;;  %vm3054_vm3 = vcmp.eq.f32.partialorder %v1530_v19, 8.507059e+37  ;;  %v1305_v32 = vand.u32 2147483647, %v3002_v52  ;;  %v1307_v37 = vand.u32 2147483648, %v3002_v52 }
 0x142   : > { %2567 = vpow2.f32 %v2465_v5  ;;  %v1514_v14 = vsel %vm1513_vm10, %v2554_v40, %v1510_v7  ;;  %v3027_v16 = vadd.f32 1.0, %v2562_v12  ;;  %v1285_v18 = vadd.f32 %v3000_v51, %v1284_v10 }
 0x143   : > { %v3025_v15 = vpop.eup %2563  ;;  %v1519_v17 = vsel %vm1516_vm11, %v1518_v9, %v1514_v14  ;;  %2569 = vpow2.f32 %v2449_v13  ;;  %vm3079_vm7 = vcmp.eq.f32.partialorder %v1305_v32, 8.507059e+37  ;;  %v1308_v57 = vor.u32 1.1754944e-38, %v1307_v37 }
 0x144   : > { %1872 = vperm.xlu2 %2521, %v1519_v17   ;;  %v1297_v21 = vmul.f32 %v3025_v15, %v3002_v52  ;;  %2571 = vrcp.f32 %v3027_v16  ;;  %v1289_v29 = vsel %vm3045_vm2, %v3000_v51, %v1285_v18  ;;  %vm1302_vm4 = vweird.f32 %v3025_v15 }
 0x145   : > { %v2566_v22 = vpop.eup %2565  ;;  %v1044_v23 = vpop.xlane.xlu1 %1043  ;;  %v1545_v41 = vand.u32 2147483647, %v3027_v16  ;;  %v1294_v44 = vsel %vm3032_vm14, %v1293_v39, %v1289_v29  ;;  %v1547_v49 = vand.u32 2147483648, %v3027_v16  ;;  %v1533_v51 = vor.u32 1.1754944e-38, %v1532_v43  ;;  %vm3090_vm9 = vmor %vm1301_vm0, %vm1302_vm4 }
 0x146   : > { %v996_v24 = vpop.xlane.xlu0 %995  ;;  %v1098_v26 = vadd.f32 %v2911_v63, %v1044_v23  ;;  %v1522_v28 = vmul.f32 %v2566_v22, %v3011_v61  ;;  %v1298_v31 = vsub.f32 1.0, %v1297_v21  ;;  %vm1527_vm5 = vweird.f32 %v2566_v22 }
 0x147   : > { %v1082_v25 = vadd.f32 %v2911_v63, %v996_v24  ;;  %vm1528_vm6 = vmor %vm1526_vm15, %vm1527_vm5  ;;  %vm1541_vm8 = vweird.f32 %v3027_v16  ;;  %vm3094_vm10 = vcmp.eq.f32.partialorder %v1545_v41, 8.507059e+37  ;;  %v1548_v3 = vor.u32 1.1754944e-38, %v1547_v49 }
 0x148   : > { %v2568_v33 = vpop.eup %2567  ;;  %v2466_v34 = vmul.f32 -1.442695, %v1098_v26  ;;  %v1523_v36 = vsub.f32 1.0, %v1522_v28  ;;  %v1299_v40 = vmul.f32 %v3025_v15, %v1298_v31 }
 0x149   : > { %v2450_v35 = vmul.f32 -1.442695, %v1082_v25  ;;  %v3060_v38 = vadd.f32 1.0, %v2568_v33  ;;  %v2570_v42 = vpop.eup %2569 }
 0x14a   : > { %2573 = vpow2.f32 %v2466_v34  ;;  %v1524_v45 = vmul.f32 %v2566_v22, %v1523_v36  ;;  %v3067_v46 = vpop.eup %2571  ;;  %v3070_v47 = vadd.f32 1.0, %v2570_v42  ;;  %v1300_v48 = vadd.f32 %v3025_v15, %v1299_v40 }
 0x14b   : > { %2575 = vrcp.f32 %v3060_v38  ;;  %v1537_v53 = vmul.f32 %v3067_v46, %v3027_v16  ;;  %vm1556_vm11 = vweird.f32 %v3060_v38  ;;  %v1560_v6 = vand.u32 2147483647, %v3060_v38 }
 0x14c   : > { %2577 = vpow2.f32 %v2450_v35  ;;  %1797 = vperm.xlu2 %2521, %v1294_v44   ;;  %v1525_v50 = vadd.f32 %v2566_v22, %v1524_v45  ;;  %v1304_v1 = vsel %vm3090_vm9, %v3025_v15, %v1300_v48  ;;  %vm1542_vm12 = vweird.f32 %v3067_v46 }
 0x14d   : > { %2579 = vrcp.f32 %v3070_v47  ;;  %v1047_v54 = vpop.xlane.xlu2 %1046  ;;  %v999_v55 = vpop.xlane.xlu1 %998  ;;  %v1538_v2 = vsub.f32 1.0, %v1537_v53  ;;  %v1562_v10 = vand.u32 2147483648, %v3060_v38  ;;  %v1309_v12 = vsel %vm3079_vm7, %v1308_v57, %v1304_v1  ;;  %vm1543_vm13 = vmor %vm1541_vm8, %vm1542_vm12 }
 0x14e   : > { %v1099_v59 = vadd.f32 %v2911_v63, %v1047_v54  ;;  %v1083_v60 = vadd.f32 %v2911_v63, %v999_v55  ;;  %v1529_v62 = vsel %vm1528_vm6, %v2566_v22, %v1525_v50  ;;  %v1320_v14 = vand.u32 2147483647, %v3070_v47 }
 0x14f   : > { %v1534_v0 = vsel %vm3054_vm3, %v1533_v51, %v1529_v62  ;;  %v1539_v9 = vmul.f32 %v3067_v46, %v1538_v2  ;;  %v1322_v19 = vand.u32 2147483648, %v3070_v47  ;;  %vm3123_vm14 = vcmp.eq.f32.partialorder %v1560_v6, 8.507059e+37 }
 0x150   : > { %v2574_v4 = vpop.eup %2573  ;;  %v2467_v5 = vmul.f32 -1.442695, %v1099_v59  ;;  %v2451_v52 = vmul.f32 -1.442695, %v1083_v60  ;;  %1877 = vperm.xlu1 %2522, %v1534_v0   ;;  %v1563_v26 = vor.u32 1.1754944e-38, %v1562_v10  ;;  %vm1316_vm0 = vweird.f32 %v3070_v47 }
 0x151   : > { %v2576_v7 = vpop.eup %2575  ;;  %v3105_v8 = vadd.f32 1.0, %v2574_v4  ;;  %v1540_v18 = vadd.f32 %v3067_v46, %v1539_v9  ;;  %vm3136_vm2 = vcmp.eq.f32.partialorder %v1320_v14, 8.507059e+37  ;;  %v1323_v30 = vor.u32 1.1754944e-38, %v1322_v19 }
 0x152   : > { %v2578_v11 = vpop.eup %2577  ;;  %2581 = vpow2.f32 %v2467_v5  ;;  %v1552_v13 = vmul.f32 %v2576_v7, %v3060_v38  ;;  %vm1557_vm15 = vweird.f32 %v2576_v7 }
 0x153   : > { %v3114_v15 = vpop.eup %2579  ;;  %2583 = vrcp.f32 %v3105_v8  ;;  %v3117_v17 = vadd.f32 1.0, %v2578_v11  ;;  %v1544_v39 = vsel %vm1543_vm13, %v3067_v46, %v1540_v18  ;;  %vm1558_vm3 = vmor %vm1556_vm11, %vm1557_vm15  ;;  %v1575_v46 = vand.u32 2147483647, %v3105_v8 }
 0x154   : > { %2585 = vpow2.f32 %v2451_v52  ;;  %1802 = vperm.xlu2 %2521, %v1309_v12   ;;  %v1553_v20 = vsub.f32 1.0, %v1552_v13  ;;  %v1312_v22 = vmul.f32 %v3114_v15, %v3070_v47  ;;  %v1549_v27 = vsel %vm3094_vm10, %v1548_v3, %v1544_v39 }
 0x155   : > { %2587 = vrcp.f32 %v3117_v17  ;;  %v1002_v23 = vpop.xlane.xlu2 %1001  ;;  %v1050_v24 = vpop.xlane.xlu0 %1049  ;;  %1882 = vperm.xlu0 %2523, %v1549_v27   ;;  %v1335_v35 = vand.u32 2147483647, %v3117_v17  ;;  %vm1317_vm4 = vweird.f32 %v3114_v15  ;;  %v1337_v41 = vand.u32 2147483648, %v3117_v17 }
 0x156   : > { %v1084_v25 = vadd.f32 %v2911_v63, %v1002_v23  ;;  %v1100_v16 = vadd.f32 %v2911_v63, %v1050_v24  ;;  %v1554_v28 = vmul.f32 %v2576_v7, %v1553_v20  ;;  %v1313_v43 = vsub.f32 1.0, %v1312_v22  ;;  %vm1318_vm6 = vmor %vm1316_vm0, %vm1317_vm4 }
 0x157   : > { %vm1331_vm5 = vweird.f32 %v3117_v17  ;;  %vm3166_vm7 = vcmp.eq.f32.partialorder %v1335_v35, 8.507059e+37  ;;  %vm1571_vm8 = vweird.f32 %v3105_v8  ;;  %v1338_v59 = vor.u32 1.1754944e-38, %v1337_v41 }
 0x158   : > { %v2582_v31 = vpop.eup %2581  ;;  %v2452_v32 = vmul.f32 -1.442695, %v1084_v25  ;;  %v2468_v33 = vmul.f32 -1.442695, %v1100_v16  ;;  %v1555_v34 = vadd.f32 %v2576_v7, %v1554_v28  ;;  %v1314_v40 = vmul.f32 %v3114_v15, %v1313_v43 }
 0x159   : > { %v3141_v36 = vpop.eup %2583  ;;  %v3143_v37 = vadd.f32 1.0, %v2582_v31  ;;  %v1577_v60 = vand.u32 2147483648, %v3105_v8  ;;  %vm3180_vm11 = vcmp.eq.f32.partialorder %v1575_v46, 8.507059e+37 }
 0x15a   : > { %v2586_v42 = vpop.eup %2585  ;;  %2589 = vpow2.f32 %v2452_v32  ;;  %v1559_v44 = vsel %vm1558_vm3, %v2576_v7, %v1555_v34  ;;  %v1567_v45 = vmul.f32 %v3141_v36, %v3105_v8  ;;  %v1315_v50 = vadd.f32 %v3114_v15, %v1314_v40 }
 0x15b   : > { %v2588_v48 = vpop.eup %2587  ;;  %2591 = vrcp.f32 %v3143_v37  ;;  %v3156_v38 = vadd.f32 1.0, %v2586_v42  ;;  %v1564_v49 = vsel %vm3123_vm14, %v1563_v26, %v1559_v44  ;;  %vm1572_vm10 = vweird.f32 %v3141_v36 }
 0x15c   : > { %2593 = vpow2.f32 %v2468_v33  ;;  %1887 = vperm.xlu2 %2521, %v1564_v49   ;;  %v1327_v51 = vmul.f32 %v2588_v48, %v3117_v17  ;;  %v1568_v54 = vsub.f32 1.0, %v1567_v45  ;;  %v1319_v57 = vsel %vm1318_vm6, %v3114_v15, %v1315_v50  ;;  %vm3193_vm13 = vmor %vm1571_vm8, %vm1572_vm10 }
 0x15d   : > { %2595 = vrcp.f32 %v3156_v38  ;;  %v1053_v55 = vpop.xlane.xlu1 %1052  ;;  %v1005_v56 = vpop.xlane.xlu0 %1004  ;;  %v1324_v58 = vsel %vm3136_vm2, %v1323_v30, %v1319_v57  ;;  %vm1332_vm9 = vweird.f32 %v2588_v48  ;;  %v1590_v52 = vand.u32 2147483647, %v3143_v37 }
 0x15e   : > { %v1101_v47 = vadd.f32 %v2911_v63, %v1053_v55  ;;  %v1085_v62 = vadd.f32 %v2911_v63, %v1005_v56  ;;  %v1328_v61 = vsub.f32 1.0, %v1327_v51  ;;  %1807 = vperm.xlu1 %2522, %v1324_v58   ;;  %v1569_v0 = vmul.f32 %v3141_v36, %v1568_v54  ;;  %vm1333_vm14 = vmor %vm1331_vm5, %vm1332_vm9 }
 0x15f   : > { %v1578_v10 = vor.u32 1.1754944e-38, %v1577_v60  ;;  %vm1586_vm12 = vweird.f32 %v3143_v37  ;;  %v1592_v15 = vand.u32 2147483648, %v3143_v37  ;;  %vm1346_vm15 = vweird.f32 %v3156_v38 }
 0x160   : > { %v2590_v2 = vpop.eup %2589  ;;  %v2469_v3 = vmul.f32 -1.442695, %v1101_v47  ;;  %v2453_v4 = vmul.f32 -1.442695, %v1085_v62  ;;  %v1329_v5 = vmul.f32 %v2588_v48, %v1328_v61  ;;  %v1570_v9 = vadd.f32 %v3141_v36, %v1569_v0 }
 0x161   : > { %v2592_v6 = vpop.eup %2591  ;;  %v3185_v7 = vadd.f32 1.0, %v2590_v2  ;;  %v1350_v20 = vand.u32 2147483647, %v3156_v38  ;;  %vm3212_vm0 = vcmp.eq.f32.partialorder %v1590_v52, 8.507059e+37  ;;  %v1593_v43 = vor.u32 1.1754944e-38, %v1592_v15 }
 0x162   : > { %v2594_v11 = vpop.eup %2593  ;;  %2597 = vpow2.f32 %v2469_v3  ;;  %v1330_v12 = vadd.f32 %v2588_v48, %v1329_v5  ;;  %v1582_v14 = vmul.f32 %v2592_v6, %v3143_v37  ;;  %v1574_v8 = vsel %vm3193_vm13, %v3141_v36, %v1570_v9 }
 0x163   : > { %v3199_v18 = vpop.eup %2595  ;;  %2599 = vrcp.f32 %v3185_v7  ;;  %v3202_v19 = vadd.f32 1.0, %v2594_v11  ;;  %vm1587_vm2 = vweird.f32 %v2592_v6  ;;  %v1579_v27 = vsel %vm3180_vm11, %v1578_v10, %v1574_v8 }
 0x164   : > { %2601 = vpow2.f32 %v2453_v4  ;;  %v1334_v21 = vsel %vm1333_vm14, %v2588_v48, %v1330_v12  ;;  %v1583_v22 = vsub.f32 1.0, %v1582_v14  ;;  %v1342_v26 = vmul.f32 %v3199_v18, %v3156_v38  ;;  %vm1588_vm5 = vmor %vm1586_vm12, %vm1587_vm2 }
 0x165   : > { %2603 = vrcp.f32 %v3202_v19  ;;  %v1339_v17 = vsel %vm3166_vm7, %v1338_v59, %v1334_v21  ;;  %v1056_v24 = vpop.xlane.xlu2 %1055  ;;  %v1008_v39 = vpop.xlane.xlu1 %1007  ;;  %vm1347_vm3 = vweird.f32 %v3199_v18  ;;  %vm3226_vm4 = vcmp.eq.f32.partialorder %v1350_v20, 8.507059e+37 }
 0x166   : > { %1812 = vperm.xlu2 %2521, %v1339_v17   ;;  %v1102_v25 = vadd.f32 %v2911_v63, %v1056_v24  ;;  %v1086_v16 = vadd.f32 %v2911_v63, %v1008_v39  ;;  %v1584_v28 = vmul.f32 %v2592_v6, %v1583_v22  ;;  %1892 = vperm.xlu1 %2522, %v1579_v27   ;;  %v1343_v29 = vsub.f32 1.0, %v1342_v26  ;;  %vm1348_vm7 = vmor %vm1346_vm15, %vm1347_vm3 }
 0x167   : > { %v1352_v35 = vand.u32 2147483648, %v3156_v38  ;;  %vm1361_vm6 = vweird.f32 %v3185_v7  ;;  %v1365_v42 = vand.u32 2147483647, %v3185_v7  ;;  %v1367_v48 = vand.u32 2147483648, %v3185_v7 }
 0x168   : > { %v2598_v31 = vpop.eup %2597  ;;  %v2470_v32 = vmul.f32 -1.442695, %v1102_v25  ;;  %v2454_v33 = vmul.f32 -1.442695, %v1086_v16  ;;  %v1585_v34 = vadd.f32 %v2592_v6, %v1584_v28  ;;  %v1344_v41 = vmul.f32 %v3199_v18, %v1343_v29 }
 0x169   : > { %v2600_v36 = vpop.eup %2599  ;;  %v3231_v40 = vadd.f32 1.0, %v2598_v31  ;;  %v1353_v53 = vor.u32 1.1754944e-38, %v1352_v35  ;;  %vm3254_vm9 = vcmp.eq.f32.partialorder %v1365_v42, 8.507059e+37  ;;  %v1368_v61 = vor.u32 1.1754944e-38, %v1367_v48 }
 0x16a   : > { %v2602_v44 = vpop.eup %2601  ;;  %2605 = vpow2.f32 %v2470_v32  ;;  %v1589_v45 = vsel %vm1588_vm5, %v2592_v6, %v1585_v34  ;;  %v1357_v46 = vmul.f32 %v2600_v36, %v3185_v7  ;;  %v1345_v51 = vadd.f32 %v3199_v18, %v1344_v41 }
 0x16b   : > { %v2604_v49 = vpop.eup %2603  ;;  %2607 = vrcp.f32 %v3231_v40  ;;  %v3242_v50 = vadd.f32 1.0, %v2602_v44  ;;  %v1594_v37 = vsel %vm3212_vm0, %v1593_v43, %v1589_v45  ;;  %vm1362_vm8 = vweird.f32 %v2600_v36 }
 0x16c   : > { %2609 = vpow2.f32 %v2454_v33  ;;  %1897 = vperm.xlu0 %2523, %v1594_v37   ;;  %v1358_v54 = vsub.f32 1.0, %v1357_v46  ;;  %v1597_v55 = vmul.f32 %v2604_v49, %v3202_v19  ;;  %v1349_v59 = vsel %vm1348_vm7, %v3199_v18, %v1345_v51  ;;  %vm1363_vm11 = vmor %vm1361_vm6, %vm1362_vm8 }
 0x16d   : > { %2611 = vrcp.f32 %v3242_v50  ;;  %v1011_v56 = vpop.xlane.xlu2 %1010  ;;  %v1059_v57 = vpop.xlane.xlu0 %1058  ;;  %v1354_v62 = vsel %vm3226_vm4, %v1353_v53, %v1349_v59  ;;  %vm1601_vm10 = vweird.f32 %v3202_v19  ;;  %v1605_v1 = vand.u32 2147483647, %v3202_v19 }
 0x16e   : > { %v1087_v47 = vadd.f32 %v2911_v63, %v1011_v56  ;;  %v1103_v38 = vadd.f32 %v2911_v63, %v1059_v57  ;;  %v1359_v58 = vmul.f32 %v2600_v36, %v1358_v54  ;;  %1817 = vperm.xlu1 %2522, %v1354_v62   ;;  %v1598_v0 = vsub.f32 1.0, %v1597_v55 }
 0x16f   : > { %v1607_v52 = vand.u32 2147483648, %v3202_v19  ;;  %vm1602_vm12 = vweird.f32 %v2604_v49  ;;  %v1620_v11 = vand.u32 2147483647, %v3231_v40  ;;  %vm3271_vm13 = vcmp.eq.f32.partialorder %v1605_v1, 8.507059e+37 }
 0x170   : > { %v2606_v2 = vpop.eup %2605  ;;  %v2455_v3 = vmul.f32 -1.442695, %v1087_v47  ;;  %v2471_v4 = vmul.f32 -1.442695, %v1103_v38  ;;  %v1360_v5 = vadd.f32 %v2600_v36, %v1359_v58  ;;  %v1599_v10 = vmul.f32 %v2604_v49, %v1598_v0  ;;  %vm1603_vm14 = vmor %vm1601_vm10, %vm1602_vm12 }
 0x171   : > { %v2608_v6 = vpop.eup %2607  ;;  %v3265_v9 = vadd.f32 1.0, %v2606_v2  ;;  %v1608_v21 = vor.u32 1.1754944e-38, %v1607_v52  ;;  %v1622_v39 = vand.u32 2147483648, %v3231_v40  ;;  %vm1616_vm0 = vweird.f32 %v3231_v40 }
 0x172   : > { %v2610_v12 = vpop.eup %2609  ;;  %2613 = vpow2.f32 %v2455_v3  ;;  %v1364_v13 = vsel %vm1363_vm11, %v2600_v36, %v1360_v5  ;;  %v1612_v15 = vmul.f32 %v2608_v6, %v3231_v40  ;;  %v1600_v20 = vadd.f32 %v2604_v49, %v1599_v10 }
 0x173   : > { %v2612_v18 = vpop.eup %2611  ;;  %2615 = vrcp.f32 %v3265_v9  ;;  %v3277_v8 = vadd.f32 1.0, %v2610_v12  ;;  %v1369_v7 = vsel %vm3254_vm9, %v1368_v61, %v1364_v13  ;;  %vm1617_vm15 = vweird.f32 %v2608_v6 }
 0x174   : > { %2617 = vpow2.f32 %v2471_v4  ;;  %1822 = vperm.xlu0 %2523, %v1369_v7   ;;  %v1613_v22 = vsub.f32 1.0, %v1612_v15  ;;  %v1604_v23 = vsel %vm1603_vm14, %v2604_v49, %v1600_v20  ;;  %v1372_v26 = vmul.f32 %v2612_v18, %v3242_v50  ;;  %vm1618_vm3 = vmor %vm1616_vm0, %vm1617_vm15 }
 0x175   : > { %2619 = vrcp.f32 %v3277_v8  ;;  %v1062_v17 = vpop.xlane.xlu1 %1061  ;;  %v1014_v24 = vpop.xlane.xlu0 %1013  ;;  %v1609_v25 = vsel %vm3271_vm13, %v1608_v21, %v1604_v23  ;;  %vm3291_vm2 = vcmp.eq.f32.partialorder %v1620_v11, 8.507059e+37  ;;  %v1380_v29 = vand.u32 2147483647, %v3242_v50 }
 0x176   : > { %v1104_v16 = vadd.f32 %v2911_v63, %v1062_v17  ;;  %v1088_v19 = vadd.f32 %v2911_v63, %v1014_v24  ;;  %v1614_v27 = vmul.f32 %v2608_v6, %v1613_v22  ;;  %1902 = vperm.xlu2 %2521, %v1609_v25   ;;  %v1373_v43 = vsub.f32 1.0, %v1372_v26  ;;  %v2657_v17 = vld [vmem:[#allocation2] ss:$0 sm:$0xff] }
 0x177   : > { %v1382_v34 = vand.u32 2147483648, %v3242_v50  ;;  %v1623_v40 = vor.u32 1.1754944e-38, %v1622_v39  ;;  %vm1377_vm4 = vweird.f32 %v2612_v18  ;;  %vm1376_vm5 = vweird.f32 %v3242_v50 }
 0x178   : > { %v2614_v30 = vpop.eup %2613  ;;  %v2472_v31 = vmul.f32 -1.442695, %v1104_v16  ;;  %v2456_v32 = vmul.f32 -1.442695, %v1088_v19  ;;  %v1615_v33 = vadd.f32 %v2608_v6, %v1614_v27  ;;  %v1374_v41 = vmul.f32 %v2612_v18, %v1373_v43  ;;  %vm1378_vm6 = vmor %vm1376_vm5, %vm1377_vm4 }
 0x179   : > { %v3297_v35 = vpop.eup %2615  ;;  %v3299_v36 = vadd.f32 1.0, %v2614_v30  ;;  %v1395_v45 = vand.u32 2147483647, %v3277_v8  ;;  %vm1381_vm7 = vcmp.eq.f32.partialorder %v1380_v29, 8.507059e+37  ;;  %v1383_v51 = vor.u32 1.1754944e-38, %v1382_v34 }
 0x17a   : > { %v2618_v42 = vpop.eup %2617  ;;  %2621 = vpow2.f32 %v2472_v31  ;;  %v1619_v44 = vsel %vm1618_vm3, %v2608_v6, %v1615_v33  ;;  %v1375_v37 = vadd.f32 %v2612_v18, %v1374_v41  ;;  %v1397_v56 = vand.u32 2147483648, %v3277_v8 }
 0x17b   : > { %v2620_v46 = vpop.eup %2619  ;;  %2623 = vrcp.f32 %v3299_v36  ;;  %v3305_v48 = vadd.f32 1.0, %v2618_v42  ;;  %v1624_v49 = vsel %vm3291_vm2, %v1623_v40, %v1619_v44  ;;  %v1627_v57 = vmul.f32 %v3297_v35, %v3265_v9 }
 0x17c   : > { %2625 = vpow2.f32 %v2456_v32  ;;  %1907 = vperm.xlu1 %2522, %v1624_v49   ;;  %v1387_v53 = vmul.f32 %v2620_v46, %v3277_v8  ;;  %v1379_v50 = vsel %vm1378_vm6, %v2612_v18, %v1375_v37  ;;  %vm1391_vm8 = vweird.f32 %v3277_v8 }
 0x17d   : > { %2627 = vrcp.f32 %v3305_v48  ;;  %v1065_v54 = vpop.xlane.xlu2 %1064  ;;  %v1017_v55 = vpop.xlane.xlu1 %1016  ;;  %v1384_v59 = vsel %vm1381_vm7, %v1383_v51, %v1379_v50  ;;  %vm1392_vm9 = vweird.f32 %v2620_v46  ;;  %vm3317_vm10 = vcmp.eq.f32.partialorder %v1395_v45, 8.507059e+37 }
 0x17e   : > { %v1105_v60 = vadd.f32 %v2911_v63, %v1065_v54  ;;  %v1089_v47 = vadd.f32 %v2911_v63, %v1017_v55  ;;  %v1388_v38 = vsub.f32 1.0, %v1387_v53  ;;  %1827 = vperm.xlu2 %2521, %v1384_v59   ;;  %v1628_v58 = vsub.f32 1.0, %v1627_v57  ;;  %vm1393_vm12 = vmor %vm1391_vm8, %vm1392_vm9 }
 0x17f   : > { %v1635_v3 = vand.u32 2147483647, %v3265_v9  ;;  %vm1632_vm11 = vweird.f32 %v3297_v35  ;;  %v1637_v52 = vand.u32 2147483648, %v3265_v9  ;;  %v1398_v11 = vor.u32 1.1754944e-38, %v1397_v56 }
 0x180   : > { %v2622_v61 = vpop.eup %2621  ;;  %v2473_v0 = vmul.f32 -1.442695, %v1105_v60  ;;  %v2457_v1 = vmul.f32 -1.442695, %v1089_v47  ;;  %v1389_v2 = vmul.f32 %v2620_v46, %v1388_v38  ;;  %v1629_v63 = vmul.f32 %v3297_v35, %v1628_v58 }
 0x181   : > { %v2624_v4 = vpop.eup %2623  ;;  %v3322_v5 = vadd.f32 1.0, %v2622_v61  ;;  %vm1631_vm13 = vweird.f32 %v3265_v9  ;;  %vm1636_vm14 = vcmp.eq.f32.partialorder %v1635_v3, 8.507059e+37  ;;  %v1638_v18 = vor.u32 1.1754944e-38, %v1637_v52 }
 0x182   : > { %v2626_v6 = vpop.eup %2625  ;;  %2629 = vpow2.f32 %v2473_v0  ;;  %v1390_v10 = vadd.f32 %v2620_v46, %v1389_v2  ;;  %v1402_v12 = vmul.f32 %v2624_v4, %v3299_v36  ;;  %v1630_v14 = vadd.f32 %v3297_v35, %v1629_v63  ;;  %vm1633_vm15 = vmor %vm1631_vm13, %vm1632_vm11 }
 0x183   : > { %v3328_v13 = vpop.eup %2627  ;;  %2631 = vrcp.f32 %v3322_v5  ;;  %v3338_v20 = vadd.f32 1.0, %v2626_v6  ;;  %vm1407_vm0 = vweird.f32 %v2624_v4  ;;  %v1410_v25 = vand.u32 2147483647, %v3299_v36 }
 0x184   : > { %2633 = vpow2.f32 %v2457_v1  ;;  %v1394_v15 = vsel %vm1393_vm12, %v2620_v46, %v1390_v10  ;;  %v1403_v7 = vsub.f32 1.0, %v1402_v12  ;;  %v1634_v8 = vsel %vm1633_vm15, %v3297_v35, %v1630_v14 }
 0x185   : > { %v1399_v21 = vsel %vm3317_vm10, %v1398_v11, %v1394_v15  ;;  %v1020_v22 = vpop.xlane.xlu2 %1019  ;;  %v1068_v23 = vpop.xlane.xlu0 %1067  ;;  %v1639_v9 = vsel %vm1636_vm14, %v1638_v18, %v1634_v8  ;;  %v1412_v16 = vand.u32 2147483648, %v3299_v36  ;;  %v1642_v19 = vmul.f32 %v3328_v13, %v3305_v48 }
 0x186   : > { %1832 = vperm.xlu1 %2522, %v1399_v21   ;;  %v1090_v24 = vadd.f32 %v2657_v17, %v1020_v22  ;;  %v1106_v39 = vadd.f32 %v2657_v17, %v1068_v23  ;;  %v1404_v26 = vmul.f32 %v2624_v4, %v1403_v7  ;;  %1912 = vperm.xlu0 %2523, %v1639_v9   ;;  %vm1406_vm2 = vweird.f32 %v3299_v36 }
 0x187   : > { %2635 = vrcp.f32 %v3338_v20  ;;  %vm1408_vm3 = vmor %vm1406_vm2, %vm1407_vm0  ;;  %v1413_v32 = vor.u32 1.1754944e-38, %v1412_v16  ;;  %v1643_v33 = vsub.f32 1.0, %v1642_v19  ;;  %v1650_v40 = vand.u32 2147483647, %v3305_v48 }
 0x188   : > { %v2630_v27 = vpop.eup %2629  ;;  %v2458_v28 = vmul.f32 -1.442695, %v1090_v24  ;;  %v2474_v43 = vmul.f32 -1.442695, %v1106_v39  ;;  %v1405_v29 = vadd.f32 %v2624_v4, %v1404_v26  ;;  %v1652_v41 = vand.u32 2147483648, %v3305_v48 }
 0x189   : > { %v3348_v30 = vpop.eup %2631  ;;  %v3351_v31 = vadd.f32 1.0, %v2630_v27  ;;  %vm1411_vm4 = vcmp.eq.f32.partialorder %v1410_v25, 8.507059e+37  ;;  %v1644_v36 = vmul.f32 %v3328_v13, %v1643_v33  ;;  %vm1647_vm5 = vweird.f32 %v3328_v13 }
 0x18a   : > { %v2634_v34 = vpop.eup %2633  ;;  %2637 = vpow2.f32 %v2458_v28  ;;  %v1409_v35 = vsel %vm1408_vm3, %v2624_v4, %v1405_v29  ;;  %vm1646_vm6 = vweird.f32 %v3305_v48  ;;  %v1657_v49 = vmul.f32 %v3348_v30, %v3322_v5 }
 0x18b   : > { %v3356_v42 = vadd.f32 1.0, %v2634_v34  ;;  %2639 = vpow2.f32 %v2474_v43  ;;  %v1414_v44 = vsel %vm1411_vm4, %v1413_v32, %v1409_v35  ;;  %v1645_v45 = vadd.f32 %v3328_v13, %v1644_v36  ;;  %vm1648_vm7 = vmor %vm1646_vm6, %vm1647_vm5 }
 0x18c   : > { %vm1651_vm8 = vcmp.eq.f32.partialorder %v1650_v40, 8.507059e+37  ;;  %v1653_v37 = vor.u32 1.1754944e-38, %v1652_v41  ;;  %v1658_v56 = vsub.f32 1.0, %v1657_v49  ;;  %v1665_v57 = vand.u32 2147483647, %v3322_v5 }
 0x18d   : > { %2641 = vrcp.f32 %v3356_v42  ;;  %v1071_v46 = vpop.xlane.xlu1 %1070  ;;  %v1023_v53 = vpop.xlane.xlu0 %1022  ;;  %v1649_v54 = vsel %vm1648_vm7, %v3328_v13, %v1645_v45  ;;  %v1667_v47 = vand.u32 2147483648, %v3322_v5  ;;  %vm1662_vm9 = vweird.f32 %v3348_v30 }
 0x18e   : > { %2643 = vrcp.f32 %v3351_v31  ;;  %v1107_v51 = vadd.f32 %v2657_v17, %v1071_v46  ;;  %v2636_v50 = vpop.eup %2635  ;;  %1837 = vperm.xlu0 %2523, %v1414_v44   ;;  %v1091_v55 = vadd.f32 %v2657_v17, %v1023_v53  ;;  %v1654_v59 = vsel %vm1651_vm8, %v1653_v37, %v1649_v54 }
 0x18f   : > { %1917 = vperm.xlu2 %2521, %v1654_v59   ;;  %v1659_v58 = vmul.f32 %v3348_v30, %v1658_v56  ;;  %vm1661_vm10 = vweird.f32 %v3322_v5  ;;  %v1417_v0 = vmul.f32 %v2636_v50, %v3338_v20  ;;  %vm1666_vm11 = vcmp.eq.f32.partialorder %v1665_v57, 8.507059e+37 }
 0x190   : > { %v2638_v48 = vpop.eup %2637  ;;  %v2475_v60 = vmul.f32 -1.442695, %v1107_v51  ;;  %v2459_v62 = vmul.f32 -1.442695, %v1091_v55  ;;  %v1425_v4 = vand.u32 2147483647, %v3338_v20  ;;  %vm1663_vm12 = vmor %vm1661_vm10, %vm1662_vm9  ;;  %vm1422_vm13 = vweird.f32 %v2636_v50 }
 0x191   : > { %v3369_v38 = vadd.f32 1.0, %v2638_v48  ;;  %v2640_v61 = vpop.eup %2639  ;;  %v1660_v3 = vadd.f32 %v3348_v30, %v1659_v58  ;;  %v1668_v52 = vor.u32 1.1754944e-38, %v1667_v47  ;;  %v1418_v6 = vsub.f32 1.0, %v1417_v0 }
 0x192   : > { %2645 = vpow2.f32 %v2475_v60  ;;  %v3375_v2 = vadd.f32 1.0, %v2640_v61  ;;  %v1427_v11 = vand.u32 2147483648, %v3338_v20  ;;  %vm1421_vm14 = vweird.f32 %v3338_v20 }
 0x193   : > { %v2642_v1 = vpop.eup %2641  ;;  %2647 = vpow2.f32 %v2459_v62  ;;  %v1664_v5 = vsel %vm1663_vm12, %v3348_v30, %v1660_v3  ;;  %v1419_v13 = vmul.f32 %v2636_v50, %v1418_v6  ;;  %vm3385_vm15 = vcmp.eq.f32.partialorder %v1425_v4, 8.507059e+37  ;;  %vm1423_vm2 = vmor %vm1421_vm14, %vm1422_vm13  ;;  %v1783_v6 = vpop.permute.xlu2 %1782 }
 0x194   : > { %v2644_v63 = vpop.eup %2643  ;;  %v1432_v10 = vmul.f32 %v2642_v1, %v3356_v42  ;;  %2649 = vrcp.f32 %v3369_v38  ;;  %v1669_v12 = vsel %vm1666_vm11, %v1668_v52, %v1664_v5  ;;  %v1442_v18 = vand.u32 2147483648, %v3356_v42 }
 0x195   : > { %2651 = vrcp.f32 %v3375_v2  ;;  %1922 = vperm.xlu1 %2522, %v1669_v12   ;;  %v1672_v7 = vmul.f32 %v2644_v63, %v3351_v31  ;;  %v1420_v8 = vadd.f32 %v2636_v50, %v1419_v13  ;;  %vm1437_vm0 = vweird.f32 %v2642_v1 }
 0x196   : > { %v1433_v14 = vsub.f32 1.0, %v1432_v10  ;;  %v1440_v23 = vand.u32 2147483647, %v3356_v42  ;;  %v1428_v17 = vor.u32 1.1754944e-38, %v1427_v11  ;;  %vm1436_vm3 = vweird.f32 %v3356_v42 }
 0x197   : > { %v1673_v20 = vsub.f32 1.0, %v1672_v7  ;;  %v1424_v39 = vsel %vm1423_vm2, %v2636_v50, %v1420_v8  ;;  %vm1677_vm4 = vweird.f32 %v2644_v63  ;;  %v1682_v25 = vand.u32 2147483648, %v3351_v31  ;;  %vm1438_vm5 = vmor %vm1436_vm3, %vm1437_vm0  ;;  %v395_v8 = vld [vmem:[%s2743_s21] sm:$0xff]  }
 0x198   : > { %v2646_v21 = vpop.eup %2645  ;;  %v1434_v22 = vmul.f32 %v2642_v1, %v1433_v14  ;;  %v1429_v19 = vsel %vm3385_vm15, %v1428_v17, %v1424_v39  ;;  %v1443_v27 = vor.u32 1.1754944e-38, %v1442_v18  ;;  %v1680_v43 = vand.u32 2147483647, %v3351_v31  ;;  %v363_v17 = vld [vmem:[%s2748_s24] sm:$0xff]  }
 0x199   : > { %v3392_v9 = vadd.f32 1.0, %v2646_v21  ;;  %v2648_v24 = vpop.eup %2647  ;;  %v1674_v28 = vmul.f32 %v2644_v63, %v1673_v20  ;;  %1842 = vperm.xlu2 %2521, %v1429_v19   ;;  %vm1441_vm6 = vcmp.eq.f32.partialorder %v1440_v23, 8.507059e+37  ;;  %vm1676_vm7 = vweird.f32 %v3351_v31 }
 0x19a   : > { %v1435_v26 = vadd.f32 %v2642_v1, %v1434_v22  ;;  %v2650_v16 = vpop.eup %2649  ;;  %v3401_v32 = vadd.f32 1.0, %v2648_v24  ;;  %vm1678_vm8 = vmor %vm1676_vm7, %vm1677_vm4  ;;  %v1683_v35 = vor.u32 1.1754944e-38, %v1682_v25  ;;  %vm1681_vm9 = vcmp.eq.f32.partialorder %v1680_v43, 8.507059e+37  ;;  %v3430_v43 = vld [vmem:[%s3651_s7] ss:$0 sm:$0xff] }
 0x19b   : > { %v2652_v29 = vpop.eup %2651  ;;  %2653 = vrcp.f32 %v3392_v9  ;;  %v1675_v34 = vadd.f32 %v2644_v63, %v1674_v28  ;;  %v1447_v40 = vmul.f32 %v2650_v16, %v3369_v38  ;;  %v1457_v45 = vand.u32 2147483648, %v3369_v38 }
 0x19c   : > { %v1439_v30 = vsel %vm1438_vm5, %v2642_v1, %v1435_v26  ;;  %v1687_v42 = vmul.f32 %v2652_v29, %v3375_v2  ;;  %2655 = vrcp.f32 %v3401_v32  ;;  %vm1452_vm10 = vweird.f32 %v2650_v16  ;;  %v411_v26 = vld [vmem:[%s2743_s21 + $0x40] sm:$0xff]  }
 0x19d   : > { %v1444_v33 = vsel %vm1441_vm6, %v1443_v27, %v1439_v30  ;;  %v1679_v41 = vsel %vm1678_vm8, %v2644_v63, %v1675_v34  ;;  %v1448_v44 = vsub.f32 1.0, %v1447_v40  ;;  %v1455_v37 = vand.u32 2147483647, %v3369_v38 }
 0x19e   : > { %1847 = vperm.xlu1 %2522, %v1444_v33   ;;  %v1684_v36 = vsel %vm1681_vm9, %v1683_v35, %v1679_v41  ;;  %v1688_v46 = vsub.f32 1.0, %v1687_v42  ;;  %v1697_v51 = vand.u32 2147483648, %v3375_v2  ;;  %vm1692_vm11 = vweird.f32 %v2652_v29  ;;  %v1873_v7 = vpop.permute.xlu2 %1872  ;;  %v397_v41 = vld [vmem:[%s2743_s21 + $0x8] sm:$0xf] }
 0x19f   : > { %1927 = vperm.xlu0 %2523, %v1684_v36   ;;  %v1449_v31 = vmul.f32 %v2650_v16, %v1448_v44  ;;  %v1695_v50 = vand.u32 2147483647, %v3375_v2  ;;  %vm1451_vm12 = vweird.f32 %v3369_v38  ;;  %v1458_v55 = vor.u32 1.1754944e-38, %v1457_v45  ;;  %v413_v45 = vld [vmem:[%s2743_s21 + $0x48] sm:$0xff]  }
 0x1a0   : > { %v1689_v53 = vmul.f32 %v2652_v29, %v1688_v46  ;;  %vm1453_vm13 = vmor %vm1451_vm12, %vm1452_vm10  ;;  %vm1691_vm14 = vweird.f32 %v3375_v2  ;;  %vm1456_vm15 = vcmp.eq.f32.partialorder %v1455_v37, 8.507059e+37  ;;  %v1698_v59 = vor.u32 1.1754944e-38, %v1697_v51  ;;  %v365_v37 = vld [vmem:[%s2748_s24 + $0x8] sm:$0xf] }
 0x1a1   : > { %v2654_v49 = vpop.eup %2653  ;;  %v1450_v54 = vadd.f32 %v2650_v16, %v1449_v31  ;;  %vm1693_vm0 = vmor %vm1691_vm14, %vm1692_vm11  ;;  %vm1696_vm2 = vcmp.eq.f32.partialorder %v1695_v50, 8.507059e+37  ;;  %v1710_v38 = vand.u32 2147483647, %v3392_v9  ;;  %v1712_v0 = vand.u32 2147483648, %v3392_v9 }
 0x1a2   : > { %v1690_v56 = vadd.f32 %v2652_v29, %v1689_v53  ;;  %v1702_v57 = vmul.f32 %v2654_v49, %v3392_v9  ;;  %v2656_v60 = vpop.eup %2655  ;;  %vm1707_vm3 = vweird.f32 %v2654_v49  ;;  %vm1706_vm4 = vweird.f32 %v3392_v9 }
 0x1a3   : > { %v1454_v48 = vsel %vm1453_vm13, %v2650_v16, %v1450_v54  ;;  %v1462_v2 = vmul.f32 %v2656_v60, %v3401_v32  ;;  %vm1708_vm5 = vmor %vm1706_vm4, %vm1707_vm3  ;;  %vm1711_vm6 = vcmp.eq.f32.partialorder %v1710_v38, 8.507059e+37  ;;  %v1713_v63 = vor.u32 1.1754944e-38, %v1712_v0 }
 0x1a4   : > { %v1459_v47 = vsel %vm1456_vm15, %v1458_v55, %v1454_v48  ;;  %v1694_v62 = vsel %vm1693_vm0, %v2652_v29, %v1690_v56  ;;  %v1703_v61 = vsub.f32 1.0, %v1702_v57  ;;  %v1472_v52 = vand.u32 2147483648, %v3401_v32  ;;  %v379_v29 = vld [vmem:[%s2748_s24 + $0x40] sm:$0xff]   ;;  %v381_v56 = vld [vmem:[%s2748_s24 + $0x48] sm:$0xff]  }
 0x1a5   : > { %v1699_v58 = vsel %vm1696_vm2, %v1698_v59, %v1694_v62  ;;  %v1463_v4 = vsub.f32 1.0, %v1462_v2  ;;  %vm1467_vm7 = vweird.f32 %v2656_v60  ;;  %v1470_v11 = vand.u32 2147483647, %v3401_v32  ;;  %v398_v2 = vld [vmem:[%s2743_s21 + $0xc] sm:$0xff]  }
 0x1a6   : > { %1932 = vperm.xlu2 %2521, %v1699_v58   ;;  %v1704_v1 = vmul.f32 %v2654_v49, %v1703_v61  ;;  %vm1466_vm8 = vweird.f32 %v3401_v32  ;;  %v1473_v14 = vor.u32 1.1754944e-38, %v1472_v52  ;;  %v1863_v21 = vpop.permute.xlu1 %1862  ;;  %v3423_v22 = vpop.permute.xlu2 %1797  ;;  %v1748_v9 = vunpack.c.l.bf16 %v395_v8  ;;  %v415_v58 = vld [vmem:[%s2743_s21 + $0x50] sm:$0xf] }
 0x1a7   : > { %1852 = vperm.xlu0 %2523, %v1459_v47   ;;  %v1464_v5 = vmul.f32 %v2656_v60, %v1463_v4  ;;  %vm1468_vm9 = vmor %vm1466_vm8, %vm1467_vm7  ;;  %vm1471_vm10 = vcmp.eq.f32.partialorder %v1470_v11, 8.507059e+37  ;;  %v1716_v24 = vunpack.c.l.bf16 %v363_v17  ;;  %v1765_v25 = vunpack.c.h.bf16 %v411_v26 }
 0x1a8   : > { %v1705_v3 = vadd.f32 %v2654_v49, %v1704_v1  ;;  %v1788_v23 = vpop.permute.xlu0 %1787  ;;  %v1940_v39 = vmul.f32 %v1783_v6, %v1748_v9  ;;  %v1764_v19 = vunpack.c.l.bf16 %v411_v26  ;;  %v1749_v30 = vunpack.c.h.bf16 %v395_v8 }
 0x1a9   : > { %v1465_v13 = vadd.f32 %v2656_v60, %v1464_v5  ;;  %v1733_v32 = vunpack.c.h.bf16 %v379_v29  ;;  %v1732_v35 = vunpack.c.l.bf16 %v379_v29  ;;  %v1717_v36 = vunpack.c.h.bf16 %v363_v17  ;;  %v400_v17 = vld [vmem:[%s2743_s21 + $0x14] sm:$0xf] }
 0x1aa   : > { %v1709_v10 = vsel %vm1708_vm5, %v2654_v49, %v1705_v3  ;;  %v1972_v16 = vadd.f32 %v1940_v39, %v1716_v24  ;;  %v1956_v40 = vmul.f32 %v1863_v21, %v1764_v19  ;;  %v1941_v44 = vmul.f32 %v1788_v23, %v1749_v30 }
 0x1ab   : > { %v1714_v12 = vsel %vm1711_vm6, %v1713_v63, %v1709_v10  ;;  %v1469_v15 = vsel %vm1468_vm9, %v2656_v60, %v1465_v13  ;;  %v1750_v46 = vunpack.c.l.bf16 %v397_v41  ;;  %v1767_v51 = vunpack.c.h.bf16 %v413_v45  ;;  %v383_v10 = vld [vmem:[%s2748_s24 + $0x50] sm:$0xf] }
 0x1ac   : > { %1937 = vperm.xlu1 %2522, %v1714_v12   ;;  %v1474_v18 = vsel %vm1471_vm10, %v1473_v14, %v1469_v15  ;;  %v2008_v42 = vmul.f32 %v3430_v43, %v1972_v16  ;;  %v1988_v31 = vadd.f32 %v1956_v40, %v1732_v35  ;;  %v1766_v50 = vunpack.c.l.bf16 %v413_v45  ;;  %v366_v15 = vld [vmem:[%s2748_s24 + $0xc] sm:$0xff]   ;;  %v416_v16 = vld [vmem:[%s2743_s21 + $0x54] sm:$0xff]  }
 0x1ad   : > { %v1973_v54 = vadd.f32 %v1941_v44, %v1717_v36  ;;  %v1718_v57 = vunpack.c.l.bf16 %v365_v37  ;;  %v1735_v47 = vunpack.c.h.bf16 %v381_v56  ;;  %v1734_v38 = vunpack.c.l.bf16 %v381_v56  ;;  %v384_v40 = vld [vmem:[%s2748_s24 + $0x54] sm:$0xff]  }
 0x1ae   : > { %1857 = vperm.xlu2 %2521, %v1474_v18   ;;  %v1803_v27 = vpop.permute.xlu2 %1802  ;;  %v2040_v53 = vsel %vm509_vm1, %v2008_v42, 0.0  ;;  %v2024_v61 = vmul.f32 %v3430_v43, %v1988_v31  ;;  %v1958_v0 = vmul.f32 %v1873_v7, %v1766_v50  ;;  %v1768_v4 = vunpack.c.l.bf16 %v415_v58 }
 0x1af   : > { %v2009_v1 = vmul.f32 %v3430_v43, %v1973_v54  ;;  %v1752_v52 = vunpack.c.h.bf16 %v398_v2  ;;  %v1751_v13 = vunpack.c.l.bf16 %v398_v2  ;;  %v1736_v18 = vunpack.c.l.bf16 %v383_v10  ;;  %v401_v54 = vld [vmem:[%s2743_s21 + $0x18] sm:$0xff]  }
 0x1b0   : > { %v1793_v20 = vpop.permute.xlu1 %1792  ;;  %v1868_v28 = vpop.permute.xlu0 %1867  ;;  %v2088_v11 = vsel %vm509_vm1, %v2024_v61, 0.0  ;;  %v1990_v12 = vadd.f32 %v1958_v0, %v1734_v38  ;;  %v1720_v8 = vunpack.c.h.bf16 %v366_v15  ;;  %v1719_v39 = vunpack.c.l.bf16 %v366_v15  ;;  %v369_v0 = vld [vmem:[%s2748_s24 + $0x18] sm:$0xff]  }
 0x1b1   : > { %v1957_v33 = vmul.f32 %v1868_v28, %v1765_v25  ;;  %v1942_v48 = vmul.f32 %v1793_v20, %v1750_v46  ;;  %v2043_v14 = vsel %vm509_vm1, %v2009_v1, 0.0  ;;  %v1944_v23 = vmul.f32 %v1803_v27, %v1752_v52  ;;  %v403_v52 = vld [vmem:[%s2743_s21 + $0x20] sm:$0xf] }
 0x1b2   : > { %v1943_v26 = vmul.f32 %v3423_v22, %v1751_v13  ;;  %v2026_v25 = vmul.f32 %v3430_v43, %v1990_v12  ;;  %v1753_v28 = vunpack.c.l.bf16 %v400_v17  ;;  %v1770_v27 = vunpack.c.h.bf16 %v416_v16  ;;  %v419_v13 = vld [vmem:[%s2743_s21 + $0x60] sm:$0xff]  }
 0x1b3   : > { %v1989_v49 = vadd.f32 %v1957_v33, %v1733_v32  ;;  %v1974_v3 = vadd.f32 %v1942_v48, %v1718_v57  ;;  %v1976_v30 = vadd.f32 %v1944_v23, %v1720_v8  ;;  %v368_v32 = vld [vmem:[%s2748_s24 + $0x14] sm:$0xf]  ;;  %v1769_v35 = vunpack.c.l.bf16 %v416_v16  ;;  %v371_v23 = vld [vmem:[%s2748_s24 + $0x20] sm:$0xf] }
 0x1b4   : > { %v2094_v22 = vsel %vm509_vm1, %v2026_v25, 0.0  ;;  %v1721_v41 = vunpack.c.l.bf16 %v368_v32  ;;  %v1738_v45 = vunpack.c.h.bf16 %v384_v40  ;;  %v1722_v10 = vunpack.c.l.bf16 %v369_v0 }
 0x1b5   : > { %v2025_v60 = vmul.f32 %v3430_v43, %v1989_v49  ;;  %v2010_v21 = vmul.f32 %v3430_v43, %v1974_v3  ;;  %v418_v49 = vld [vmem:[%s2743_s21 + $0x5c] sm:$0xf]  ;;  %v2012_v31 = vmul.f32 %v3430_v43, %v1976_v30  ;;  %v1756_v15 = vunpack.c.l.bf16 %v403_v52  ;;  %v421_v30 = vld [vmem:[%s2743_s21 + $0x68] sm:$0xf] }
 0x1b6   : > { %v3438_v55 = vpop.permute.xlu2 %1887  ;;  %v1771_v57 = vunpack.c.l.bf16 %v418_v49  ;;  %v1773_v17 = vunpack.c.h.bf16 %v419_v13  ;;  %v1724_v25 = vunpack.c.l.bf16 %v371_v23  ;;  %v389_v49 = vld [vmem:[%s2748_s24 + $0x68] sm:$0xf]  ;;  %vm2172_vm11 = vcmask 7168  }
 0x1b7   : > { %v2091_v63 = vsel %vm509_vm1, %v2025_v60, 0.0  ;;  %v2046_v29 = vsel %vm509_vm1, %v2010_v21, 0.0  ;;  %v2052_v58 = vsel %vm509_vm1, %v2012_v31, 0.0 }
 0x1c0   : > { %v1813_v9 = vpop.permute.xlu2 %1812 }
 0x1c2   : > { %v1878_v34 = vpop.permute.xlu1 %1877 }
 0x1c3   : > { %v1959_v62 = vmul.f32 %v1878_v34, %v1767_v51  ;;  %v1975_v34 = vadd.f32 %v1943_v26, %v1719_v39  ;;  %v1737_v51 = vunpack.c.l.bf16 %v384_v40  ;;  %v387_v26 = vld [vmem:[%s2748_s24 + $0x60] sm:$0xff]  }
 0x1c5   : > { %v1991_v6 = vadd.f32 %v1959_v62, %v1735_v47  ;;  %v2011_v50 = vmul.f32 %v3430_v43, %v1975_v34  ;;  %v386_v47 = vld [vmem:[%s2748_s24 + $0x5c] sm:$0xf]  ;;  %v1755_v62 = vunpack.c.h.bf16 %v401_v54 }
 0x1c6   : > { %v1739_v1 = vunpack.c.l.bf16 %v386_v47 }
 0x1c7   : > { %v1883_v5 = vpop.permute.xlu0 %1882  ;;  %v2027_v20 = vmul.f32 %v3430_v43, %v1991_v6  ;;  %v2049_v38 = vsel %vm509_vm1, %v2011_v50, 0.0  ;;  %v372_v50 = vld [vmem:[%s2748_s24 + $0x24] sm:$0xff]  }
 0x1c8   : > { %v1960_v7 = vmul.f32 %v1883_v5, %v1768_v4  ;;  %v1723_v4 = vunpack.c.h.bf16 %v369_v0 }
 0x1c9   : > { %v2097_v33 = vsel %vm509_vm1, %v2027_v20, 0.0 }
 0x1ca   : > { %v1992_v19 = vadd.f32 %v1960_v7, %v1736_v18 }
 0x1cc   : > { %v2028_v36 = vmul.f32 %v3430_v43, %v1992_v19 }
 0x1d0   : > { %v1808_v59 = vpop.permute.xlu1 %1807  ;;  %v1903_v44 = vpop.permute.xlu2 %1902 }
 0x1d1   : > { %2041 = vadd.xlane.f32.xlu0 %v2040_v53  ;;  %v1945_v42 = vmul.f32 %v1808_v59, %v1753_v28  ;;  %v1961_v53 = vmul.f32 %v3438_v55, %v1769_v35  ;;  %v2100_v59 = vsel %vm509_vm1, %v2028_v36, 0.0  ;;  %v1754_v55 = vunpack.c.l.bf16 %v401_v54  ;;  %v404_v35 = vld [vmem:[%s2743_s21 + $0x24] sm:$0xff]  }
 0x1d2   : > { %v1741_v28 = vunpack.c.h.bf16 %v387_v26  ;;  %v1742_v54 = vunpack.c.l.bf16 %v389_v49 }
 0x1d3   : > { %v1977_v56 = vadd.f32 %v1945_v42, %v1721_v41  ;;  %v1993_v61 = vadd.f32 %v1961_v53, %v1737_v51  ;;  %v1946_v5 = vmul.f32 %v1813_v9, %v1754_v55  ;;  %v1774_v42 = vunpack.c.l.bf16 %v421_v30  ;;  %v422_v55 = vld [vmem:[%s2743_s21 + $0x6c] sm:$0xff]  }
 0x1d4   : > { %v1757_v51 = vunpack.c.l.bf16 %v404_v35 }
 0x1d5   : > { %v2013_v3 = vmul.f32 %v3430_v43, %v1977_v56  ;;  %v2029_v12 = vmul.f32 %v3430_v43, %v1993_v61  ;;  %v1978_v9 = vadd.f32 %v1946_v5, %v1722_v10  ;;  %v1775_v10 = vunpack.c.l.bf16 %v422_v55 }
 0x1d6   : > { %2092 = vadd.xlane.f32.xlu1 %v2091_v63 }
 0x1d7   : > { %2044 = vadd.xlane.f32.xlu2 %v2043_v14  ;;  %v2055_v21 = vsel %vm509_vm1, %v2013_v3, 0.0  ;;  %v2103_v39 = vsel %vm509_vm1, %v2029_v12, 0.0  ;;  %v2014_v34 = vmul.f32 %v3430_v43, %v1978_v9  ;;  %v374_v3 = vld [vmem:[%s2748_s24 + $0x2c] sm:$0xf] }
 0x1d8   : > { %v1893_v24 = vpop.permute.xlu1 %1892  ;;  %v1727_v12 = vunpack.c.l.bf16 %v374_v3 }
 0x1d9   : > { %2089 = vadd.xlane.f32.xlu0 %v2088_v11  ;;  %v1962_v46 = vmul.f32 %v1893_v24, %v1770_v27  ;;  %v1828_v11 = vpop.permute.xlu2 %1827  ;;  %v1772_v24 = vunpack.c.l.bf16 %v419_v13  ;;  %v1740_v27 = vunpack.c.l.bf16 %v387_v26  ;;  %v2058_v53 = vsel %vm509_vm1, %v2014_v34, 0.0 }
 0x1db   : > { %v1994_v60 = vadd.f32 %v1962_v46, %v1738_v45  ;;  %v1758_v46 = vunpack.c.h.bf16 %v404_v35 }
 0x1dd   : > { %v2030_v6 = vmul.f32 %v3430_v43, %v1994_v60  ;;  %v406_v60 = vld [vmem:[%s2743_s21 + $0x2c] sm:$0xf] }
 0x1de   : > { %2047 = vadd.xlane.f32.xlu1 %v2046_v29  ;;  %v1898_v37 = vpop.permute.xlu0 %1897 }
 0x1df   : > { %2095 = vadd.xlane.f32.xlu2 %v2094_v22  ;;  %v1963_v2 = vmul.f32 %v1898_v37, %v1771_v57  ;;  %v2106_v20 = vsel %vm509_vm1, %v2030_v6, 0.0 }
 0x1e0   : > { %v1818_v48 = vpop.permute.xlu1 %1817 }
 0x1e1   : > { %2098 = vadd.xlane.f32.xlu0 %v2097_v33  ;;  %v1947_v63 = vmul.f32 %v1818_v48, %v1755_v62  ;;  %v1995_v14 = vadd.f32 %v1963_v2, %v1739_v1  ;;  %v1964_v33 = vmul.f32 %v1903_v44, %v1772_v24  ;;  %v1726_v48 = vunpack.c.h.bf16 %v372_v50 }
 0x1e2   : > { %v1725_v62 = vunpack.c.l.bf16 %v372_v50  ;;  %v1759_v1 = vunpack.c.l.bf16 %v406_v60 }
 0x1e3   : > { %v1979_v8 = vadd.f32 %v1947_v63, %v1723_v4  ;;  %v2031_v19 = vmul.f32 %v3430_v43, %v1995_v14  ;;  %v1996_v44 = vadd.f32 %v1964_v33, %v1740_v27 }
 0x1e5   : > { %v2015_v32 = vmul.f32 %v3430_v43, %v1979_v8  ;;  %v2109_v41 = vsel %vm509_vm1, %v2031_v19, 0.0  ;;  %v2032_v61 = vmul.f32 %v3430_v43, %v1996_v44  ;;  %v375_v19 = vld [vmem:[%s2748_s24 + $0x30] sm:$0xff]  }
 0x1e6   : > { %2101 = vadd.xlane.f32.xlu1 %v2100_v59  ;;  %v1823_v18 = vpop.permute.xlu0 %1822  ;;  %v1728_v34 = vunpack.c.l.bf16 %v375_v19 }
 0x1e7   : > { %2050 = vadd.xlane.f32.xlu2 %v2049_v38  ;;  %v1948_v16 = vmul.f32 %v1823_v18, %v1756_v15  ;;  %v2061_v31 = vsel %vm509_vm1, %v2015_v32, 0.0  ;;  %v2112_v5 = vsel %vm509_vm1, %v2032_v61, 0.0  ;;  %v1776_v15 = vunpack.c.h.bf16 %v422_v55  ;;  %v392_v55 = vld [vmem:[%s2748_s24 + $0x74] sm:$0xf] }
 0x1e9   : > { %2053 = vadd.xlane.f32.xlu0 %v2052_v58  ;;  %v1918_v22 = vpop.permute.xlu2 %1917  ;;  %v1980_v40 = vadd.f32 %v1948_v16, %v1724_v25  ;;  %v1949_v58 = vmul.f32 %v1828_v11, %v1757_v51  ;;  %v390_v11 = vld [vmem:[%s2748_s24 + $0x6c] sm:$0xff]  }
 0x1ea   : > { %v1744_v23 = vunpack.c.h.bf16 %v390_v11 }
 0x1eb   : > { %v2016_v57 = vmul.f32 %v3430_v43, %v1980_v40  ;;  %v1981_v6 = vadd.f32 %v1949_v58, %v1725_v62  ;;  %v1729_v40 = vunpack.c.h.bf16 %v375_v19  ;;  %v425_v62 = vld [vmem:[%s2743_s21 + $0x78] sm:$0xff]  }
 0x1ed   : > { %v2064_v0 = vsel %vm509_vm1, %v2016_v57, 0.0  ;;  %v2017_v8 = vmul.f32 %v3430_v43, %v1981_v6  ;;  %v424_v57 = vld [vmem:[%s2743_s21 + $0x74] sm:$0xf] }
 0x1ee   : > { %v1908_v7 = vpop.permute.xlu1 %1907  ;;  %2056 = vadd.xlane.f32.xlu1 %v2055_v21  ;;  %v1967_v21 = vmul.f32 %v1918_v22, %v1775_v10  ;;  %v1777_v58 = vunpack.c.l.bf16 %v424_v57  ;;  %v1779_v10 = vunpack.c.h.bf16 %v425_v62 }
 0x1ef   : > { %2104 = vadd.xlane.f32.xlu2 %v2103_v39  ;;  %v1965_v29 = vmul.f32 %v1908_v7, %v1773_v17  ;;  %v1743_v7 = vunpack.c.l.bf16 %v390_v11  ;;  %v407_v17 = vld [vmem:[%s2743_s21 + $0x30] sm:$0xff]  }
 0x1f0   : > { %v1761_v27 = vunpack.c.h.bf16 %v407_v17 }
 0x1f1   : > { %2107 = vadd.xlane.f32.xlu0 %v2106_v20  ;;  %v1997_v45 = vadd.f32 %v1965_v29, %v1741_v28  ;;  %v1999_v16 = vadd.f32 %v1967_v21, %v1743_v7  ;;  %v1760_v28 = vunpack.c.l.bf16 %v407_v17  ;;  %v2067_v29 = vsel %vm509_vm1, %v2017_v8, 0.0 }
 0x1f3   : > { %v2033_v47 = vmul.f32 %v3430_v43, %v1997_v45  ;;  %v1843_v52 = vpop.permute.xlu2 %1842  ;;  %v2035_v22 = vmul.f32 %v3430_v43, %v1999_v16  ;;  %v3538_v16 = vld [vmem:[#allocation3] ss:$0 sm:$0xff] }
 0x1f4   : > { %v1952_v35 = vmul.f32 %v1843_v52, %v1760_v28 }
 0x1f5   : > { %v2115_v63 = vsel %vm509_vm1, %v2033_v47, 0.0  ;;  %v2121_v51 = vsel %vm509_vm1, %v2035_v22, 0.0 }
 0x1f6   : > { %2110 = vadd.xlane.f32.xlu1 %v2109_v41 }
 0x1f7   : > { %2059 = vadd.xlane.f32.xlu2 %v2058_v53 }
 0x1f8   : > { %v1913_v36 = vpop.permute.xlu0 %1912  ;;  %v1833_v37 = vpop.permute.xlu1 %1832 }
 0x1f9   : > { %2062 = vadd.xlane.f32.xlu0 %v2061_v31  ;;  %v1966_v56 = vmul.f32 %v1913_v36, %v1774_v42  ;;  %v1950_v59 = vmul.f32 %v1833_v37, %v1758_v46  ;;  %v410_v42 = vld [vmem:[%s2743_s21 + $0x38] sm:$0xff]   ;;  %v1984_v31 = vadd.f32 %v1952_v35, %v1728_v34 }
 0x1fa   : > { %v378_v37 = vld [vmem:[%s2748_s24 + $0x38] sm:$0xff]   ;;  %v1763_v44 = vunpack.c.h.bf16 %v410_v42  ;;  %v1762_v60 = vunpack.c.l.bf16 %v410_v42 }
 0x1fb   : > { %v1998_v38 = vadd.f32 %v1966_v56, %v1742_v54  ;;  %v1982_v2 = vadd.f32 %v1950_v59, %v1726_v48  ;;  %v1731_v56 = vunpack.c.h.bf16 %v378_v37  ;;  %v2020_v59 = vmul.f32 %v3430_v43, %v1984_v31 }
 0x1fc   : > { %v1730_v61 = vunpack.c.l.bf16 %v378_v37 }
 0x1fd   : > { %v2034_v14 = vmul.f32 %v3430_v43, %v1998_v38  ;;  %v2018_v18 = vmul.f32 %v3430_v43, %v1982_v2  ;;  %v2076_v2 = vsel %vm509_vm1, %v2020_v59, 0.0 }
 0x1fe   : > { %2065 = vadd.xlane.f32.xlu1 %v2064_v0  ;;  %v1778_v0 = vunpack.c.l.bf16 %v425_v62 }
 0x1ff   : > { %2113 = vadd.xlane.f32.xlu2 %v2112_v5  ;;  %v2118_v24 = vsel %vm509_vm1, %v2034_v14, 0.0  ;;  %v2070_v26 = vsel %vm509_vm1, %v2018_v18, 0.0 }
 0x200   : > { %v1838_v4 = vpop.permute.xlu0 %1837  ;;  %v1933_v25 = vpop.permute.xlu2 %1932 }
 0x201   : > { %2116 = vadd.xlane.f32.xlu0 %v2115_v63  ;;  %v1951_v13 = vmul.f32 %v1838_v4, %v1759_v1  ;;  %v393_v4 = vld [vmem:[%s2748_s24 + $0x78] sm:$0xff]   ;;  %v1745_v63 = vunpack.c.l.bf16 %v392_v55  ;;  %v1970_v11 = vmul.f32 %v1933_v25, %v1778_v0 }
 0x202   : > { %v1746_v5 = vunpack.c.l.bf16 %v393_v4  ;;  %v1747_v14 = vunpack.c.h.bf16 %v393_v4 }
 0x203   : > { %v1983_v20 = vadd.f32 %v1951_v13, %v1727_v12 }
 0x204   : > { %v2002_v8 = vadd.f32 %v1970_v11, %v1746_v5 }
 0x205   : > { %v2019_v32 = vmul.f32 %v3430_v43, %v1983_v20 }
 0x206   : > { %2119 = vadd.xlane.f32.xlu1 %v2118_v24  ;;  %v2038_v24 = vmul.f32 %v3430_v43, %v2002_v8 }
 0x207   : > { %v1923_v9 = vpop.permute.xlu1 %1922  ;;  %2068 = vadd.xlane.f32.xlu2 %v2067_v29  ;;  %v2073_v45 = vsel %vm509_vm1, %v2019_v32, 0.0 }
 0x208   : > { %v1968_v39 = vmul.f32 %v1923_v9, %v1776_v15  ;;  %v1858_v50 = vpop.permute.xlu2 %1857  ;;  %v2130_v25 = vsel %vm509_vm1, %v2038_v24, 0.0 }
 0x209   : > { %2071 = vadd.xlane.f32.xlu0 %v2070_v26  ;;  %v1955_v48 = vmul.f32 %v1858_v50, %v1763_v44 }
 0x20a   : > { %v2000_v30 = vadd.f32 %v1968_v39, %v1744_v23 }
 0x20b   : > { %v1987_v1 = vadd.f32 %v1955_v48, %v1731_v56 }
 0x20c   : > { %v2036_v33 = vmul.f32 %v3430_v43, %v2000_v30 }
 0x20d   : > { %v2023_v12 = vmul.f32 %v3430_v43, %v1987_v1 }
 0x20e   : > { %v2124_v41 = vsel %vm509_vm1, %v2036_v33, 0.0  ;;  %2074 = vadd.xlane.f32.xlu1 %v2073_v45 }
 0x20f   : > { %2122 = vadd.xlane.f32.xlu2 %v2121_v51  ;;  %v2085_v23 = vsel %vm509_vm1, %v2023_v12, 0.0 }
 0x210   : > { %v1848_v36 = vpop.permute.xlu1 %1847 }
 0x211   : > { %v1953_v46 = vmul.f32 %v1848_v36, %v1761_v27  ;;  %v1928_v49 = vpop.permute.xlu0 %1927  ;;  %2125 = vadd.xlane.f32.xlu0 %v2124_v41 }
 0x212   : > { %v1969_v52 = vmul.f32 %v1928_v49, %v1777_v58 }
 0x213   : > { %v1985_v53 = vadd.f32 %v1953_v46, %v1729_v40 }
 0x214   : > { %v2001_v15 = vadd.f32 %v1969_v52, %v1745_v63 }
 0x215   : > { %v2021_v54 = vmul.f32 %v3430_v43, %v1985_v53 }
 0x216   : > { %v2037_v20 = vmul.f32 %v3430_v43, %v2001_v15 }
 0x217   : > { %v2079_v47 = vsel %vm509_vm1, %v2021_v54, 0.0  ;;  %2077 = vadd.xlane.f32.xlu2 %v2076_v2 }
 0x218   : > { %v2127_v26 = vsel %vm509_vm1, %v2037_v20, 0.0 }
 0x219   : > { %v1853_v38 = vpop.permute.xlu0 %1852  ;;  %2080 = vadd.xlane.f32.xlu0 %v2079_v47 }
 0x21a   : > { %v1954_v3 = vmul.f32 %v1853_v38, %v1762_v60 }
 0x21c   : > { %v1986_v6 = vadd.f32 %v1954_v3, %v1730_v61 }
 0x21e   : > { %v2022_v13 = vmul.f32 %v3430_v43, %v1986_v6  ;;  %v1938_v18 = vpop.permute.xlu1 %1937 }
 0x21f   : > { %v1971_v21 = vmul.f32 %v1938_v18, %v1779_v10  ;;  %2086 = vadd.xlane.f32.xlu2 %v2085_v23 }
 0x220   : > { %v2082_v7 = vsel %vm509_vm1, %v2022_v13, 0.0 }
 0x221   : > { %2083 = vadd.xlane.f32.xlu1 %v2082_v7  ;;  %v2003_v17 = vadd.f32 %v1971_v21, %v1747_v14 }
 0x223   : > { %v2039_v9 = vmul.f32 %v3430_v43, %v2003_v17 }
 0x225   : > { %v2133_v39 = vsel %vm509_vm1, %v2039_v9, 0.0 }
 0x226   : > { %2134 = vadd.xlane.f32.xlu0 %v2133_v39 }
 0x227   : > { %2131 = vadd.xlane.f32.xlu2 %v2130_v25 }
 0x229   : > { %2128 = vadd.xlane.f32.xlu1 %v2127_v26 }
 0x244   : > { %v2042_v43 = vpop.xlane.xlu0 %2041 }
 0x245   : > { %v2140_v19 = vadd.f32 %v3538_v16, %v2042_v43 }
 0x247   : > { %2173 = vst.msk [vmem:[%s3543_s14] sm:$0xff] %vm2172_vm11, %v2140_v19 }
 0x249   : > { %v2093_v28 = vpop.xlane.xlu1 %2092 }
 0x24a   : > { %v2157_v29 = vadd.f32 %v3538_v16, %v2093_v28  ;;  %v2045_v27 = vpop.xlane.xlu2 %2044 }
 0x24b   : > { %v2141_v33 = vadd.f32 %v3538_v16, %v2045_v27 }
 0x24c   : > { %v2090_v30 = vpop.xlane.xlu0 %2089  ;;  %2190 = vst.msk [vmem:[%s3543_s14 + $0x88] sm:$0xff] %vm2172_vm11, %v2157_v29 }
 0x24d   : > { %v2156_v32 = vadd.f32 %v3538_v16, %v2090_v30  ;;  %2174 = vst.msk [vmem:[%s3543_s14 + $0x8] sm:$0xff] %vm2172_vm11, %v2141_v33 }
 0x24f   : > { %2189 = vst.msk [vmem:[%s3543_s14 + $0x80] sm:$0xff] %vm2172_vm11, %v2156_v32 }
 0x251   : > { %v2048_v34 = vpop.xlane.xlu1 %2047 }
 0x252   : > { %v2142_v35 = vadd.f32 %v3538_v16, %v2048_v34  ;;  %v2096_v41 = vpop.xlane.xlu2 %2095 }
 0x253   : > { %v2158_v42 = vadd.f32 %v3538_v16, %v2096_v41 }
 0x254   : > { %v2099_v22 = vpop.xlane.xlu0 %2098  ;;  %2175 = vst.msk [vmem:[%s3543_s14 + $0x10] sm:$0xff] %vm2172_vm11, %v2142_v35 }
 0x255   : > { %v2159_v40 = vadd.f32 %v3538_v16, %v2099_v22  ;;  %2191 = vst.msk [vmem:[%s3543_s14 + $0x90] sm:$0xff] %vm2172_vm11, %v2158_v42 }
 0x257   : > { %2192 = vst.msk [vmem:[%s3543_s14 + $0x98] sm:$0xff] %vm2172_vm11, %v2159_v40 }
 0x259   : > { %v2102_v36 = vpop.xlane.xlu1 %2101 }
 0x25a   : > { %v2160_v45 = vadd.f32 %v3538_v16, %v2102_v36  ;;  %v2051_v31 = vpop.xlane.xlu2 %2050 }
 0x25b   : > { %v2143_v37 = vadd.f32 %v3538_v16, %v2051_v31 }
 0x25c   : > { %v2054_v46 = vpop.xlane.xlu0 %2053  ;;  %2193 = vst.msk [vmem:[%s3543_s14 + $0xa0] sm:$0xff] %vm2172_vm11, %v2160_v45 }
 0x25d   : > { %v2144_v49 = vadd.f32 %v3538_v16, %v2054_v46  ;;  %2176 = vst.msk [vmem:[%s3543_s14 + $0x18] sm:$0xff] %vm2172_vm11, %v2143_v37 }
 0x25f   : > { %2177 = vst.msk [vmem:[%s3543_s14 + $0x20] sm:$0xff] %vm2172_vm11, %v2144_v49 }
 0x261   : > { %v2057_v44 = vpop.xlane.xlu1 %2056 }
 0x262   : > { %v2145_v51 = vadd.f32 %v3538_v16, %v2057_v44  ;;  %v2105_v54 = vpop.xlane.xlu2 %2104 }
 0x263   : > { %v2161_v56 = vadd.f32 %v3538_v16, %v2105_v54 }
 0x264   : > { %v2108_v53 = vpop.xlane.xlu0 %2107  ;;  %2178 = vst.msk [vmem:[%s3543_s14 + $0x28] sm:$0xff] %vm2172_vm11, %v2145_v51 }
 0x265   : > { %v2162_v50 = vadd.f32 %v3538_v16, %v2108_v53  ;;  %2194 = vst.msk [vmem:[%s3543_s14 + $0xa8] sm:$0xff] %vm2172_vm11, %v2161_v56 }
 0x267   : > { %2195 = vst.msk [vmem:[%s3543_s14 + $0xb0] sm:$0xff] %vm2172_vm11, %v2162_v50 }
 0x269   : > { %v2111_v57 = vpop.xlane.xlu1 %2110 }
 0x26a   : > { %v2163_v48 = vadd.f32 %v3538_v16, %v2111_v57  ;;  %v2060_v47 = vpop.xlane.xlu2 %2059 }
 0x26b   : > { %v2146_v62 = vadd.f32 %v3538_v16, %v2060_v47 }
 0x26c   : > { %v2063_v59 = vpop.xlane.xlu0 %2062  ;;  %2196 = vst.msk [vmem:[%s3543_s14 + $0xb8] sm:$0xff] %vm2172_vm11, %v2163_v48 }
 0x26d   : > { %v2147_v60 = vadd.f32 %v3538_v16, %v2063_v59  ;;  %2179 = vst.msk [vmem:[%s3543_s14 + $0x30] sm:$0xff] %vm2172_vm11, %v2146_v62 }
 0x26f   : > { %2180 = vst.msk [vmem:[%s3543_s14 + $0x38] sm:$0xff] %vm2172_vm11, %v2147_v60 }
 0x271   : > { %v2066_v58 = vpop.xlane.xlu1 %2065 }
 0x272   : > { %v2148_v61 = vadd.f32 %v3538_v16, %v2066_v58  ;;  %v2114_v0 = vpop.xlane.xlu2 %2113 }
 0x273   : > { %v2164_v1 = vadd.f32 %v3538_v16, %v2114_v0 }
 0x274   : > { %v2117_v55 = vpop.xlane.xlu0 %2116  ;;  %2181 = vst.msk [vmem:[%s3543_s14 + $0x40] sm:$0xff] %vm2172_vm11, %v2148_v61 }
 0x275   : > { %v2165_v38 = vadd.f32 %v3538_v16, %v2117_v55  ;;  %2197 = vst.msk [vmem:[%s3543_s14 + $0xc0] sm:$0xff] %vm2172_vm11, %v2164_v1 }
 0x277   : > { %2198 = vst.msk [vmem:[%s3543_s14 + $0xc8] sm:$0xff] %vm2172_vm11, %v2165_v38 }
 0x279   : > { %v2120_v2 = vpop.xlane.xlu1 %2119 }
 0x27a   : > { %v2166_v3 = vadd.f32 %v3538_v16, %v2120_v2  ;;  %v2069_v52 = vpop.xlane.xlu2 %2068 }
 0x27b   : > { %v2149_v6 = vadd.f32 %v3538_v16, %v2069_v52 }
 0x27c   : > { %v2072_v4 = vpop.xlane.xlu0 %2071  ;;  %2199 = vst.msk [vmem:[%s3543_s14 + $0xd0] sm:$0xff] %vm2172_vm11, %v2166_v3 }
 0x27d   : > { %v2150_v63 = vadd.f32 %v3538_v16, %v2072_v4  ;;  %2182 = vst.msk [vmem:[%s3543_s14 + $0x48] sm:$0xff] %vm2172_vm11, %v2149_v6 }
 0x27f   : > { %2183 = vst.msk [vmem:[%s3543_s14 + $0x50] sm:$0xff] %vm2172_vm11, %v2150_v63 }
 0x281   : > { %v2075_v10 = vpop.xlane.xlu1 %2074 }
 0x282   : > { %v2151_v5 = vadd.f32 %v3538_v16, %v2075_v10  ;;  %v2123_v13 = vpop.xlane.xlu2 %2122 }
 0x283   : > { %v2167_v14 = vadd.f32 %v3538_v16, %v2123_v13 }
 0x284   : > { %v2126_v11 = vpop.xlane.xlu0 %2125  ;;  %2184 = vst.msk [vmem:[%s3543_s14 + $0x58] sm:$0xff] %vm2172_vm11, %v2151_v5 }
 0x285   : > { %v2168_v12 = vadd.f32 %v3538_v16, %v2126_v11  ;;  %2200 = vst.msk [vmem:[%s3543_s14 + $0xd8] sm:$0xff] %vm2172_vm11, %v2167_v14 }
 0x287   : > { %2201 = vst.msk [vmem:[%s3543_s14 + $0xe0] sm:$0xff] %vm2172_vm11, %v2168_v12 }
 0x28a   : > { %v2078_v7 = vpop.xlane.xlu2 %2077 }
 0x28b   : > { %v2152_v21 = vadd.f32 %v3538_v16, %v2078_v7 }
 0x28c   : > { %v2081_v15 = vpop.xlane.xlu0 %2080 }
 0x28d   : > { %v2153_v18 = vadd.f32 %v3538_v16, %v2081_v15  ;;  %2185 = vst.msk [vmem:[%s3543_s14 + $0x60] sm:$0xff] %vm2172_vm11, %v2152_v21 }
 0x28f   : > { %2186 = vst.msk [vmem:[%s3543_s14 + $0x68] sm:$0xff] %vm2172_vm11, %v2153_v18 }
 0x292   : > { %v2087_v17 = vpop.xlane.xlu2 %2086 }
 0x293   : > { %v2155_v20 = vadd.f32 %v3538_v16, %v2087_v17 }
 0x294   : > { %v2084_v8 = vpop.xlane.xlu1 %2083 }
 0x295   : > { %v2154_v23 = vadd.f32 %v3538_v16, %v2084_v8  ;;  %2188 = vst.msk [vmem:[%s3543_s14 + $0x78] sm:$0xff] %vm2172_vm11, %v2155_v20 }
 0x297   : > { %2187 = vst.msk [vmem:[%s3543_s14 + $0x70] sm:$0xff] %vm2172_vm11, %v2154_v23 }
 0x299   : > { %v2135_v9 = vpop.xlane.xlu0 %2134 }
 0x29a   : > { %v2171_v39 = vadd.f32 %v3538_v16, %v2135_v9  ;;  %v2132_v25 = vpop.xlane.xlu2 %2131 }
 0x29b   : > { %v2170_v43 = vadd.f32 %v3538_v16, %v2132_v25 }
 0x29c   : > { %v2129_v24 = vpop.xlane.xlu1 %2128  ;;  %2204 = vst.msk [vmem:[%s3543_s14 + $0xf8] sm:$0xff] %vm2172_vm11, %v2171_v39 }
 0x29d   : > { %v2169_v26 = vadd.f32 %v3538_v16, %v2129_v24  ;;  %2203 = vst.msk [vmem:[%s3543_s14 + $0xf0] sm:$0xff] %vm2172_vm11, %v2170_v43 }
 0x29f   : > { %2202 = vst.msk [vmem:[%s3543_s14 + $0xe8] sm:$0xff] %vm2172_vm11, %v2169_v26 }
 0x2a0 PF: > { %s23_s13 = sadd.s32 1, %s2664_s13  }
 0x2a1   : > { %p20_p4 = scmp.ge.s32.totalorder %s23_s13, 4  }
 0x2a3   :  { %22 = sbr.rel (!%p20_p4) target bundleno = 4 (0x4), region = 89 }

</bundles_post_ra>
